<compile_context>
chip_gen: v7x
topology: tpu7x:2x2x1
jax: 0.10.0
libtpu: 0.0.40
codegen_flags: <defaults>
</compile_context>

<pallas_src>
import jax
import jax.numpy as jnp
from jax.experimental import pallas as pl
from jax.experimental.pallas import tpu as pltpu

# ---- module hyper-parameters (fixed at construction time in the PyTorch module) ----
COUPLING_WEIGHT = 0.5
SOCIAL_WEIGHT_DECAY_RATE = 0.1
PHASE_MULTIPLYER = 1.0
AGENT_ID = 2
N_AGENTS = 8
N_OSCILLATORS = 5

_BATCH_TILE = 128  # batch rows per grid step (sublane dim of the input blocks)


def _social_influence_kernel(angles_ref, dist_ref, out_ref):
    """One batch tile.

    angles_ref : (tb, N)    f32  per-instance agent angles       (batch x agents)
    dist_ref   : (tb, N, N) f32  per-instance inter-agent distances
    out_ref    : (1, 1, tb) f32  per-instance weighted sums (lane-dense)
    """
    ang = angles_ref[...]                                   # (tb, N)
    dist = dist_ref[...]                                     # (tb, N, N)

    # self_angles = angle_filter @ angles == angles[AGENT_ID] broadcast: static lane slice.
    self_ang = ang[:, AGENT_ID:AGENT_ID + 1]                 # (tb, 1)
    diff = self_ang - ang                                    # (tb, N)
    if PHASE_MULTIPLYER != 1.0:                              # hoisted: skip the mul when 1.0
        diff = PHASE_MULTIPLYER * diff

    # distances = inter_agent_distances @ one_hot(AGENT_ID) == column AGENT_ID, selected
    # in-kernel via a lane-iota mask folded into a reduce (no MXU, no wrapper slice).
    lane = jax.lax.broadcasted_iota(jnp.int32, dist.shape, 2)                 # (tb, N, N)
    dist_col = jnp.sum(jnp.where(lane == AGENT_ID, dist, 0.0), axis=-1)       # (tb, N)

    # exp() goes to the EUP slot; muls/sin/reduce on VPU/XLU. Keep f32 (v5e-safe).
    weighted = jnp.exp(-SOCIAL_WEIGHT_DECAY_RATE * dist_col) * jnp.sin(diff)  # (tb, N)

    # Coupling weight applied once per row *after* the reduce (1 mul/row, not 1/element).
    sums = COUPLING_WEIGHT * jnp.sum(weighted, axis=-1)                        # (tb,)

    # Lane-dense store of the tb per-instance scalars.
    out_ref[...] = sums.reshape(out_ref.shape).astype(out_ref.dtype)


def _round_up(x, m):
    return (x + m - 1) // m * m


def social_influence_weighted_sums(angles, inter_agent_distances):
    """Batched scalar weighted sums.

    angles                : (B, N_AGENTS) float
    inter_agent_distances : (B, N_AGENTS, N_AGENTS) float
    returns               : (B,) f32
    """
    b = angles.shape[0]
    angles = angles.astype(jnp.float32)
    dists = inter_agent_distances.astype(jnp.float32)
    # TODO(synk): on v6e/v7x the inputs could be staged as bf16 and upcast in-kernel to halve
    # HBM traffic; kept f32 so the identical kernel is also the right choice on v5e.

    tb = _BATCH_TILE if b >= _BATCH_TILE else _round_up(b, 8)
    bp = _round_up(b, tb)
    if bp != b:
        angles = jnp.pad(angles, ((0, bp - b), (0, 0)))
        dists = jnp.pad(dists, ((0, bp - b), (0, 0), (0, 0)))
    nb = bp // tb

    out = pl.pallas_call(
        _social_influence_kernel,
        out_shape=jax.ShapeDtypeStruct((nb, 1, tb), jnp.float32),
        grid=(nb,),
        in_specs=[
            pl.BlockSpec((tb, N_AGENTS), lambda i: (i, 0)),
            pl.BlockSpec((tb, N_AGENTS, N_AGENTS), lambda i: (i, 0, 0)),
        ],
        out_specs=pl.BlockSpec((1, 1, tb), lambda i: (i, 0, 0)),
        compiler_params=pltpu.CompilerParams(
            # Batch axis is embarrassingly parallel: sharded across the 2 TCs on v7x,
            # no effect (free flag) on single-TC v5e/v6e.
            dimension_semantics=("parallel",),
        ),
    )(angles, dists)

    return out.reshape(bp)[:b]


@jax.jit
def social_influence_forward_batched(angles, inter_agent_distances):
    """Batched module forward: (B, N) angles, (B, N, N) distances -> (B, 5)."""
    sums = social_influence_weighted_sums(angles, inter_agent_distances)      # (B,)
    b = sums.shape[0]
    # output = oscillator_filter * weighted_sum: one-hot at index 4, fused by XLA.
    return jnp.zeros((b, N_OSCILLATORS), jnp.float32).at[:, 4].set(sums)


def social_influence_forward(angles, inter_agent_distances):
    """Original (single-instance) module signature: (N,), (N, N) -> (5,)."""
    return social_influence_forward_batched(angles[None], inter_agent_distances[None])[0]


def _reference_single(angles, inter_agent_distances):
    """Pure-jnp transcription of the PyTorch forward (filter matmuls included)."""
    angle_filter = jnp.zeros((N_AGENTS, N_AGENTS), jnp.float32).at[:, AGENT_ID].set(1.0)
    distance_filter = jnp.zeros((N_AGENTS,), jnp.float32).at[AGENT_ID].set(1.0)
    oscillator_filter = jnp.zeros((N_OSCILLATORS,), jnp.float32).at[4].set(1.0)
    self_angles = angle_filter @ angles
    angle_diff = PHASE_MULTIPLYER * (self_angles - angles)
    distances = inter_agent_distances @ distance_filter
    weighted = (COUPLING_WEIGHT
                * jnp.exp(-SOCIAL_WEIGHT_DECAY_RATE * distances)
                * jnp.sin(angle_diff))
    return oscillator_filter * jnp.sum(weighted)


if __name__ == "__main__":
    key = jax.random.PRNGKey(0)
    k1, k2, k3, k4 = jax.random.split(key, 4)

    # Batched case: many environments / timesteps in one pallas_call.
    B = 256
    angles_b = jax.random.uniform(k1, (B, N_AGENTS), jnp.float32, 0.0, 2.0 * jnp.pi)
    dists_b = jax.random.uniform(k2, (B, N_AGENTS, N_AGENTS), jnp.float32, 0.0, 5.0)

    out_b = jax.block_until_ready(social_influence_forward_batched(angles_b, dists_b))
    ref_b = jax.vmap(_reference_single)(angles_b, dists_b)
    assert out_b.shape == (B, N_OSCILLATORS)
    assert jnp.allclose(out_b, ref_b, atol=1e-5, rtol=1e-5), (out_b[:2], ref_b[:2])

    # Single-instance case (original module signature).
    angles1 = jax.random.uniform(k3, (N_AGENTS,), jnp.float32, 0.0, 2.0 * jnp.pi)
    dists1 = jax.random.uniform(k4, (N_AGENTS, N_AGENTS), jnp.float32, 0.0, 5.0)

    out1 = jax.block_until_ready(social_influence_forward(angles1, dists1))
    ref1 = _reference_single(angles1, dists1)
    assert out1.shape == (N_OSCILLATORS,)
    assert jnp.allclose(out1, ref1, atol=1e-5, rtol=1e-5), (out1, ref1)

    print("KERNEL_OK")
</pallas_src>

<mosaic_0001>
module attributes {stable_mosaic.version = 11 : i64} {
  func.func @_social_influence_kernel(%arg0: i32, %arg1: memref<128x8xf32, #tpu.memory_space<vmem>>, %arg2: memref<128x8x8xf32, #tpu.memory_space<vmem>>, %arg3: memref<1x1x128xf32, #tpu.memory_space<vmem>>) attributes {dimension_semantics = [#tpu.dimension_semantics<parallel>], iteration_bounds = array<i64: 2>, scalar_prefetch = 0 : i64, scratch_operands = 0 : i64, tpu.core_type = #tpu.core_type<tc>, window_params = [{transform_indices = @transform_0, window_bounds = array<i64: 128, 8>}, {transform_indices = @transform_1, window_bounds = array<i64: 128, 8, 8>}, {transform_indices = @transform_2, window_bounds = array<i64: 1, 1, 128>}]} {
    %c0 = arith.constant 0 : index
    %c0_0 = arith.constant 0 : index
    %0 = vector.load %arg1[%c0, %c0_0] : memref<128x8xf32, #tpu.memory_space<vmem>>, vector<128x8xf32>
    %c0_1 = arith.constant 0 : index
    %c0_2 = arith.constant 0 : index
    %c0_3 = arith.constant 0 : index
    %1 = vector.load %arg2[%c0_1, %c0_2, %c0_3] : memref<128x8x8xf32, #tpu.memory_space<vmem>>, vector<128x8x8xf32>
    %2 = vector.extract_strided_slice %0 {offsets = [0, 2], sizes = [128, 1], strides = [1, 1]} : vector<128x8xf32> to vector<128x1xf32>
    %3 = vector.broadcast %2 : vector<128x1xf32> to vector<128x8xf32>
    %4 = arith.subf %3, %0 : vector<128x8xf32>
    %5 = tpu.iota {dimensions = array<i32: 2>} : vector<128x8x8xi32>
    %c2_i32 = arith.constant 2 : i32
    %6 = vector.broadcast %c2_i32 : i32 to vector<128x8x8xi32>
    %7 = arith.cmpi eq, %5, %6 : vector<128x8x8xi32>
    %cst = arith.constant 0.000000e+00 : f32
    %8 = vector.broadcast %cst : f32 to vector<128x8x8xf32>
    %9 = arith.select %7, %1, %8 : vector<128x8x8xi1>, vector<128x8x8xf32>
    %cst_4 = arith.constant dense<0.000000e+00> : vector<128x8xf32>
    %10 = vector.multi_reduction <add>, %9, %cst_4 [2] : vector<128x8x8xf32> to vector<128x8xf32>
    %cst_5 = arith.constant -1.000000e-01 : f32
    %11 = vector.broadcast %cst_5 : f32 to vector<128x8xf32>
    %12 = arith.mulf %11, %10 : vector<128x8xf32>
    %13 = math.exp %12 : vector<128x8xf32>
    %14 = math.sin %4 : vector<128x8xf32>
    %15 = arith.mulf %13, %14 : vector<128x8xf32>
    %cst_6 = arith.constant dense<0.000000e+00> : vector<128xf32>
    %16 = vector.multi_reduction <add>, %15, %cst_6 [1] : vector<128x8xf32> to vector<128xf32>
    %cst_7 = arith.constant 5.000000e-01 : f32
    %17 = vector.broadcast %cst_7 : f32 to vector<128xf32>
    %18 = arith.mulf %17, %16 : vector<128xf32>
    %19 = vector.shape_cast %18 : vector<128xf32> to vector<1x1x128xf32>
    %c0_8 = arith.constant 0 : index
    %c0_9 = arith.constant 0 : index
    %c0_10 = arith.constant 0 : index
    %20 = vector.load %arg3[%c0_8, %c0_9, %c0_10] : memref<1x1x128xf32, #tpu.memory_space<vmem>>, vector<1x1x128xf32>
    tpu.vector_store %arg3[%c0_8, %c0_9, %c0_10], %19 {strides = array<i32>} : memref<1x1x128xf32, #tpu.memory_space<vmem>>, vector<1x1x128xf32>,
    return
  }
  func.func @transform_0(%arg0: i32) -> (i32, i32) {
    %c0_i32 = arith.constant 0 : i32
    %c0_i32_0 = arith.constant 0 : i32
    return %arg0, %c0_i32 : i32, i32
  }
  func.func @transform_1(%arg0: i32) -> (i32, i32, i32) {
    %c0_i32 = arith.constant 0 : i32
    %c0_i32_0 = arith.constant 0 : i32
    %c0_i32_1 = arith.constant 0 : i32
    return %arg0, %c0_i32, %c0_i32_0 : i32, i32, i32
  }
  func.func @transform_2(%arg0: i32) -> (i32, i32, i32) {
    %c0_i32 = arith.constant 0 : i32
    %c0_i32_0 = arith.constant 0 : i32
    %c0_i32_1 = arith.constant 0 : i32
    return %arg0, %c0_i32, %c0_i32_0 : i32, i32, i32
  }
}

</mosaic_0001>

<bundles_post_ra>
// kernel: social_influence_forward_batched.1
= control target key start
LH: loop header
LB: loop body
LE: loop exit
PB: predicated region body
PF: predicated region fallthrough
CT: control target
= control target key end

     0   :  { %s6065_s9 = smov 0   ;;  %s10581_s0 = inlined_call_operand.vmem [shape: f32[256,8], index: 0, kind: input, shape index: {}]   ;;  %s10582_s1 = inlined_call_operand.vmem [shape: f32[256,8,8], index: 1, kind: input, shape index: {}]   ;;  %s10583_s2 = inlined_call_operand.vmem [shape: f32[2,1,128], index: 2, kind: output, shape index: {}]  }
   0x1 LB: > { %s6071_s10 = sadd.s32 4294967295, %s6040_s9   ;;  %p5549_p0 = scmp.ge.s32.totalorder %s6040_s9, 1  ;;  %s6040_s9 = sphi %s6065_s9, %s12_s9  }
   0x2   : > { %p124_p1 = scmp.lt.s32.totalorder %s6040_s9, 3 }
   0x4   : > { %p125_p2 = pnand %p5549_p0, %p124_p1 }
   0x6   : > { %128 = sbr.rel (%p125_p2) target bundleno = 1225 (0x4c9), region = 28 }
   0xd   : > { %s5550_s11 = sshll.u32 %s6071_s10, 4  ;;  %v6042_v0 = vmov 2   ;;  %s5552_s16 = sshll.u32 %s6071_s10, 7  ;;  %v10584_v17 = vlaneseq  ;;  %vm535_vm1 = vcmask 64512  }
   0xe   : > { %5701 = vset.pattern.permute.xlu1 %v6042_v0  ;;  %5700 = vset.pattern.permute.xlu0 %v6042_v0  ;;  %p150_p3 = scmp.lt.s32.totalorder %s5550_s11, 31  ;;  %p156_p4 = scmp.lt.s32.totalorder %s5552_s16, 255 }
   0xf   : > { %v6117_v18 = vand.u32 127, %v10584_v17  ;;  %p161_p5 = scmp.lt.s32.totalorder %s6071_s10, 1 }
  0x10   : > { %s11142_s11 = smov (!%p150_p3, %s5550_s11), 31  ;;  %s11144_s16 = smov (!%p156_p4, %s5552_s16), 255 }
  0x11   : > { %s5551_s12 = sshll.u32 %s11142_s11, 3  ;;  %s5553_s17 = sshll.u32 %s11144_s16, 3  ;;  %10645 = vst [vmem:[#allocation2_spill] sm:$0xff] %v6117_v18  ;;  %vm406_vm0 = vcmp.eq.s32.totalorder %v6117_v18, 2 }
  0x12   : > { %s6079_s15 = scalar_lea.vmem %s10581_s0, %s5551_s12  ;;  %s6122_s20 = scalar_lea.vmem %s10582_s1, %s5553_s17 }
  0x13   : > { %v6082_v1 = vld [vmem:[%s6079_s15 + $0x10] sm:$0xff]  ;;  %v6085_v2 = vld [vmem:[%s6079_s15] sm:$0xff]  ;;  %v6090_v3 = vld [vmem:[%s6079_s15 + $0x18] sm:$0xff]  ;;  %s11146_s10 = smov (!%p161_p5, %s6071_s10), 1 }
  0x14   : > { %320 = vperm.xlu1 %5701, %v6082_v1   ;;  %310 = vperm.xlu0 %5700, %v6085_v2   ;;  %v6093_v4 = vld [vmem:[%s6079_s15 + $0x8] sm:$0xff]  ;;  %v6101_v6 = vld [vmem:[%s6079_s15 + $0x20] sm:$0xff]  ;;  %v171_v7 = vld [vmem:[%s6079_s15 + $0x38] sm:$0xff]  ;;  %s163_s23 = scalar_lea.vmem %s10583_s2, %s11146_s10 }
  0x15   : > { %v6098_v5 = vld [vmem:[%s6079_s15 + $0x28] sm:$0xff]  ;;  %v170_v8 = vld [vmem:[%s6079_s15 + $0x30] sm:$0xff]  ;;  %v172_v10 = vld [vmem:[%s6079_s15 + $0x40] sm:$0xff] }
  0x16   : > { %v173_v9 = vld [vmem:[%s6079_s15 + $0x48] sm:$0xff]  ;;  %v175_v11 = vld [vmem:[%s6079_s15 + $0x58] sm:$0xff]  ;;  %v174_v12 = vld [vmem:[%s6079_s15 + $0x50] sm:$0xff] }
  0x17   : > { %v177_v13 = vld [vmem:[%s6079_s15 + $0x68] sm:$0xff]  ;;  %v176_v14 = vld [vmem:[%s6079_s15 + $0x60] sm:$0xff]  ;;  %v179_v15 = vld [vmem:[%s6079_s15 + $0x78] sm:$0xff] }
  0x18   : > { %325 = vperm.xlu1 %5701, %v6090_v3   ;;  %315 = vperm.xlu0 %5700, %v6093_v4   ;;  %v178_v16 = vld [vmem:[%s6079_s15 + $0x70] sm:$0xff]  ;;  %v180_v19 = vld [vmem:[%s6122_s20] sm:$0xff]  ;;  %v181_v22 = vld [vmem:[%s6122_s20 + $0x8] sm:$0xff] }
  0x19   : > { %v407_v20 = vsel %vm406_vm0, %v180_v19, 0.0  ;;  %v182_v21 = vld [vmem:[%s6122_s20 + $0x10] sm:$0xff]  ;;  %v408_v25 = vsel %vm406_vm0, %v181_v22, 0.0  ;;  %v183_v26 = vld [vmem:[%s6122_s20 + $0x18] sm:$0xff]  ;;  %v184_v27 = vld [vmem:[%s6122_s20 + $0x20] sm:$0xff] }
  0x1a   : > { %v536_v23 = vsel %vm535_vm1, %v407_v20, 0.0  ;;  %v409_v24 = vsel %vm406_vm0, %v182_v21, 0.0  ;;  %v539_v29 = vsel %vm535_vm1, %v408_v25, 0.0  ;;  %v410_v30 = vsel %vm406_vm0, %v183_v26, 0.0  ;;  %v185_v32 = vld [vmem:[%s6122_s20 + $0x28] sm:$0xff]  ;;  %v186_v33 = vld [vmem:[%s6122_s20 + $0x30] sm:$0xff] }
  0x1b   : > { %v542_v28 = vsel %vm535_vm1, %v409_v24, 0.0  ;;  %v411_v31 = vsel %vm406_vm0, %v184_v27, 0.0  ;;  %v545_v34 = vsel %vm535_vm1, %v410_v30, 0.0  ;;  %v412_v36 = vsel %vm406_vm0, %v185_v32, 0.0  ;;  %v187_v38 = vld [vmem:[%s6122_s20 + $0x38] sm:$0xff]  ;;  %v188_v39 = vld [vmem:[%s6122_s20 + $0x40] sm:$0xff] }
  0x1c   : > { %335 = vperm.xlu1 %5701, %v6098_v5   ;;  %330 = vperm.xlu0 %5700, %v6101_v6   ;;  %v548_v35 = vsel %vm535_vm1, %v411_v31, 0.0  ;;  %v413_v37 = vsel %vm406_vm0, %v186_v33, 0.0  ;;  %v551_v40 = vsel %vm535_vm1, %v412_v36, 0.0  ;;  %v414_v42 = vsel %vm406_vm0, %v187_v38, 0.0  ;;  %v189_v44 = vld [vmem:[%s6122_s20 + $0x48] sm:$0xff]  ;;  %v190_v45 = vld [vmem:[%s6122_s20 + $0x50] sm:$0xff] }
  0x1d   : > { %v554_v41 = vsel %vm535_vm1, %v413_v37, 0.0  ;;  %v415_v43 = vsel %vm406_vm0, %v188_v39, 0.0  ;;  %v557_v46 = vsel %vm535_vm1, %v414_v42, 0.0  ;;  %v416_v48 = vsel %vm406_vm0, %v189_v44, 0.0  ;;  %v191_v50 = vld [vmem:[%s6122_s20 + $0x58] sm:$0xff]  ;;  %v192_v51 = vld [vmem:[%s6122_s20 + $0x60] sm:$0xff] }
  0x1e   : > { %v560_v47 = vsel %vm535_vm1, %v415_v43, 0.0  ;;  %v417_v49 = vsel %vm406_vm0, %v190_v45, 0.0  ;;  %v563_v52 = vsel %vm535_vm1, %v416_v48, 0.0  ;;  %v418_v54 = vsel %vm406_vm0, %v191_v50, 0.0  ;;  %v193_v56 = vld [vmem:[%s6122_s20 + $0x68] sm:$0xff]  ;;  %v194_v57 = vld [vmem:[%s6122_s20 + $0x70] sm:$0xff] }
  0x1f   : > { %v566_v53 = vsel %vm535_vm1, %v417_v49, 0.0  ;;  %v419_v55 = vsel %vm406_vm0, %v192_v51, 0.0  ;;  %v569_v58 = vsel %vm535_vm1, %v418_v54, 0.0  ;;  %v420_v60 = vsel %vm406_vm0, %v193_v56, 0.0  ;;  %v195_v62 = vld [vmem:[%s6122_s20 + $0x78] sm:$0xff]  ;;  %v196_v63 = vld [vmem:[%s6122_s20 + $0x80] sm:$0xff] }
  0x20   : > { %345 = vperm.xlu1 %5701, %v171_v7   ;;  %340 = vperm.xlu0 %5700, %v170_v8   ;;  %v572_v59 = vsel %vm535_vm1, %v419_v55, 0.0  ;;  %v421_v61 = vsel %vm406_vm0, %v194_v57, 0.0  ;;  %v575_v0 = vsel %vm535_vm1, %v420_v60, 0.0  ;;  %v422_v8 = vsel %vm406_vm0, %v195_v62, 0.0  ;;  %v200_v19 = vld [vmem:[%s6122_s20 + $0xa0] sm:$0xff]  ;;  %v201_v24 = vld [vmem:[%s6122_s20 + $0xa8] sm:$0xff] }
  0x21   : > { %v578_v7 = vsel %vm535_vm1, %v421_v61, 0.0  ;;  %v202_v25 = vld [vmem:[%s6122_s20 + $0xb0] sm:$0xff]  ;;  %v203_v30 = vld [vmem:[%s6122_s20 + $0xb8] sm:$0xff]  ;;  %v204_v31 = vld [vmem:[%s6122_s20 + $0xc0] sm:$0xff] }
  0x22   : > { %v205_v36 = vld [vmem:[%s6122_s20 + $0xc8] sm:$0xff]  ;;  %v206_v37 = vld [vmem:[%s6122_s20 + $0xd0] sm:$0xff]  ;;  %v207_v42 = vld [vmem:[%s6122_s20 + $0xd8] sm:$0xff] }
  0x23   : > { %v208_v43 = vld [vmem:[%s6122_s20 + $0xe0] sm:$0xff]  ;;  %v209_v48 = vld [vmem:[%s6122_s20 + $0xe8] sm:$0xff]  ;;  %v210_v49 = vld [vmem:[%s6122_s20 + $0xf0] sm:$0xff] }
  0x24   : > { %355 = vperm.xlu1 %5701, %v173_v9   ;;  %350 = vperm.xlu0 %5700, %v172_v10   ;;  %v423_v9 = vsel %vm406_vm0, %v196_v63, 0.0  ;;  %v197_v10 = vld [vmem:[%s6122_s20 + $0x88] sm:$0xff]  ;;  %v211_v54 = vld [vmem:[%s6122_s20 + $0xf8] sm:$0xff]  ;;  %v212_v55 = vld [vmem:[%s6122_s20 + $0x100] sm:$0xff] }
  0x25   : > { %v213_v60 = vld [vmem:[%s6122_s20 + $0x108] sm:$0xff]  ;;  %v214_v61 = vld [vmem:[%s6122_s20 + $0x110] sm:$0xff] }
  0x28   : > { %365 = vperm.xlu1 %5701, %v175_v11   ;;  %360 = vperm.xlu0 %5700, %v174_v12   ;;  %v198_v11 = vld [vmem:[%s6122_s20 + $0x90] sm:$0xff]  ;;  %v581_v12 = vsel %vm535_vm1, %v422_v8, 0.0  ;;  %v215_v8 = vld [vmem:[%s6122_s20 + $0x118] sm:$0xff] }
  0x2c   : > { %375 = vperm.xlu1 %5701, %v177_v13   ;;  %370 = vperm.xlu0 %5700, %v176_v14   ;;  %v584_v13 = vsel %vm535_vm1, %v423_v9, 0.0  ;;  %v424_v14 = vsel %vm406_vm0, %v197_v10, 0.0  ;;  %v216_v9 = vld [vmem:[%s6122_s20 + $0x120] sm:$0xff] }
  0x2d   : > { %v587_v20 = vsel %vm535_vm1, %v424_v14, 0.0  ;;  %v217_v14 = vld [vmem:[%s6122_s20 + $0x128] sm:$0xff] }
  0x30   : > { %385 = vperm.xlu1 %5701, %v179_v15   ;;  %380 = vperm.xlu0 %5700, %v178_v16   ;;  %v425_v15 = vsel %vm406_vm0, %v198_v11, 0.0  ;;  %v199_v16 = vld [vmem:[%s6122_s20 + $0x98] sm:$0xff] }
  0x31   : > { %v590_v21 = vsel %vm535_vm1, %v425_v15, 0.0  ;;  %v426_v22 = vsel %vm406_vm0, %v199_v16, 0.0  ;;  %v218_v15 = vld [vmem:[%s6122_s20 + $0x130] sm:$0xff] }
  0x32   : > { %v593_v26 = vsel %vm535_vm1, %v426_v22, 0.0 }
  0x4f   : > { %537 = vadd.xlane.f32.xlu0 %v536_v23  ;;  %v427_v23 = vsel %vm406_vm0, %v200_v19, 0.0 }
  0x50   : > { %v596_v27 = vsel %vm535_vm1, %v427_v23, 0.0 }
  0x53   : > { %543 = vadd.xlane.f32.xlu0 %v542_v28  ;;  %v428_v28 = vsel %vm406_vm0, %v201_v24, 0.0  ;;  %v219_v24 = vld [vmem:[%s6122_s20 + $0x138] sm:$0xff] }
  0x54   : > { %540 = vadd.xlane.f32.xlu1 %v539_v29  ;;  %v429_v29 = vsel %vm406_vm0, %v202_v25, 0.0  ;;  %v599_v32 = vsel %vm535_vm1, %v428_v28, 0.0  ;;  %v446_v25 = vsel %vm406_vm0, %v219_v24, 0.0 }
  0x55   : > { %v602_v33 = vsel %vm535_vm1, %v429_v29, 0.0 }
  0x57   : > { %546 = vadd.xlane.f32.xlu0 %v545_v34  ;;  %v430_v34 = vsel %vm406_vm0, %v203_v30, 0.0  ;;  %v221_v30 = vld [vmem:[%s6122_s20 + $0x148] sm:$0xff] }
  0x58   : > { %549 = vadd.xlane.f32.xlu1 %v548_v35  ;;  %v431_v35 = vsel %vm406_vm0, %v204_v31, 0.0  ;;  %v605_v38 = vsel %vm535_vm1, %v430_v34, 0.0  ;;  %v448_v31 = vsel %vm406_vm0, %v221_v30, 0.0 }
  0x59   : > { %v608_v39 = vsel %vm535_vm1, %v431_v35, 0.0 }
  0x5b   : > { %552 = vadd.xlane.f32.xlu0 %v551_v40  ;;  %v432_v40 = vsel %vm406_vm0, %v205_v36, 0.0 }
  0x5c   : > { %555 = vadd.xlane.f32.xlu1 %v554_v41  ;;  %v433_v41 = vsel %vm406_vm0, %v206_v37, 0.0  ;;  %v611_v44 = vsel %vm535_vm1, %v432_v40, 0.0 }
  0x5d   : > { %v614_v45 = vsel %vm535_vm1, %v433_v41, 0.0 }
  0x5f   : > { %558 = vadd.xlane.f32.xlu0 %v557_v46  ;;  %v434_v46 = vsel %vm406_vm0, %v207_v42, 0.0 }
  0x60   : > { %561 = vadd.xlane.f32.xlu1 %v560_v47  ;;  %v435_v47 = vsel %vm406_vm0, %v208_v43, 0.0  ;;  %v617_v50 = vsel %vm535_vm1, %v434_v46, 0.0 }
  0x61   : > { %v620_v51 = vsel %vm535_vm1, %v435_v47, 0.0 }
  0x63   : > { %564 = vadd.xlane.f32.xlu0 %v563_v52  ;;  %v436_v52 = vsel %vm406_vm0, %v209_v48, 0.0 }
  0x64   : > { %567 = vadd.xlane.f32.xlu1 %v566_v53  ;;  %v437_v53 = vsel %vm406_vm0, %v210_v49, 0.0  ;;  %v623_v56 = vsel %vm535_vm1, %v436_v52, 0.0 }
  0x65   : > { %v626_v57 = vsel %vm535_vm1, %v437_v53, 0.0 }
  0x67   : > { %570 = vadd.xlane.f32.xlu0 %v569_v58  ;;  %v438_v58 = vsel %vm406_vm0, %v211_v54, 0.0 }
  0x68   : > { %573 = vadd.xlane.f32.xlu1 %v572_v59  ;;  %v439_v59 = vsel %vm406_vm0, %v212_v55, 0.0  ;;  %v629_v62 = vsel %vm535_vm1, %v438_v58, 0.0 }
  0x69   : > { %v632_v63 = vsel %vm535_vm1, %v439_v59, 0.0 }
  0x6b   : > { %576 = vadd.xlane.f32.xlu0 %v575_v0  ;;  %v440_v0 = vsel %vm406_vm0, %v213_v60, 0.0 }
  0x6c   : > { %579 = vadd.xlane.f32.xlu1 %v578_v7  ;;  %v441_v7 = vsel %vm406_vm0, %v214_v61, 0.0  ;;  %v635_v10 = vsel %vm535_vm1, %v440_v0, 0.0 }
  0x6d   : > { %v638_v11 = vsel %vm535_vm1, %v441_v7, 0.0 }
  0x6f   : > { %582 = vadd.xlane.f32.xlu0 %v581_v12  ;;  %v442_v12 = vsel %vm406_vm0, %v215_v8, 0.0  ;;  %v10594_v8 = vmov 2475754826  }
  0x70   : > { %585 = vadd.xlane.f32.xlu1 %v584_v13  ;;  %v443_v13 = vsel %vm406_vm0, %v216_v9, 0.0  ;;  %v641_v16 = vsel %vm535_vm1, %v442_v12, 0.0 }
  0x71   : > { %v644_v19 = vsel %vm535_vm1, %v443_v13, 0.0 }
  0x73   : > { %588 = vadd.xlane.f32.xlu0 %v587_v20  ;;  %v444_v20 = vsel %vm406_vm0, %v217_v14, 0.0 }
  0x74   : > { %591 = vadd.xlane.f32.xlu1 %v590_v21  ;;  %v445_v21 = vsel %vm406_vm0, %v218_v15, 0.0  ;;  %v647_v22 = vsel %vm535_vm1, %v444_v20, 0.0  ;;  %v10592_v15 = vmov 683565275  }
  0x75   : > { %v650_v23 = vsel %vm535_vm1, %v445_v21, 0.0 }
  0x77   : > { %594 = vadd.xlane.f32.xlu0 %v593_v26  ;;  %v653_v26 = vsel %vm535_vm1, %v446_v25, 0.0 }
  0x78   : > { %597 = vadd.xlane.f32.xlu1 %v596_v27  ;;  %v220_v27 = vld [vmem:[%s6122_s20 + $0x140] sm:$0xff] }
  0x79   : > { %v447_v28 = vsel %vm406_vm0, %v220_v27, 0.0 }
  0x7a   : > { %v656_v29 = vsel %vm535_vm1, %v447_v28, 0.0 }
  0x7b   : > { %600 = vadd.xlane.f32.xlu0 %v599_v32  ;;  %v659_v32 = vsel %vm535_vm1, %v448_v31, 0.0 }
  0x7c   : > { %603 = vadd.xlane.f32.xlu1 %v602_v33  ;;  %v222_v33 = vld [vmem:[%s6122_s20 + $0x150] sm:$0xff] }
  0x7d   : > { %v449_v34 = vsel %vm406_vm0, %v222_v33, 0.0 }
  0x7e   : > { %v662_v35 = vsel %vm535_vm1, %v449_v34, 0.0 }
  0x7f   : > { %606 = vadd.xlane.f32.xlu0 %v605_v38  ;;  %v223_v38 = vld [vmem:[%s6122_s20 + $0x158] sm:$0xff] }
  0x80   : > { %609 = vadd.xlane.f32.xlu1 %v608_v39  ;;  %v450_v40 = vsel %vm406_vm0, %v223_v38, 0.0 }
  0x81   : > { %v665_v43 = vsel %vm535_vm1, %v450_v40, 0.0 }
  0x83   : > { %612 = vadd.xlane.f32.xlu0 %v611_v44 }
  0x84   : > { %615 = vadd.xlane.f32.xlu1 %v614_v45 }
  0x87   : > { %618 = vadd.xlane.f32.xlu0 %v617_v50 }
  0x88   : > { %621 = vadd.xlane.f32.xlu1 %v620_v51 }
  0x8b   : > { %624 = vadd.xlane.f32.xlu0 %v623_v56 }
  0x8c   : > { %627 = vadd.xlane.f32.xlu1 %v626_v57  ;;  %v10590_v57 = vmov 1326507024  }
  0x8f   : > { %630 = vadd.xlane.f32.xlu0 %v629_v62  ;;  %v10588_v62 = vmov 2102212464  }
  0x90   : > { %633 = vadd.xlane.f32.xlu1 %v632_v63 }
  0x93   : > { %636 = vadd.xlane.f32.xlu0 %v635_v10  ;;  %v321_v36 = vpop.permute.xlu1 %320  ;;  %v311_v41 = vpop.permute.xlu0 %310  ;;  %v10596_v10 = vmov 2131351028  }
  0x94   : > { %639 = vadd.xlane.f32.xlu1 %v638_v11  ;;  %v6298_v37 = vsub.f32 %v321_v36, %v6082_v1  ;;  %v6306_v44 = vsub.f32 %v311_v41, %v6085_v2  ;;  %v10598_v2 = vmov 920167782  }
  0x96   : > { %v1515_v39 = vand.u32 2139095040, %v6298_v37  ;;  %v1307_v46 = vand.u32 2139095040, %v6306_v44  ;;  %v1512_v54 = vand.u32 2147483647, %v6298_v37 }
  0x97   : > { %642 = vadd.xlane.f32.xlu0 %v641_v16  ;;  %v326_v53 = vpop.permute.xlu1 %325 }
  0x98   : > { %645 = vadd.xlane.f32.xlu1 %v644_v19  ;;  %v1516_v42 = vshrl.u32 %v1515_v39, 23  ;;  %v1308_v1 = vshrl.u32 %v1307_v46, 23  ;;  %v6317_v59 = vsub.f32 %v326_v53, %v6090_v3  ;;  %v1519_v61 = vand.u32 8388607, %v1512_v54 }
  0x9a   : > { %v5562_v45 = vadd.s32 4294967169, %v1516_v42  ;;  %v5554_v48 = vadd.s32 4294967169, %v1308_v1  ;;  %v1619_v14 = vand.u32 2139095040, %v6317_v59 }
  0x9b   : > { %648 = vadd.xlane.f32.xlu0 %v647_v22  ;;  %v1520_v22 = vor.u32 8388608, %v1519_v61 }
  0x9c   : > { %651 = vadd.xlane.f32.xlu1 %v650_v23  ;;  %v1522_v47 = vadd.s32 1, %v5562_v45  ;;  %v1314_v50 = vadd.s32 1, %v5554_v48  ;;  %v1304_v23 = vand.u32 2147483647, %v6306_v44  ;;  %v1620_v30 = vshrl.u32 %v1619_v14, 23 }
  0x9d   : > { %v1560_v53 = vshll.u32 %v1520_v22, 8 }
  0x9e   : > { %vm1523_vm2 = vcmp.gt.s32.totalorder %v1522_v47, 0  ;;  %vm1315_vm3 = vcmp.gt.s32.totalorder %v1314_v50, 0 }
  0x9f   : > { %654 = vadd.xlane.f32.xlu0 %v653_v26  ;;  %v1524_v49 = vsel %vm1523_vm2, %v1522_v47, 0  ;;  %v1316_v55 = vsel %vm1315_vm3, %v1314_v50, 0  ;;  %v224_v50 = vld [vmem:[%s6122_s20 + $0x160] sm:$0xff] }
  0xa0   : > { %657 = vadd.xlane.f32.xlu1 %v656_v29  ;;  %v1526_v51 = vand.u32 31, %v1524_v49  ;;  %v1318_v60 = vand.u32 31, %v1316_v55  ;;  %v6323_v7 = vshrl.u32 %v1524_v49, 5  ;;  %v6347_v29 = vshrl.u32 %v1316_v55, 5 }
  0xa1   : > { %v5566_v49 = vadd.s32 4294967169, %v1620_v30  ;;  %v1311_v55 = vand.u32 8388607, %v1304_v23  ;;  %v225_v30 = vld [vmem:[%s6122_s20 + $0x168] sm:$0xff] }
  0xa2   : > { %v6309_v52 = vsub.s32 32, %v1526_v51  ;;  %v1538_v63 = vshll.u32 %v10588_v62, %v1526_v51  ;;  %v1541_v0 = vshll.u32 %v10598_v2, %v1526_v51  ;;  %v1529_v16 = vshll.u32 %v10592_v15, %v1526_v51 }
  0xa3   : > { %660 = vadd.xlane.f32.xlu0 %v659_v32  ;;  %v1532_v19 = vshll.u32 %v10594_v8, %v1526_v51  ;;  %v1535_v20 = vshll.u32 %v10596_v10, %v1526_v51  ;;  %v6335_v21 = vsub.s32 32, %v1318_v60  ;;  %vm1547_vm4 = vcmp.lt.s32.totalorder %v6323_v7, 4 }
  0xa4   : > { %663 = vadd.xlane.f32.xlu1 %v662_v35  ;;  %v1539_v56 = vshrl.u32 %v10598_v2, %v6309_v52  ;;  %v1542_v58 = vshrl.u32 %v10590_v57, %v6309_v52  ;;  %v1530_v9 = vshrl.u32 %v10594_v8, %v6309_v52  ;;  %v1533_v3 = vshrl.u32 %v10596_v10, %v6309_v52 }
  0xa5   : > { %v1536_v11 = vshrl.u32 %v10588_v62, %v6309_v52  ;;  %vm1544_vm5 = vcmp.lt.s32.totalorder %v6323_v7, 1  ;;  %vm1546_vm6 = vcmp.lt.s32.totalorder %v6323_v7, 3  ;;  %v1330_v31 = vshll.u32 %v10588_v62, %v1318_v60 }
  0xa6   : > { %v1540_v12 = vor.u32 %v1539_v56, %v1538_v63  ;;  %v1543_v13 = vor.u32 %v1542_v58, %v1541_v0  ;;  %v6338_v24 = vor.u32 %v1530_v9, %v1529_v16  ;;  %v6340_v25 = vor.u32 %v1533_v3, %v1532_v19 }
  0xa7   : > { %666 = vadd.xlane.f32.xlu0 %v665_v43  ;;  %v1537_v26 = vor.u32 %v1536_v11, %v1535_v20  ;;  %v1331_v32 = vshrl.u32 %v10598_v2, %v6335_v21  ;;  %v1321_v33 = vshll.u32 %v10592_v15, %v1318_v60  ;;  %v1324_v34 = vshll.u32 %v10594_v8, %v1318_v60 }
  0xa8   : > { %v1553_v27 = vsel %vm1547_vm4, %v1540_v12, 920167782  ;;  %v1557_v28 = vsel %vm1547_vm4, %v1543_v13, 1326507024  ;;  %v1333_v35 = vshll.u32 %v10598_v2, %v1318_v60  ;;  %v1334_v36 = vshrl.u32 %v10590_v57, %v6335_v21 }
  0xa9   : > { %v1552_v38 = vsel %vm1544_vm5, %v6338_v24, %v6340_v25  ;;  %v1554_v39 = vsel %vm1546_vm6, %v1537_v26, %v1553_v27  ;;  %v1556_v40 = vsel %vm1544_vm5, %v6340_v25, %v1537_v26  ;;  %v1558_v41 = vsel %vm1546_vm6, %v1540_v12, %v1557_v28 }
  0xaa   : > { %v1322_v42 = vshrl.u32 %v10594_v8, %v6335_v21  ;;  %v1325_v43 = vshrl.u32 %v10596_v10, %v6335_v21  ;;  %v1327_v45 = vshll.u32 %v10596_v10, %v1318_v60  ;;  %v1328_v46 = vshrl.u32 %v10588_v62, %v6335_v21 }
  0xab   : > { %vm1545_vm7 = vcmp.lt.s32.totalorder %v6323_v7, 2  ;;  %v1332_v47 = vor.u32 %v1331_v32, %v1330_v31  ;;  %v1335_v48 = vor.u32 %v1334_v36, %v1333_v35  ;;  %vm1339_vm8 = vcmp.lt.s32.totalorder %v6347_v29, 4 }
  0xac   : > { %v1555_v1 = vsel %vm1545_vm7, %v1552_v38, %v1554_v39  ;;  %v1559_v51 = vsel %vm1545_vm7, %v1556_v40, %v1558_v41  ;;  %v1323_v56 = vor.u32 %v1322_v42, %v1321_v33  ;;  %v1326_v58 = vor.u32 %v1325_v43, %v1324_v34 }
  0xad   : > { %v1329_v60 = vor.u32 %v1328_v46, %v1327_v45  ;;  %v6386_v61 = vmul.u32.u64.low %v1560_v53, %v1555_v1  ;;  %v6387_v63 = vmul.u32.u64.high %v1560_v53, %v1555_v1, %v6386_v61  ;;  %v1345_v0 = vsel %vm1339_vm8, %v1332_v47, 920167782 }
  0xae   : > { %v451_v9 = vsel %vm406_vm0, %v224_v50, 0.0  ;;  %v1349_v3 = vsel %vm1339_vm8, %v1335_v48, 1326507024  ;;  %v1626_v11 = vadd.s32 1, %v5566_v49  ;;  %vm1336_vm9 = vcmp.lt.s32.totalorder %v6347_v29, 1 }
  0xaf   : > { %v6396_v12 = vmul.u32.u64.low %v1560_v53, %v1559_v51  ;;  %v6397_v13 = vmul.u32.u64.high %v1560_v53, %v1559_v51, %v6396_v12  ;;  %vm1338_vm10 = vcmp.lt.s32.totalorder %v6347_v29, 3  ;;  %v1312_v14 = vor.u32 8388608, %v1311_v55 }
  0xb0   : > { %v1344_v16 = vsel %vm1336_vm9, %v1323_v56, %v1326_v58  ;;  %v1346_v19 = vsel %vm1338_vm10, %v1329_v60, %v1345_v0  ;;  %v668_v20 = vsel %vm535_vm1, %v451_v9, 0.0  ;;  %v1348_v22 = vsel %vm1336_vm9, %v1326_v58, %v1329_v60 }
  0xb1   : > { %v1350_v27 = vsel %vm1338_vm10, %v1332_v47, %v1349_v3  ;;  %669 = vadd.xlane.f32.xlu1 %v668_v20  ;;  %v1549_v28 = vsel %vm1547_vm4, %v1537_v26, 2102212464  ;;  %vm1337_vm11 = vcmp.lt.s32.totalorder %v6347_v29, 2  ;;  %v1528_v31 = vshrl.u32 %v10592_v15, %v6309_v52 }
  0xb2   : > { %v1347_v32 = vsel %vm1337_vm11, %v1344_v16, %v1346_v19  ;;  %vm1627_vm12 = vcmp.gt.s32.totalorder %v1626_v11, 0  ;;  %v1351_v33 = vsel %vm1337_vm11, %v1348_v22, %v1350_v27  ;;  %v1352_v34 = vshll.u32 %v1312_v14, 8  ;;  %v316_v14 = vpop.permute.xlu0 %315 }
  0xb3   : > { %v1548_v35 = vsel %vm1544_vm5, %v1528_v31, %v6338_v24  ;;  %v1550_v26 = vsel %vm1546_vm6, %v6340_v25, %v1549_v28  ;;  %v1570_v36 = vadd.s32 1, %v6387_v63  ;;  %v452_v52 = vsel %vm406_vm0, %v225_v30, 0.0 }
  0xb4   : > { %v6429_v38 = vmul.u32.u64.low %v1352_v34, %v1347_v32  ;;  %v6430_v39 = vmul.u32.u64.high %v1352_v34, %v1347_v32, %v6429_v38  ;;  %v1628_v40 = vsel %vm1627_vm12, %v1626_v11, 0  ;;  %v671_v41 = vsel %vm535_vm1, %v452_v52, 0.0 }
  0xb5   : > { %vm1569_vm13 = vc.u32 %v6397_v13, %v6386_v61  ;;  %v6436_v24 = vmul.u32.u64.low %v1352_v34, %v1351_v33  ;;  %v6437_v42 = vmul.u32.u64.high %v1352_v34, %v1351_v33, %v6436_v24  ;;  %672 = vadd.xlane.f32.xlu0 %v671_v41  ;;  %v1551_v25 = vsel %vm1545_vm7, %v1548_v35, %v1550_v26 }
  0xb6   : > { %v1320_v43 = vshrl.u32 %v10592_v15, %v6335_v21  ;;  %v1630_v45 = vand.u32 31, %v1628_v40  ;;  %v1571_v46 = vsel %vm1569_vm13, %v1570_v36, %v6387_v63  ;;  %v1341_v47 = vsel %vm1339_vm8, %v1329_v60, 2102212464 }
  0xb7   : > { %v1567_v1 = vmul.u32 %v1560_v53, %v1551_v25  ;;  %v1342_v50 = vsel %vm1338_vm10, %v1326_v58, %v1341_v47  ;;  %v1362_v7 = vadd.s32 1, %v6430_v39  ;;  %vm1361_vm14 = vc.u32 %v6437_v42, %v6429_v38 }
  0xb8   : > { %v1340_v49 = vsel %vm1336_vm9, %v1320_v43, %v1323_v56  ;;  %v6450_v51 = vsub.s32 32, %v1630_v45  ;;  %v10587_v63 = vand.u32 2147483647, %v6317_v59  ;;  %v6463_v0 = vshrl.u32 %v1628_v40, 5 }
  0xb9   : > { %v1572_v48 = vadd.s32 %v1571_v46, %v1567_v1  ;;  %v1343_v21 = vsel %vm1337_vm11, %v1340_v49, %v1342_v50  ;;  %v1363_v60 = vsel %vm1361_vm14, %v1362_v7, %v6430_v39  ;;  %v1642_v9 = vshll.u32 %v10588_v62, %v1630_v45 }
  0xba   : > { %v1643_v53 = vshrl.u32 %v10598_v2, %v6450_v51  ;;  %v1646_v56 = vshrl.u32 %v10590_v57, %v6450_v51  ;;  %v1359_v58 = vmul.u32 %v1352_v34, %v1343_v21  ;;  %v1634_v29 = vshrl.u32 %v10594_v8, %v6450_v51 }
  0xbb   : > { %v1573_v55 = vadd.s32 536870912, %v1572_v48  ;;  %v1637_v3 = vshrl.u32 %v10596_v10, %v6450_v51  ;;  %v1640_v11 = vshrl.u32 %v10588_v62, %v6450_v51  ;;  %v1645_v12 = vshll.u32 %v10598_v2, %v1630_v45 }
  0xbc   : > { %v1364_v19 = vadd.s32 %v1363_v60, %v1359_v58  ;;  %v1644_v20 = vor.u32 %v1643_v53, %v1642_v9  ;;  %v1633_v22 = vshll.u32 %v10592_v15, %v1630_v45  ;;  %v1636_v27 = vshll.u32 %v10594_v8, %v1630_v45 }
  0xbd   : > { %v6473_v16 = vshrl.u32 %v1573_v55, 30  ;;  %v1639_v28 = vshll.u32 %v10596_v10, %v1630_v45  ;;  %v1647_v30 = vor.u32 %v1646_v56, %v1645_v12  ;;  %v1623_v31 = vand.u32 8388607, %v10587_v63 }
  0xbe   : > { %v6481_v32 = vsub.f32 %v316_v14, %v6093_v4  ;;  %v1635_v33 = vor.u32 %v1634_v29, %v1633_v22  ;;  %v1638_v34 = vor.u32 %v1637_v3, %v1636_v27  ;;  %vm1651_vm15 = vcmp.lt.s32.totalorder %v6463_v0, 4  ;;  %v226_v4 = vld [vmem:[%s6122_s20 + $0x170] sm:$0xff] }
  0xbf   : > { %v1641_v35 = vor.u32 %v1640_v11, %v1639_v28  ;;  %v1575_v26 = vshll.u32 %v6473_v16, 30  ;;  %v1365_v36 = vadd.s32 536870912, %v1364_v19  ;;  %v1657_v52 = vsel %vm1651_vm15, %v1644_v20, 920167782 }
  0xc0   : > { %v1661_v39 = vsel %vm1651_vm15, %v1647_v30, 1326507024  ;;  %vm1648_vm2 = vcmp.lt.s32.totalorder %v6463_v0, 1  ;;  %vm1650_vm3 = vcmp.lt.s32.totalorder %v6463_v0, 3  ;;  %v1624_v40 = vor.u32 8388608, %v1623_v31 }
  0xc1   : > { %v1656_v41 = vsel %vm1648_vm2, %v1635_v33, %v1638_v34  ;;  %v1658_v24 = vsel %vm1650_vm3, %v1641_v35, %v1657_v52  ;;  %v1411_v25 = vand.u32 2139095040, %v6481_v32  ;;  %v6497_v43 = vsub.s32 %v1572_v48, %v1575_v26 }
  0xc2   : > { %v6499_v45 = vshrl.u32 %v1365_v36, 30  ;;  %v1660_v46 = vsel %vm1648_vm2, %v1638_v34, %v1641_v35  ;;  %v1662_v47 = vsel %vm1650_vm3, %v1644_v20, %v1661_v39  ;;  %vm1649_vm4 = vcmp.lt.s32.totalorder %v6463_v0, 2 }
  0xc3   : > { %v453_v1 = vsel %vm406_vm0, %v226_v4, 0.0  ;;  %v1659_v49 = vsel %vm1649_vm4, %v1656_v41, %v1658_v24  ;;  %v1663_v48 = vsel %vm1649_vm4, %v1660_v46, %v1662_v47  ;;  %v1664_v50 = vshll.u32 %v1624_v40, 8  ;;  %v336_v4 = vpop.permute.xlu1 %335  ;;  %v331_v46 = vpop.permute.xlu0 %330 }
  0xc4   : > { %v1412_v7 = vshrl.u32 %v1411_v25, 23  ;;  %v1578_v21 = vsub.s32 0, %v6497_v43  ;;  %v1367_v55 = vshll.u32 %v6499_v45, 30  ;;  %v674_v53 = vsel %vm535_vm1, %v453_v1, 0.0 }
  0xc5   : > { %v6515_v60 = vmul.u32.u64.low %v1664_v50, %v1659_v49  ;;  %v6516_v56 = vmul.u32.u64.high %v1664_v50, %v1659_v49, %v6515_v60  ;;  %675 = vadd.xlane.f32.xlu1 %v674_v53  ;;  %v6519_v58 = vmul.u32.u64.low %v1664_v50, %v1663_v48  ;;  %v6520_v9 = vmul.u32.u64.high %v1664_v50, %v1663_v48, %v6519_v58 }
  0xc6   : > { %v5558_v29 = vadd.s32 4294967169, %v1412_v7  ;;  %v5563_v3 = vmin.u32 %v1578_v21, %v6497_v43  ;;  %v6523_v11 = vsub.s32 %v1364_v19, %v1367_v55  ;;  %v1653_v12 = vsel %vm1651_vm15, %v1641_v35, 2102212464 }
  0xc7   : > { %v1632_v14 = vshrl.u32 %v10592_v15, %v6450_v51  ;;  %v1654_v30 = vsel %vm1650_vm3, %v1638_v34, %v1653_v12  ;;  %v1674_v31 = vadd.s32 1, %v6516_v56  ;;  %vm1673_vm5 = vc.u32 %v6520_v9, %v6515_v60 }
  0xc8   : > { %v1418_v20 = vadd.s32 1, %v5558_v29  ;;  %v1580_v22 = vclz %v5563_v3  ;;  %v1370_v27 = vsub.s32 0, %v6523_v11  ;;  %v6542_v25 = vsub.f32 %v336_v4, %v6098_v5  ;;  %v6563_v3 = vpop.permute.xlu0 %340 }
  0xc9   : > { %v1652_v28 = vsel %vm1648_vm2, %v1632_v14, %v1635_v33  ;;  %v1675_v26 = vsel %vm1673_vm5, %v1674_v31, %v6516_v56  ;;  %v10586_v48 = vand.u32 2147483647, %v6481_v32  ;;  %v1568_v7 = vadd.s32 %v6386_v61, %v6397_v13 }
  0xca   : > { %v1655_v19 = vsel %vm1649_vm4, %v1652_v28, %v1654_v30  ;;  %vm1419_vm6 = vcmp.gt.s32.totalorder %v1418_v20, 0  ;;  %v5564_v51 = vadd.s32 4294967294, %v1580_v22  ;;  %v5555_v35 = vmin.u32 %v1370_v27, %v6523_v11 }
  0xcb   : > { %v1671_v36 = vmul.u32 %v1664_v50, %v1655_v19  ;;  %v1420_v52 = vsel %vm1419_vm6, %v1418_v20, 0  ;;  %v1827_v49 = vand.u32 2139095040, %v6542_v25  ;;  %v1415_v20 = vand.u32 8388607, %v10586_v48 }
  0xcc   : > { %vm5565_vm7 = vcmp.lt.s32.totalorder %v5564_v51, 0  ;;  %v1372_v33 = vclz %v5555_v35  ;;  %v1422_v34 = vand.u32 31, %v1420_v52  ;;  %v6558_v56 = vshrl.u32 %v1420_v52, 5 }
  0xcd   : > { %v1676_v39 = vadd.s32 %v1675_v26, %v1671_v36  ;;  %v1583_v40 = vsel %vm5565_vm7, 0, %v5564_v51  ;;  %v1828_v14 = vshrl.u32 %v1827_v49, 23  ;;  %v6585_v49 = vpop.permute.xlu0 %350  ;;  %vm1514_vm12 = vcmp.lt.s32.totalorder %v6298_v37, 0 }
  0xce   : > { %v5556_v41 = vadd.s32 4294967294, %v1372_v33  ;;  %v6544_v0 = vsub.s32 32, %v1422_v34  ;;  %v1588_v47 = vsub.s32 4294967266, %v1583_v40  ;;  %v1584_v21 = vsub.s32 32, %v1583_v40 }
  0xcf   : > { %v1677_v24 = vadd.s32 536870912, %v1676_v39  ;;  %v1437_v29 = vshll.u32 %v10598_v2, %v1422_v34  ;;  %v1434_v13 = vshll.u32 %v10588_v62, %v1422_v34  ;;  %v1428_v27 = vshll.u32 %v10594_v8, %v1422_v34 }
  0xd0   : > { %vm5557_vm8 = vcmp.lt.s32.totalorder %v5556_v41, 0  ;;  %v1438_v50 = vshrl.u32 %v10590_v57, %v6544_v0  ;;  %v1589_v5 = vadd.s32 127, %v1588_v47  ;;  %v1435_v55 = vshrl.u32 %v10598_v2, %v6544_v0 }
  0xd1   : > { %v6546_v1 = vshrl.u32 %v1677_v24, 30  ;;  %v6556_v53 = vsel %vm5557_vm8, 0, %v5556_v41  ;;  %v1429_v58 = vshrl.u32 %v10596_v10, %v6544_v0  ;;  %v1432_v61 = vshrl.u32 %v10588_v62, %v6544_v0 }
  0xd2   : > { %v1426_v22 = vshrl.u32 %v10594_v8, %v6544_v0  ;;  %v1439_v28 = vor.u32 %v1438_v50, %v1437_v29  ;;  %v1586_v30 = vshrl.u32 %v1568_v7, %v1584_v21  ;;  %v1590_v31 = vshll.u32 %v1589_v5, 23  ;;  %v6600_v29 = vpop.permute.xlu1 %345 }
  0xd3   : > { %v1679_v12 = vshll.u32 %v6546_v1, 30  ;;  %v1431_v19 = vshll.u32 %v10596_v10, %v1422_v34  ;;  %v1436_v51 = vor.u32 %v1435_v55, %v1434_v13  ;;  %v1585_v35 = vshll.u32 %v6497_v43, %v1583_v40 }
  0xd4   : > { %v1380_v26 = vsub.s32 4294967266, %v6556_v53  ;;  %v1425_v36 = vshll.u32 %v10592_v15, %v1422_v34  ;;  %v6578_v52 = vor.u32 %v1429_v58, %v1428_v27  ;;  %vm1443_vm9 = vcmp.lt.s32.totalorder %v6558_v56, 4 }
  0xd5   : > { %v6580_v33 = vsub.s32 %v1676_v39, %v1679_v12  ;;  %v1433_v4 = vor.u32 %v1432_v61, %v1431_v19  ;;  %v5574_v41 = vadd.s32 4294967169, %v1828_v14  ;;  %v1453_v47 = vsel %vm1443_vm9, %v1439_v28, 1326507024 }
  0xd6   : > { %v1427_v24 = vor.u32 %v1426_v22, %v1425_v36  ;;  %v1587_v50 = vor.u32 %v1586_v30, %v1585_v35  ;;  %v1591_v43 = vor.u32 4788187, %v1590_v31  ;;  %v1449_v40 = vsel %vm1443_vm9, %v1436_v51, 920167782  ;;  %v6618_v31 = vpop.permute.xlu0 %360  ;;  %v228_v36 = vld [vmem:[%s6122_s20 + $0x180] sm:$0xff] }
  0xd7   : > { %v6590_v34 = vsub.f32 %v331_v46, %v6101_v6  ;;  %v1381_v39 = vadd.s32 127, %v1380_v26  ;;  %v1416_v7 = vor.u32 8388608, %v1415_v20  ;;  %vm1440_vm10 = vcmp.lt.s32.totalorder %v6558_v56, 1  ;;  %v227_v20 = vld [vmem:[%s6122_s20 + $0x178] sm:$0xff] }
  0xd8   : > { %vm1442_vm11 = vcmp.lt.s32.totalorder %v6558_v56, 3  ;;  %v1682_v21 = vsub.s32 0, %v6580_v33  ;;  %v1452_v5 = vsel %vm1440_vm10, %v6578_v52, %v1433_v4  ;;  %v1834_v58 = vadd.s32 1, %v5574_v41 }
  0xd9   : > { %v1454_v55 = vsel %vm1442_vm11, %v1436_v51, %v1453_v47  ;;  %v1598_v6 = vsub.s32 4, %v6473_v16  ;;  %v1376_v46 = vsub.s32 32, %v6556_v53  ;;  %v1448_v12 = vsel %vm1440_vm10, %v1427_v24, %v6578_v52 }
  0xda   : > { %v1450_v61 = vsel %vm1442_vm11, %v1433_v4, %v1449_v40  ;;  %v1592_v13 = vand.u32 2147483647, %v1591_v43  ;;  %v1360_v14 = vadd.s32 %v6429_v38, %v6437_v42  ;;  %vm1441_vm13 = vcmp.lt.s32.totalorder %v6558_v56, 2  ;;  %v6636_v40 = vpop.permute.xlu1 %355 }
  0xdb   : > { %v1594_v22 = vcvt.s32.f32 %v1587_v50  ;;  %v1382_v27 = vshll.u32 %v1381_v39, 23  ;;  %v1455_v28 = vsel %vm1441_vm13, %v1452_v5, %v1454_v55  ;;  %v6616_v30 = vshll.u32 %v1416_v7, 8 }
  0xdc   : > { %v5567_v19 = vmin.u32 %v1682_v21, %v6580_v33  ;;  %v1451_v51 = vsel %vm1441_vm13, %v1448_v12, %v1450_v61  ;;  %vm1835_vm14 = vcmp.gt.s32.totalorder %v1834_v58, 0  ;;  %v1723_v38 = vand.u32 2139095040, %v6590_v34  ;;  %v6656_v61 = vpop.permute.xlu0 %370 }
  0xdd   : > { %v1599_v42 = vsel %vm1514_vm12, %v1598_v6, %v6473_v16  ;;  %v1378_v35 = vshrl.u32 %v1360_v14, %v1376_v46  ;;  %v454_v26 = vsel %vm406_vm0, %v227_v20, 0.0  ;;  %v1595_v41 = vmul.f32 %v1594_v22, %v1592_v13  ;;  %10648 = vst [vmem:[#allocation3_spill] sm:$0xff] %v6656_v61  ;;  %v229_v13 = vld [vmem:[%s6122_s20 + $0x188] sm:$0xff] }
  0xde   : > { %v1377_v47 = vshll.u32 %v6523_v11, %v6556_v53  ;;  %v6633_v50 = vmul.u32.u64.low %v6616_v30, %v1455_v28  ;;  %v6634_v43 = vmul.u32.u64.high %v6616_v30, %v1455_v28, %v6633_v50  ;;  %v1383_v39 = vor.u32 4788187, %v1382_v27 }
  0xdf   : > { %v6639_v7 = vmul.u32.u64.low %v6616_v30, %v1451_v51  ;;  %v6640_v16 = vmul.u32.u64.high %v6616_v30, %v1451_v51, %v6639_v7  ;;  %v1836_v21 = vsel %vm1835_vm14, %v1834_v58, 0  ;;  %v1684_v5 = vclz %v5567_v19  ;;  %v6667_v51 = vpop.permute.xlu1 %365 }
  0xe0   : > { %v1724_v55 = vshrl.u32 %v1723_v38, 23  ;;  %v677_v6 = vsel %vm535_vm1, %v454_v26, 0.0  ;;  %v455_v11 = vsel %vm406_vm0, %v228_v36, 0.0  ;;  %vm6648_vm15 = vcmp.le.f32.partialorder %v1512_v54, 0.7853982 }
  0xe1   : > { %v1379_v46 = vor.u32 %v1378_v35, %v1377_v47  ;;  %v1424_v12 = vshrl.u32 %v10592_v15, %v6544_v0  ;;  %v1445_v58 = vsel %vm1443_vm9, %v1433_v4, 2102212464  ;;  %678 = vadd.xlane.f32.xlu0 %v677_v6  ;;  %v1601_v14 = vsel %vm6648_vm15, 0, %v1599_v42  ;;  %v6688_v6 = vpop.permute.xlu0 %380 }
  0xe2   : > { %v1838_v20 = vand.u32 31, %v1836_v21  ;;  %v1596_v54 = vxor.u32 2147483648, %v1595_v41  ;;  %v1384_v22 = vand.u32 2147483647, %v1383_v39  ;;  %v680_v28 = vsel %vm535_vm1, %v455_v11, 0.0  ;;  %10651 = vst [vmem:[#allocation4_spill] sm:$0xff] %v6688_v6 }
  0xe3   : > { %v1444_v27 = vsel %vm1440_vm10, %v1424_v12, %v1427_v24  ;;  %v5568_v0 = vadd.s32 4294967294, %v1684_v5  ;;  %v1446_v4 = vsel %vm1442_vm11, %v6578_v52, %v1445_v58  ;;  %v5570_v19 = vadd.s32 4294967169, %v1724_v55  ;;  %681 = vadd.xlane.f32.xlu1 %v680_v28  ;;  %v230_v24 = vld [vmem:[%s6122_s20 + $0x190] sm:$0xff] }
  0xe4   : > { %v456_v38 = vsel %vm406_vm0, %v229_v13, 0.0  ;;  %v1605_v42 = vadd.s32 3, %v1601_v14  ;;  %v1386_v35 = vcvt.s32.f32 %v1379_v46  ;;  %v1390_v26 = vsub.s32 4, %v6499_v45  ;;  %v238_v6 = vld [vmem:[%s6122_s20 + $0x1d0] sm:$0xff] }
  0xe5   : > { %vm6675_vm2 = vcmp.le.f32.partialorder %v1304_v23, 0.7853982  ;;  %vm1306_vm3 = vcmp.lt.s32.totalorder %v6306_v44, 0  ;;  %v6680_v52 = vsub.s32 32, %v1838_v20  ;;  %v683_v47 = vsel %vm535_vm1, %v456_v38, 0.0  ;;  %v231_v23 = vld [vmem:[%s6122_s20 + $0x198] sm:$0xff] }
  0xe6   : > { %v1597_v50 = vsel %vm1514_vm12, %v1596_v54, %v1595_v41  ;;  %v1387_v39 = vmul.f32 %v1386_v35, %v1384_v22  ;;  %v1447_v5 = vsel %vm1441_vm13, %v1444_v27, %v1446_v4  ;;  %v1466_v55 = vadd.s32 1, %v6640_v16  ;;  %684 = vadd.xlane.f32.xlu0 %v683_v47  ;;  %v6709_v22 = vpop.permute.xlu1 %375 }
  0xe7   : > { %vm5569_vm4 = vcmp.lt.s32.totalorder %v5568_v0, 0  ;;  %vm1465_vm5 = vc.u32 %v6634_v43, %v6639_v7  ;;  %v1730_v11 = vadd.s32 1, %v5570_v19  ;;  %v457_v46 = vsel %vm406_vm0, %v230_v24, 0.0  ;;  %10652 = vst [vmem:[#allocation5_spill] sm:$0xff] %v6709_v22  ;;  %v6720_v19 = vpop.xlane.xlu0 %537 }
  0xe8   : > { %v6695_v12 = vand.u32 3, %v1605_v42  ;;  %v1391_v56 = vsel %vm1306_vm3, %v1390_v26, %v6499_v45  ;;  %v10585_v41 = vand.u32 2147483647, %v6542_v25  ;;  %v686_v58 = vsel %vm535_vm1, %v457_v46, 0.0  ;;  %10653 = vst [vmem:[#allocation6_spill] sm:$0xff] %v6720_v19 }
  0xe9   : > { %v1600_v13 = vsel %vm6648_vm15, %v6298_v37, %v1597_v50  ;;  %v1851_v14 = vshrl.u32 %v10598_v2, %v6680_v52  ;;  %v1854_v54 = vshrl.u32 %v10590_v57, %v6680_v52  ;;  %687 = vadd.xlane.f32.xlu1 %v686_v58  ;;  %v458_v45 = vsel %vm406_vm0, %v231_v23, 0.0 }
  0xea   : > { %v1388_v27 = vxor.u32 2147483648, %v1387_v39  ;;  %v6713_v28 = vsel %vm5569_vm4, 0, %v5568_v0  ;;  %v1463_v4 = vmul.u32 %v6616_v30, %v1447_v5  ;;  %v1467_v53 = vsel %vm1465_vm5, %v1466_v55, %v6640_v16 }
  0xeb   : > { %v6722_v38 = vshrl.u32 %v1836_v21, 5  ;;  %v1850_v42 = vshll.u32 %v10588_v62, %v1838_v20  ;;  %v1853_v35 = vshll.u32 %v10598_v2, %v1838_v20  ;;  %vm1731_vm6 = vcmp.gt.s32.totalorder %v1730_v11, 0 }
  0xec   : > { %v1842_v0 = vshrl.u32 %v10594_v8, %v6680_v52  ;;  %v1845_v30 = vshrl.u32 %v10596_v10, %v6680_v52  ;;  %v1848_v26 = vshrl.u32 %v10588_v62, %v6680_v52  ;;  %v689_v16 = vsel %vm535_vm1, %v458_v45, 0.0 }
  0xed   : > { %v1393_v21 = vsel %vm6675_vm2, 0, %v1391_v56  ;;  %v6735_v24 = vadd.s32 %v1467_v53, %v1463_v4  ;;  %v1852_v47 = vor.u32 %v1851_v14, %v1850_v42  ;;  %v1855_v50 = vor.u32 %v1854_v54, %v1853_v35  ;;  %690 = vadd.xlane.f32.xlu0 %v689_v16  ;;  %v6745_v4 = vpop.permute.xlu1 %385  ;;  %v6748_v42 = vpop.xlane.xlu0 %543 }
  0xee   : > { %v1841_v5 = vshll.u32 %v10592_v15, %v1838_v20  ;;  %v1844_v55 = vshll.u32 %v10594_v8, %v1838_v20  ;;  %v1847_v23 = vshll.u32 %v10596_v10, %v1838_v20  ;;  %v1732_v46 = vsel %vm1731_vm6, %v1730_v11, 0  ;;  %10654 = vst [vmem:[#allocation7_spill] sm:$0xff] %v6745_v4  ;;  %10655 = vst [vmem:[#allocation8_spill] sm:$0xff] %v6748_v42 }
  0xef   : > { %5704 = vcosq.f32 %v1600_v13  ;;  %v1389_v58 = vsel %vm1306_vm3, %v1388_v27, %v1387_v39  ;;  %v1692_v45 = vsub.s32 4294967266, %v6713_v28  ;;  %v1831_v56 = vand.u32 8388607, %v10585_v41 }
  0xf0   : > { %v1843_v14 = vor.u32 %v1842_v0, %v1841_v5  ;;  %v1846_v54 = vor.u32 %v1845_v30, %v1844_v55  ;;  %v1849_v53 = vor.u32 %v1848_v26, %v1847_v23  ;;  %vm1859_vm7 = vcmp.lt.s32.totalorder %v6722_v38, 4  ;;  %v232_v23 = vld [vmem:[%s6122_s20 + $0x1a0] sm:$0xff] }
  0xf1   : > { %v1469_v20 = vadd.s32 536870912, %v6735_v24  ;;  %v1865_v11 = vsel %vm1859_vm7, %v1852_v47, 920167782  ;;  %v1869_v39 = vsel %vm1859_vm7, %v1855_v50, 1326507024  ;;  %v6755_v27 = vand.u32 31, %v1732_v46  ;;  %v6770_v50 = vpop.xlane.xlu1 %540 }
  0xf2   : > { %5706 = vsinq.f32 %v1600_v13  ;;  %v1392_v35 = vsel %vm6675_vm2, %v6306_v44, %v1389_v58  ;;  %v6760_v0 = vadd.s32 3, %v1393_v21  ;;  %v6764_v30 = vadd.s32 %v6515_v60, %v6520_v9  ;;  %10656 = vst [vmem:[#allocation9_spill] sm:$0xff] %v6770_v50  ;;  %v235_v58 = vld [vmem:[%s6122_s20 + $0x1b8] sm:$0xff] }
  0xf3   : > { %v6766_v26 = vadd.s32 127, %v1692_v45  ;;  %v1832_v16 = vor.u32 8388608, %v1831_v56  ;;  %vm1856_vm8 = vcmp.lt.s32.totalorder %v6722_v38, 1  ;;  %vm1858_vm9 = vcmp.lt.s32.totalorder %v6722_v38, 3  ;;  %v6791_v56 = vpop.xlane.xlu0 %546 }
  0xf4   : > { %v1864_v36 = vsel %vm1856_vm8, %v1843_v14, %v1846_v54  ;;  %v1866_v13 = vsel %vm1858_vm9, %v1849_v53, %v1865_v11  ;;  %v1868_v21 = vsel %vm1856_vm8, %v1846_v54, %v1849_v53  ;;  %v1870_v60 = vsel %vm1858_vm9, %v1852_v47, %v1869_v39  ;;  %10657 = vst [vmem:[#allocation10_spill] sm:$0xff] %v6791_v56  ;;  %v233_v47 = vld [vmem:[%s6122_s20 + $0x1a8] sm:$0xff] }
  0xf5   : > { %5708 = vcosq.f32 %v1392_v35  ;;  %v6781_v5 = vshrl.u32 %v1469_v20, 30  ;;  %v6784_v55 = vsub.s32 32, %v6755_v27  ;;  %vm1857_vm10 = vcmp.lt.s32.totalorder %v6722_v38, 2 }
  0xf6   : > { %5710 = vsinq.f32 %v1392_v35  ;;  %v1861_v45 = vsel %vm1859_vm7, %v1849_v53, 2102212464  ;;  %v1840_v20 = vshrl.u32 %v10592_v15, %v6680_v52  ;;  %v1867_v11 = vsel %vm1857_vm10, %v1864_v36, %v1866_v13  ;;  %v234_v35 = vld [vmem:[%s6122_s20 + $0x1b0] sm:$0xff] }
  0xf7   : > { %v1871_v39 = vsel %vm1857_vm10, %v1868_v21, %v1870_v60  ;;  %v6802_v17 = vshll.u32 %v1832_v16, 8  ;;  %v459_v41 = vsel %vm406_vm0, %v232_v23, 0.0  ;;  %v1471_v52 = vshll.u32 %v6781_v5, 30  ;;  %v6816_v21 = vpop.xlane.xlu1 %549 }
  0xf8   : > { %v1860_v36 = vsel %vm1856_vm8, %v1840_v20, %v1843_v14  ;;  %v1862_v13 = vsel %vm1858_vm9, %v1846_v54, %v1861_v45  ;;  %v1747_v16 = vshrl.u32 %v10598_v2, %v6784_v55  ;;  %10658 = vst [vmem:[#allocation11_spill] sm:$0xff] %v6816_v21  ;;  %v6829_v14 = vshrl.u32 %v1732_v46, 5 }
  0xf9   : > { %v6807_v48 = vpop.eup %5704  ;;  %v6819_v60 = vmul.u32.u64.low %v6802_v17, %v1871_v39  ;;  %v6820_v63 = vmul.u32.u64.high %v6802_v17, %v1871_v39, %v6819_v60  ;;  %v6823_v23 = vmul.u32.u64.low %v6802_v17, %v1867_v11  ;;  %v6824_v9 = vmul.u32.u64.high %v6802_v17, %v1867_v11, %v6823_v23  ;;  %v236_v39 = vld [vmem:[%s6122_s20 + $0x1c0] sm:$0xff] }
  0xfa   : > { %v1746_v54 = vshll.u32 %v10588_v62, %v6755_v27  ;;  %v1750_v45 = vshrl.u32 %v10590_v57, %v6784_v55  ;;  %v692_v20 = vsel %vm535_vm1, %v459_v41, 0.0  ;;  %v1737_v11 = vshll.u32 %v10592_v15, %v6755_v27  ;;  %v6848_v57 = vpop.xlane.xlu0 %552 }
  0xfb   : > { %v1738_v53 = vshrl.u32 %v10594_v8, %v6784_v55  ;;  %v1741_v46 = vshrl.u32 %v10596_v10, %v6784_v55  ;;  %v1749_v62 = vshll.u32 %v10598_v2, %v6755_v27  ;;  %693 = vadd.xlane.f32.xlu1 %v692_v20  ;;  %10659 = vst [vmem:[#allocation12_spill] sm:$0xff] %v6848_v57  ;;  %v10660_v41 = vmov 2102212464   ;;  %v6872_v4 = vpop.xlane.xlu1 %555 }
  0xfc   : > { %v6838_v60 = vpop.eup %5706  ;;  %v1744_v21 = vshrl.u32 %v10660_v41, %v6784_v55  ;;  %v1748_v56 = vor.u32 %v1747_v16, %v1746_v54  ;;  %v460_v15 = vsel %vm406_vm0, %v233_v47, 0.0  ;;  %v461_v8 = vsel %vm406_vm0, %v234_v35, 0.0  ;;  %10664 = vst [vmem:[#allocation13_spill] sm:$0xff] %v6872_v4 }
  0xfd   : > { %v695_v10 = vsel %vm535_vm1, %v460_v15, 0.0  ;;  %v698_v2 = vsel %vm535_vm1, %v461_v8, 0.0  ;;  %v462_v20 = vsel %vm406_vm0, %v235_v58, 0.0  ;;  %v463_v57 = vsel %vm406_vm0, %v236_v39, 0.0  ;;  %v237_v8 = vld [vmem:[%s6122_s20 + $0x1c8] sm:$0xff] }
  0xfe   : > { %v10661_v16 = vand.u32 2147483647, %v6590_v34  ;;  %v10662_v47 = vmov 2475754826   ;;  %v10663_v35 = vmov 2131351028   ;;  %v1751_v19 = vor.u32 %v1750_v45, %v1749_v62  ;;  %696 = vadd.xlane.f32.xlu0 %v695_v10 }
  0xff   : > { %v6862_v42 = vpop.eup %5708  ;;  %v1740_v50 = vshll.u32 %v10662_v47, %v6755_v27  ;;  %v1743_v15 = vshll.u32 %v10663_v35, %v6755_v27  ;;  %v6877_v39 = vsub.s32 %v6735_v24, %v1471_v52  ;;  %v6879_v61 = vor.u32 %v1738_v53, %v1737_v11  ;;  %699 = vadd.xlane.f32.xlu1 %v698_v2  ;;  %v239_v53 = vld [vmem:[%s6122_s20 + $0x1d8] sm:$0xff]  ;;  %v6902_v52 = vpop.xlane.xlu0 %558 }
 0x100   : > { %v1727_v54 = vand.u32 8388607, %v10661_v16  ;;  %v6874_v58 = vpop.eup %5710  ;;  %v6024_v16 = vld [vmem:[%s6079_s15 + $0x38] sm:$0xff]  ;;  %v701_v62 = vsel %vm535_vm1, %v462_v20, 0.0  ;;  %vm1755_vm11 = vcmp.lt.s32.totalorder %v6829_v14, 4  ;;  %v704_v45 = vsel %vm535_vm1, %v463_v57, 0.0 }
 0x101   : > { %v6883_v22 = vsub.f32 %v6600_v29, %v6024_v16  ;;  %v6886_v10 = vor.u32 %v1741_v46, %v1740_v50  ;;  %v6888_v27 = vor.u32 %v1744_v21, %v1743_v15  ;;  %vm1618_vm12 = vcmp.lt.s32.totalorder %v6317_v59, 0  ;;  %10665 = vst [vmem:[#allocation14_spill] sm:$0xff] %v6902_v52  ;;  %v258_v52 = vld [vmem:[%s6122_s20 + $0x270] sm:$0xff] }
 0x102   : > { %v1863_v24 = vsel %vm1857_vm10, %v1860_v36, %v1862_v13  ;;  %v1761_v29 = vsel %vm1755_vm11, %v1748_v56, 920167782  ;;  %v464_v2 = vsel %vm406_vm0, %v237_v8, 0.0  ;;  %v465_v50 = vsel %vm406_vm0, %v238_v6, 0.0  ;;  %702 = vadd.xlane.f32.xlu0 %v701_v62  ;;  %v240_v36 = vld [vmem:[%s6122_s20 + $0x1e0] sm:$0xff] }
 0x103   : > { %vm1881_vm13 = vc.u32 %v6820_v63, %v6823_v23  ;;  %v1882_v57 = vadd.s32 1, %v6824_v9  ;;  %v1728_v21 = vor.u32 8388608, %v1727_v54  ;;  %v1765_v38 = vsel %vm1755_vm11, %v1751_v19, 1326507024  ;;  %705 = vadd.xlane.f32.xlu1 %v704_v45  ;;  %v6924_v54 = vpop.xlane.xlu1 %561 }
 0x104   : > { %vm1752_vm14 = vcmp.lt.s32.totalorder %v6829_v14, 1  ;;  %vm1754_vm15 = vcmp.lt.s32.totalorder %v6829_v14, 3  ;;  %v2035_v6 = vand.u32 2139095040, %v6883_v22  ;;  %v707_v13 = vsel %vm535_vm1, %v464_v2, 0.0  ;;  %10666 = vst [vmem:[#allocation15_spill] sm:$0xff] %v6924_v54 }
 0x105   : > { %v1760_v11 = vsel %vm1752_vm14, %v6879_v61, %v6886_v10  ;;  %v1762_v19 = vsel %vm1754_vm15, %v6888_v27, %v1761_v29  ;;  %v710_v46 = vsel %vm535_vm1, %v465_v50, 0.0  ;;  %v466_v20 = vsel %vm406_vm0, %v239_v53, 0.0  ;;  %v241_v29 = vld [vmem:[%s6122_s20 + $0x1e8] sm:$0xff] }
 0x106   : > { %v10667_v15 = vsub.s32 32, %v6713_v28  ;;  %v1764_v16 = vsel %vm1752_vm14, %v6886_v10, %v6888_v27  ;;  %v1766_v62 = vsel %vm1754_vm15, %v1748_v56, %v1765_v38  ;;  %v467_v45 = vsel %vm406_vm0, %v240_v36, 0.0  ;;  %708 = vadd.xlane.f32.xlu0 %v707_v13 }
 0x107   : > { %v10668_v2 = vshll.u32 %v6766_v26, 23  ;;  %v1474_v53 = vsub.s32 0, %v6877_v39  ;;  %vm1753_vm2 = vcmp.lt.s32.totalorder %v6829_v14, 2  ;;  %v1879_v56 = vmul.u32 %v6802_v17, %v1863_v24  ;;  %711 = vadd.xlane.f32.xlu1 %v710_v46 }
 0x108   : > { %v1690_v8 = vshrl.u32 %v6764_v30, %v10667_v15  ;;  %v1883_v30 = vsel %vm1881_vm13, %v1882_v57, %v6824_v9  ;;  %v242_v15 = vld [vmem:[%s6122_s20 + $0x1f0] sm:$0xff]  ;;  %v1763_v38 = vsel %vm1753_vm2, %v1760_v11, %v1762_v19  ;;  %v2036_v36 = vshrl.u32 %v2035_v6, 23 }
 0x109   : > { %v1695_v50 = vor.u32 4788187, %v10668_v2  ;;  %v713_v26 = vsel %vm535_vm1, %v466_v20, 0.0  ;;  %v6951_v2 = vpop.xlane.xlu0 %564  ;;  %v1767_v9 = vsel %vm1753_vm2, %v1764_v16, %v1766_v62  ;;  %v6955_v57 = vshll.u32 %v1728_v21, 8  ;;  %v243_v20 = vld [vmem:[%s6122_s20 + $0x1f8] sm:$0xff] }
 0x10a   : > { %10669 = vst [vmem:[#allocation16_spill] sm:$0xff] %v6951_v2  ;;  %v716_v13 = vsel %vm535_vm1, %v467_v45, 0.0  ;;  %v468_v17 = vsel %vm406_vm0, %v241_v29, 0.0  ;;  %v6961_v24 = vand.u32 3, %v6760_v0  ;;  %v10670_v6 = vshll.u32 %v6580_v33, %v6713_v28  ;;  %714 = vadd.xlane.f32.xlu0 %v713_v26  ;;  %v244_v33 = vld [vmem:[%s6122_s20 + $0x200] sm:$0xff]  ;;  %v6984_v28 = vpop.xlane.xlu1 %567 }
 0x10b   : > { %v6966_v19 = vadd.s32 %v1883_v30, %v1879_v56  ;;  %v469_v46 = vsel %vm406_vm0, %v242_v15, 0.0  ;;  %v1696_v21 = vand.u32 2147483647, %v1695_v50  ;;  %v10671_v16 = vsub.s32 4, %v6546_v1  ;;  %10672 = vst [vmem:[#allocation17_spill] sm:$0xff] %v6984_v28  ;;  %717 = vadd.xlane.f32.xlu1 %v716_v13 }
 0x10c   : > { %v1691_v11 = vor.u32 %v1690_v8, %v10670_v6  ;;  %v6979_v0 = vmul.u32.u64.low %v6955_v57, %v1763_v38  ;;  %v6980_v45 = vmul.u32.u64.high %v6955_v57, %v1763_v38, %v6979_v0  ;;  %v5582_v50 = vadd.s32 4294967169, %v2036_v36 }
 0x10d   : > { %v6976_v62 = vsel %vm1618_vm12, %v10671_v16, %v6546_v1  ;;  %v6987_v8 = vmul.u32.u64.low %v6955_v57, %v1767_v9  ;;  %v6988_v29 = vmul.u32.u64.high %v6955_v57, %v1767_v9, %v6987_v8  ;;  %v719_v30 = vsel %vm535_vm1, %v468_v17, 0.0  ;;  %v245_v17 = vld [vmem:[%s6122_s20 + $0x208] sm:$0xff]  ;;  %v7007_v6 = vpop.xlane.xlu0 %570 }
 0x10e   : > { %v10673_v1 = vand.u32 2147483647, %v6317_v59  ;;  %v5559_v56 = vmin.u32 %v1474_v53, %v6877_v39  ;;  %v722_v38 = vsel %vm535_vm1, %v469_v46, 0.0  ;;  %v470_v26 = vsel %vm406_vm0, %v243_v20, 0.0  ;;  %10676 = vst [vmem:[#allocation18_spill] sm:$0xff] %v7007_v6  ;;  %720 = vadd.xlane.f32.xlu0 %v719_v30  ;;  %v246_v46 = vld [vmem:[%s6122_s20 + $0x210] sm:$0xff]  ;;  %v7025_v30 = vpop.xlane.xlu1 %573 }
 0x10f   : > { %vm1608_vm4 = vcmp.eq.s32.totalorder %v6695_v12, 0  ;;  %vm1611_vm5 = vcmp.eq.s32.totalorder %v6695_v12, 2  ;;  %v1698_v36 = vcvt.s32.f32 %v1691_v11  ;;  %v1885_v9 = vadd.s32 536870912, %v6966_v19  ;;  %723 = vadd.xlane.f32.xlu1 %v722_v38  ;;  %10678 = vst [vmem:[#allocation19_spill] sm:$0xff] %v7025_v30  ;;  %v247_v38 = vld [vmem:[%s6122_s20 + $0x218] sm:$0xff] }
 0x110   : > { %vm6993_vm3 = vcmp.le.f32.partialorder %v10673_v1, 0.7853982  ;;  %v471_v13 = vsel %vm406_vm0, %v244_v33, 0.0  ;;  %vm1400_vm6 = vcmp.eq.s32.totalorder %v6961_v24, 0  ;;  %vm1403_vm7 = vcmp.eq.s32.totalorder %v6961_v24, 2 }
 0x111   : > { %v1705_v53 = vsel %vm6993_vm3, 0, %v6976_v62  ;;  %v1757_v11 = vsel %vm1755_vm11, %v6888_v27, 2102212464  ;;  %v1699_v20 = vmul.f32 %v1698_v36, %v1696_v21  ;;  %v10677_v16 = vmov 683565275  }
 0x112   : > { %v1736_v33 = vshrl.u32 %v10677_v16, %v6784_v55  ;;  %v2042_v8 = vadd.s32 1, %v5582_v50  ;;  %v725_v1 = vsel %vm535_vm1, %v470_v26, 0.0  ;;  %v1612_v6 = vxor.u32 2147483648, %v6807_v48 }
 0x113   : > { %v1476_v28 = vclz %v5559_v56  ;;  %v728_v62 = vsel %vm535_vm1, %v471_v13, 0.0  ;;  %v472_v27 = vsel %vm406_vm0, %v245_v17, 0.0  ;;  %vm1607_vm8 = vcmp.lt.s32.totalorder %v6695_v12, 2  ;;  %726 = vadd.xlane.f32.xlu0 %v725_v1  ;;  %v248_v17 = vld [vmem:[%s6122_s20 + $0x220] sm:$0xff]  ;;  %v6025_v12 = vld [vmem:[%s6079_s15 + $0x30] sm:$0xff] }
 0x114   : > { %v7028_v21 = vshrl.u32 %v1885_v9, 30  ;;  %v1756_v55 = vsel %vm1752_vm14, %v1736_v33, %v6879_v61  ;;  %v1758_v50 = vsel %vm1754_vm15, %v6886_v10, %v1757_v11  ;;  %v473_v56 = vsel %vm406_vm0, %v246_v46, 0.0  ;;  %729 = vadd.xlane.f32.xlu1 %v728_v62  ;;  %v7048_v10 = vpop.xlane.xlu0 %576 }
 0x115   : > { %v1609_v26 = vxor.u32 2147483648, %v6838_v60  ;;  %v1401_v36 = vxor.u32 2147483648, %v6874_v58  ;;  %v1404_v13 = vxor.u32 2147483648, %v6862_v42  ;;  %v1778_v9 = vadd.s32 1, %v6980_v45  ;;  %10679 = vst [vmem:[#allocation20_spill] sm:$0xff] %v7048_v10 }
 0x116   : > { %v1700_v30 = vxor.u32 2147483648, %v1699_v20  ;;  %vm1410_vm9 = vcmp.lt.s32.totalorder %v6481_v32, 0  ;;  %vm1777_vm10 = vc.u32 %v6988_v29, %v6979_v0  ;;  %vm2043_vm11 = vcmp.gt.s32.totalorder %v2042_v8, 0 }
 0x117   : > { %v731_v61 = vsel %vm535_vm1, %v472_v27, 0.0  ;;  %v5560_v11 = vadd.s32 4294967294, %v1476_v28  ;;  %v1759_v46 = vsel %vm1753_vm2, %v1756_v55, %v1758_v50  ;;  %v734_v33 = vsel %vm535_vm1, %v473_v56, 0.0  ;;  %v249_v55 = vld [vmem:[%s6122_s20 + $0x228] sm:$0xff] }
 0x118   : > { %v474_v1 = vsel %vm406_vm0, %v247_v38, 0.0  ;;  %vm1604_vm13 = vweird.f32 %v6298_v37  ;;  %v1613_v62 = vsel %vm1611_vm5, %v1612_v6, %v6838_v60  ;;  %vm1396_vm14 = vweird.f32 %v6306_v44  ;;  %732 = vadd.xlane.f32.xlu0 %v731_v61  ;;  %v7076_v38 = vpop.xlane.xlu1 %579  ;;  %735 = vadd.xlane.f32.xlu1 %v734_v33 }
 0x119   : > { %v1709_v27 = vadd.s32 3, %v1705_v53  ;;  %v1887_v28 = vshll.u32 %v7028_v21, 30  ;;  %v475_v14 = vsel %vm406_vm0, %v248_v17, 0.0  ;;  %v1610_v50 = vsel %vm1608_vm4, %v6807_v48, %v1609_v26  ;;  %v250_v53 = vld [vmem:[%s6122_s20 + $0x230] sm:$0xff]  ;;  %10680 = vst [vmem:[#allocation21_spill] sm:$0xff] %v7076_v38  ;;  %v7099_v17 = vpop.xlane.xlu0 %582 }
 0x11a   : > { %v1405_v56 = vsel %vm1403_vm7, %v1404_v13, %v6874_v58  ;;  %v1779_v60 = vsel %vm1777_vm10, %v1778_v9, %v6980_v45  ;;  %v2044_v6 = vsel %vm2043_vm11, %v2042_v8, 0  ;;  %v1402_v48 = vsel %vm1400_vm6, %v6862_v42, %v1401_v36  ;;  %10681 = vst [vmem:[#allocation22_spill] sm:$0xff] %v7099_v17  ;;  %v257_v17 = vld [vmem:[%s6122_s20 + $0x268] sm:$0xff] }
 0x11b   : > { %v1701_v26 = vsel %vm1618_vm12, %v1700_v30, %v1699_v20  ;;  %v1775_v58 = vmul.u32 %v6955_v57, %v1759_v46  ;;  %v737_v13 = vsel %vm535_vm1, %v474_v1, 0.0  ;;  %vm5561_vm15 = vcmp.lt.s32.totalorder %v5560_v11, 0  ;;  %v251_v30 = vld [vmem:[%s6122_s20 + $0x238] sm:$0xff]  ;;  %v252_v1 = vld [vmem:[%s6122_s20 + $0x240] sm:$0xff] }
 0x11c   : > { %v1494_v45 = vsub.s32 4, %v6781_v5  ;;  %v740_v8 = vsel %vm535_vm1, %v475_v14, 0.0  ;;  %v476_v9 = vsel %vm406_vm0, %v249_v55, 0.0  ;;  %v7090_v42 = vsub.s32 %v6966_v19, %v1887_v28  ;;  %738 = vadd.xlane.f32.xlu0 %v737_v13  ;;  %v254_v13 = vld [vmem:[%s6122_s20 + $0x250] sm:$0xff] }
 0x11d   : > { %v7092_v36 = vadd.s32 %v1779_v60, %v1775_v58  ;;  %v7094_v20 = vand.u32 31, %v2044_v6  ;;  %v477_v57 = vsel %vm406_vm0, %v250_v53, 0.0  ;;  %v1614_v61 = vsel %vm1607_vm8, %v1610_v50, %v1613_v62  ;;  %741 = vadd.xlane.f32.xlu1 %v740_v8  ;;  %v7160_v8 = vpop.xlane.xlu0 %588 }
 0x11e   : > { %vm1399_vm12 = vcmp.lt.s32.totalorder %v6961_v24, 2  ;;  %v7104_v46 = vand.u32 3, %v1709_v27  ;;  %v10682_v19 = vand.u32 2147483647, %v6481_v32  ;;  %v1704_v14 = vsel %vm6993_vm3, %v6317_v59, %v1701_v26  ;;  %10689 = vst [vmem:[#allocation27_spill] sm:$0xff] %v7160_v8 }
 0x11f   : > { %v1406_v28 = vsel %vm1399_vm12, %v1402_v48, %v1405_v56  ;;  %v7118_v62 = vsub.f32 %v6563_v3, %v6025_v12  ;;  %v743_v24 = vsel %vm535_vm1, %v476_v9, 0.0  ;;  %v7122_v27 = vsel %vm5561_vm15, 0, %v5560_v11  ;;  %v7132_v56 = vpop.xlane.xlu1 %585  ;;  %v253_v48 = vld [vmem:[%s6122_s20 + $0x248] sm:$0xff] }
 0x120   : > { %vm7108_vm2 = vcmp.le.f32.partialorder %v10682_v19, 0.7853982  ;;  %v7127_v55 = vsel %vm1410_vm9, %v1494_v45, %v6781_v5  ;;  %v746_v50 = vsel %vm535_vm1, %v477_v57, 0.0  ;;  %v478_v15 = vsel %vm406_vm0, %v251_v30, 0.0  ;;  %10686 = vst [vmem:[#allocation24_spill] sm:$0xff] %v7132_v56  ;;  %744 = vadd.xlane.f32.xlu0 %v743_v24 }
 0x121   : > { %10685 = vst [vmem:[#allocation23_spill] sm:$0xff] %v7118_v62  ;;  %v1890_v3 = vsub.s32 0, %v7090_v42  ;;  %v1781_v60 = vadd.s32 536870912, %v7092_v36  ;;  %v7137_v53 = vsub.s32 32, %v7094_v20  ;;  %v479_v11 = vsel %vm406_vm0, %v252_v1, 0.0  ;;  %747 = vadd.xlane.f32.xlu1 %v746_v50  ;;  %v7204_v38 = vpop.xlane.xlu0 %594 }
 0x122   : > { %v7144_v5 = vsel %vm1604_vm13, nan, %v1614_v61  ;;  %v7148_v26 = vsel %vm1396_vm14, nan, %v1406_v28  ;;  %5712 = vcosq.f32 %v1704_v14  ;;  %v7152_v58 = vadd.s32 %v6639_v7, %v6634_v43  ;;  %10693 = vst [vmem:[#allocation29_spill] sm:$0xff] %v7204_v38 }
 0x123   : > { %10687 = vst [vmem:[#allocation25_spill] sm:$0xff] %v7144_v5  ;;  %10688 = vst [vmem:[#allocation26_spill] sm:$0xff] %v7148_v26  ;;  %5714 = vsinq.f32 %v1704_v14  ;;  %v1931_v37 = vand.u32 2139095040, %v7118_v62  ;;  %v749_v44 = vsel %vm535_vm1, %v478_v15, 0.0  ;;  %v1484_v9 = vsub.s32 4294967266, %v7122_v27  ;;  %v255_v14 = vld [vmem:[%s6122_s20 + $0x258] sm:$0xff] }
 0x124   : > { %v752_v7 = vsel %vm535_vm1, %v479_v11, 0.0  ;;  %v480_v57 = vsel %vm406_vm0, %v253_v48, 0.0  ;;  %v5575_v30 = vmin.u32 %v1890_v3, %v7090_v42  ;;  %v7168_v61 = vshrl.u32 %v1781_v60, 30  ;;  %750 = vadd.xlane.f32.xlu0 %v749_v44  ;;  %v256_v60 = vld [vmem:[%s6122_s20 + $0x260] sm:$0xff]  ;;  %v7184_v11 = vpop.xlane.xlu1 %591 }
 0x125   : > { %v10690_v19 = vmov 920167782   ;;  %v481_v28 = vsel %vm406_vm0, %v254_v13, 0.0  ;;  %v7175_v12 = vshrl.u32 %v2044_v6, 5  ;;  %v2049_v24 = vshll.u32 %v10677_v16, %v7094_v20  ;;  %10692 = vst [vmem:[#allocation28_spill] sm:$0xff] %v7184_v11  ;;  %753 = vadd.xlane.f32.xlu1 %v752_v7 }
 0x126   : > { %v2059_v1 = vshrl.u32 %v10690_v19, %v7137_v53  ;;  %v2058_v50 = vshll.u32 %v10660_v41, %v7094_v20  ;;  %v10691_v15 = vmov 1326507024   ;;  %v2050_v48 = vshrl.u32 %v10662_v47, %v7137_v53 }
 0x127   : > { %v2062_v3 = vshrl.u32 %v10691_v15, %v7137_v53  ;;  %v2053_v6 = vshrl.u32 %v10663_v35, %v7137_v53  ;;  %v1932_v13 = vshrl.u32 %v1931_v37, 23  ;;  %v755_v45 = vsel %vm535_vm1, %v480_v57, 0.0 }
 0x128   : > { %v2056_v43 = vshrl.u32 %v10660_v41, %v7137_v53  ;;  %v2061_v44 = vshll.u32 %v10690_v19, %v7094_v20  ;;  %v758_v8 = vsel %vm535_vm1, %v481_v28, 0.0  ;;  %v482_v11 = vsel %vm406_vm0, %v255_v14, 0.0  ;;  %756 = vadd.xlane.f32.xlu0 %v755_v45  ;;  %v7224_v45 = vpop.xlane.xlu1 %597  ;;  %v10767_v18 = vld [vmem:[#allocation23_spill] sm:$0xff] }
 0x129   : > { %v1783_v56 = vshll.u32 %v7168_v61, 30  ;;  %v2052_v37 = vshll.u32 %v10662_v47, %v7094_v20  ;;  %v2060_v7 = vor.u32 %v2059_v1, %v2058_v50  ;;  %v483_v57 = vsel %vm406_vm0, %v256_v60, 0.0  ;;  %759 = vadd.xlane.f32.xlu1 %v758_v8  ;;  %10695 = vst [vmem:[#allocation30_spill] sm:$0xff] %v7224_v45 }
 0x12a   : > { %v1892_v10 = vclz %v5575_v30  ;;  %v10694_v2 = vand.u32 2147483647, %v6883_v22  ;;  %v2055_v28 = vshll.u32 %v10663_v35, %v7094_v20  ;;  %v2063_v14 = vor.u32 %v2062_v3, %v2061_v44 }
 0x12b   : > { %v7211_v4 = vor.u32 %v2050_v48, %v2049_v24  ;;  %v7213_v1 = vor.u32 %v2053_v6, %v2052_v37  ;;  %v5578_v50 = vadd.s32 4294967169, %v1932_v13  ;;  %v761_v60 = vsel %vm535_vm1, %v482_v11, 0.0  ;;  %v259_v48 = vld [vmem:[%s6122_s20 + $0x278] sm:$0xff]  ;;  %v260_v37 = vld [vmem:[%s6122_s20 + $0x280] sm:$0xff] }
 0x12c   : > { %v2039_v54 = vand.u32 8388607, %v10694_v2  ;;  %v7216_v38 = vpop.eup %5712  ;;  %v7218_v30 = vor.u32 %v2056_v43, %v2055_v28  ;;  %vm2067_vm3 = vcmp.lt.s32.totalorder %v7175_v12, 4  ;;  %v764_v2 = vsel %vm535_vm1, %v483_v57, 0.0  ;;  %762 = vadd.xlane.f32.xlu0 %v761_v60 }
 0x12d   : > { %v484_v20 = vsel %vm406_vm0, %v257_v17, 0.0  ;;  %v7226_v24 = vpop.eup %5714  ;;  %v1480_v8 = vsub.s32 32, %v7122_v27  ;;  %v7230_v3 = vsub.s32 %v7092_v36, %v1783_v56  ;;  %v2073_v43 = vsel %vm2067_vm3, %v2060_v7, 920167782  ;;  %765 = vadd.xlane.f32.xlu1 %v764_v2  ;;  %v261_v2 = vld [vmem:[%s6122_s20 + $0x288] sm:$0xff] }
 0x12e   : > { %v485_v11 = vsel %vm406_vm0, %v258_v52, 0.0  ;;  %v1485_v6 = vadd.s32 127, %v1484_v9  ;;  %v5576_v13 = vadd.s32 4294967294, %v1892_v10  ;;  %v2040_v44 = vor.u32 8388608, %v2039_v54  ;;  %v7243_v52 = vpop.xlane.xlu0 %600 }
 0x12f   : > { %v2077_v17 = vsel %vm2067_vm3, %v2063_v14, 1326507024  ;;  %vm2064_vm4 = vcmp.lt.s32.totalorder %v7175_v12, 1  ;;  %vm2066_vm5 = vcmp.lt.s32.totalorder %v7175_v12, 3  ;;  %v1938_v36 = vadd.s32 1, %v5578_v50  ;;  %10696 = vst [vmem:[#allocation31_spill] sm:$0xff] %v7243_v52  ;;  %v7271_v52 = vpop.xlane.xlu1 %603 }
 0x130   : > { %v767_v56 = vsel %vm535_vm1, %v484_v20, 0.0  ;;  %v2072_v54 = vsel %vm2064_vm4, %v7211_v4, %v7213_v1  ;;  %v2074_v10 = vsel %vm2066_vm5, %v7218_v30, %v2073_v43  ;;  %v770_v9 = vsel %vm535_vm1, %v485_v11, 0.0  ;;  %10698 = vst [vmem:[#allocation32_spill] sm:$0xff] %v7271_v52  ;;  %v271_v52 = vld [vmem:[%s6122_s20 + $0x2d8] sm:$0xff] }
 0x131   : > { %v486_v57 = vsel %vm406_vm0, %v259_v48, 0.0  ;;  %v1786_v28 = vsub.s32 0, %v7230_v3  ;;  %v2076_v14 = vsel %vm2064_vm4, %v7213_v1, %v7218_v30  ;;  %v2078_v50 = vsel %vm2066_vm5, %v2060_v7, %v2077_v17  ;;  %768 = vadd.xlane.f32.xlu0 %v767_v56  ;;  %v262_v48 = vld [vmem:[%s6122_s20 + $0x290] sm:$0xff]  ;;  %771 = vadd.xlane.f32.xlu1 %v770_v9  ;;  %v263_v9 = vld [vmem:[%s6122_s20 + $0x298] sm:$0xff] }
 0x132   : > { %v487_v60 = vsel %vm406_vm0, %v260_v37, 0.0  ;;  %v1486_v20 = vshll.u32 %v1485_v6, 23  ;;  %v10697_v43 = vsel %vm7108_vm2, 0, %v7127_v55  ;;  %vm5577_vm6 = vcmp.lt.s32.totalorder %v5576_v13, 0 }
 0x133   : > { %v1501_v11 = vadd.s32 3, %v10697_v43  ;;  %vm2065_vm7 = vcmp.lt.s32.totalorder %v7175_v12, 2  ;;  %v1482_v7 = vshrl.u32 %v7152_v58, %v1480_v8  ;;  %vm1939_vm8 = vcmp.gt.s32.totalorder %v1938_v36, 0 }
 0x134   : > { %v2075_v17 = vsel %vm2065_vm7, %v2072_v54, %v2074_v10  ;;  %v773_v6 = vsel %vm535_vm1, %v486_v57, 0.0  ;;  %v2079_v55 = vsel %vm2065_vm7, %v2076_v14, %v2078_v50  ;;  %v7279_v37 = vshll.u32 %v2040_v44, 8  ;;  %v7290_v57 = vpop.xlane.xlu0 %606 }
 0x135   : > { %v776_v56 = vsel %vm535_vm1, %v487_v60, 0.0  ;;  %v488_v43 = vsel %vm406_vm0, %v261_v2, 0.0  ;;  %v1481_v58 = vshll.u32 %v6877_v39, %v7122_v27  ;;  %v1895_v8 = vsel %vm5577_vm6, 0, %v5576_v13  ;;  %10699 = vst [vmem:[#allocation33_spill] sm:$0xff] %v7290_v57  ;;  %774 = vadd.xlane.f32.xlu0 %v773_v6  ;;  %v264_v39 = vld [vmem:[%s6122_s20 + $0x2a0] sm:$0xff]  ;;  %v7313_v6 = vpop.xlane.xlu1 %609 }
 0x136   : > { %v5571_v54 = vmin.u32 %v1786_v28, %v7230_v3  ;;  %v489_v10 = vsel %vm406_vm0, %v262_v48, 0.0  ;;  %v1487_v14 = vor.u32 4788187, %v1486_v20  ;;  %vm1826_vm10 = vcmp.lt.s32.totalorder %v6542_v25, 0  ;;  %777 = vadd.xlane.f32.xlu1 %v776_v56  ;;  %10700 = vst [vmem:[#allocation34_spill] sm:$0xff] %v7313_v6 }
 0x137   : > { %v7294_v44 = vmul.u32.u64.low %v7279_v37, %v2075_v17  ;;  %v7295_v50 = vmul.u32.u64.high %v7279_v37, %v2075_v17, %v7294_v44  ;;  %v7299_v60 = vsel %vm1939_vm8, %v1938_v36, 0  ;;  %v1483_v27 = vor.u32 %v1482_v7, %v1481_v58  ;;  %v265_v58 = vld [vmem:[%s6122_s20 + $0x2a8] sm:$0xff] }
 0x138   : > { %v7303_v13 = vmul.u32.u64.low %v7279_v37, %v2079_v55  ;;  %v7304_v28 = vmul.u32.u64.high %v7279_v37, %v2079_v55, %v7303_v13  ;;  %v779_v2 = vsel %vm535_vm1, %v488_v43, 0.0  ;;  %v1896_v20 = vsub.s32 32, %v1895_v8 }
 0x139   : > { %v2069_v48 = vsel %vm2067_vm3, %v7218_v30, 2102212464  ;;  %v782_v36 = vsel %vm535_vm1, %v489_v10, 0.0  ;;  %v490_v17 = vsel %vm406_vm0, %v263_v9, 0.0  ;;  %v1788_v7 = vclz %v5571_v54  ;;  %780 = vadd.xlane.f32.xlu0 %v779_v2  ;;  %v266_v54 = vld [vmem:[%s6122_s20 + $0x2b0] sm:$0xff] }
 0x13a   : > { %v2048_v55 = vshrl.u32 %v10677_v16, %v7137_v53  ;;  %v7318_v56 = vand.u32 31, %v7299_v60  ;;  %v491_v43 = vsel %vm406_vm0, %v264_v39, 0.0  ;;  %v1488_v13 = vand.u32 2147483647, %v1487_v14  ;;  %783 = vadd.xlane.f32.xlu1 %v782_v36  ;;  %v7336_v14 = vpop.xlane.xlu0 %612 }
 0x13b   : > { %v7323_v30 = vand.u32 3, %v1501_v11  ;;  %v1880_v10 = vadd.s32 %v6823_v23, %v6820_v63  ;;  %v1910_v9 = vsub.s32 4, %v7028_v21  ;;  %v1900_v6 = vsub.s32 4294967266, %v1895_v8  ;;  %10701 = vst [vmem:[#allocation35_spill] sm:$0xff] %v7336_v14 }
 0x13c   : > { %v2068_v53 = vsel %vm2064_vm4, %v2048_v55, %v7211_v4  ;;  %v2070_v39 = vsel %vm2066_vm5, %v7213_v1, %v2069_v48  ;;  %v785_v11 = vsel %vm535_vm1, %v490_v17, 0.0  ;;  %v1490_v63 = vcvt.s32.f32 %v1483_v27  ;;  %v267_v48 = vld [vmem:[%s6122_s20 + $0x2b8] sm:$0xff] }
 0x13d   : > { %v1898_v23 = vshrl.u32 %v1880_v10, %v1896_v20  ;;  %v788_v2 = vsel %vm535_vm1, %v491_v43, 0.0  ;;  %v492_v57 = vsel %vm406_vm0, %v265_v58, 0.0  ;;  %v7342_v4 = vadd.s32 4294967294, %v1788_v7  ;;  %786 = vadd.xlane.f32.xlu0 %v785_v11  ;;  %v268_v7 = vld [vmem:[%s6122_s20 + $0x2c0] sm:$0xff]  ;;  %v7357_v43 = vpop.xlane.xlu1 %615 }
 0x13e   : > { %v7345_v55 = vsub.s32 32, %v7318_v56  ;;  %v493_v1 = vsel %vm406_vm0, %v266_v54, 0.0  ;;  %v7350_v36 = vmul.f32 %v1490_v63, %v1488_v13  ;;  %v1897_v27 = vshll.u32 %v7090_v42, %v1895_v8  ;;  %10702 = vst [vmem:[#allocation36_spill] sm:$0xff] %v7357_v43  ;;  %789 = vadd.xlane.f32.xlu1 %v788_v2  ;;  %v269_v54 = vld [vmem:[%s6122_s20 + $0x2c8] sm:$0xff]  ;;  %v270_v2 = vld [vmem:[%s6122_s20 + $0x2d0] sm:$0xff]  ;;  %v272_v43 = vld [vmem:[%s6122_s20 + $0x2e0] sm:$0xff] }
 0x13f   : > { %v2071_v20 = vsel %vm2065_vm7, %v2068_v53, %v2070_v39  ;;  %v2090_v17 = vadd.s32 1, %v7295_v50  ;;  %v7359_v58 = vadd.s32 127, %v1900_v6  ;;  %v7364_v10 = vsel %vm1826_vm10, %v1910_v9, %v7028_v21  ;;  %v7382_v53 = vpop.xlane.xlu0 %618 }
 0x140   : > { %vm2089_vm11 = vc.u32 %v7304_v28, %v7294_v44  ;;  %v791_v42 = vsel %vm535_vm1, %v492_v57, 0.0  ;;  %v7369_v12 = vor.u32 %v1898_v23, %v1897_v27  ;;  %v794_v6 = vsel %vm535_vm1, %v493_v1, 0.0  ;;  %10703 = vst [vmem:[#allocation37_spill] sm:$0xff] %v7382_v53  ;;  %v6026_v23 = vld [vmem:[%s6079_s15 + $0x48] sm:$0xff] }
 0x141   : > { %v494_v13 = vsel %vm406_vm0, %v267_v48, 0.0  ;;  %vm5573_vm13 = vcmp.lt.s32.totalorder %v7342_v4, 0  ;;  %v2087_v21 = vmul.u32 %v7279_v37, %v2071_v20  ;;  %v1955_v9 = vshrl.u32 %v10690_v19, %v7345_v55  ;;  %792 = vadd.xlane.f32.xlu0 %v791_v42 }
 0x142   : > { %v495_v57 = vsel %vm406_vm0, %v268_v7, 0.0  ;;  %v2091_v39 = vsel %vm2089_vm11, %v2090_v17, %v7295_v50  ;;  %v7386_v11 = vshrl.u32 %v7299_v60, 5  ;;  %v1958_v63 = vshrl.u32 %v10691_v15, %v7345_v55  ;;  %795 = vadd.xlane.f32.xlu1 %v794_v6  ;;  %v7409_v7 = vpop.xlane.xlu1 %621 }
 0x143   : > { %v7392_v37 = vsub.f32 %v6636_v40, %v6026_v23  ;;  %v1946_v1 = vshrl.u32 %v10662_v47, %v7345_v55  ;;  %v1949_v48 = vshrl.u32 %v10663_v35, %v7345_v55  ;;  %v1954_v50 = vshll.u32 %v10660_v41, %v7318_v56  ;;  %10705 = vst [vmem:[#allocation39_spill] sm:$0xff] %v7409_v7 }
 0x144   : > { %v797_v60 = vsel %vm535_vm1, %v494_v13, 0.0  ;;  %v1952_v40 = vshrl.u32 %v10660_v41, %v7345_v55  ;;  %v1957_v27 = vshll.u32 %v10690_v19, %v7318_v56  ;;  %v800_v20 = vsel %vm535_vm1, %v495_v57, 0.0 }
 0x145   : > { %10704 = vst [vmem:[#allocation38_spill] sm:$0xff] %v7392_v37  ;;  %v496_v17 = vsel %vm406_vm0, %v269_v54, 0.0  ;;  %v1945_v42 = vshll.u32 %v10677_v16, %v7318_v56  ;;  %v1948_v6 = vshll.u32 %v10662_v47, %v7318_v56  ;;  %v1956_v13 = vor.u32 %v1955_v9, %v1954_v50  ;;  %798 = vadd.xlane.f32.xlu0 %v797_v60 }
 0x146   : > { %v497_v23 = vsel %vm406_vm0, %v270_v2, 0.0  ;;  %v7418_v8 = vadd.s32 %v2091_v39, %v2087_v21  ;;  %v10706_v57 = vand.u32 2147483647, %v7118_v62  ;;  %v1951_v54 = vshll.u32 %v10663_v35, %v7318_v56  ;;  %801 = vadd.xlane.f32.xlu1 %v800_v20  ;;  %v7431_v39 = vpop.xlane.xlu0 %624  ;;  %v6027_v20 = vld [vmem:[%s6079_s15 + $0x40] sm:$0xff] }
 0x147   : > { %v1959_v7 = vor.u32 %v1958_v63, %v1957_v27  ;;  %v7425_v14 = vor.u32 %v1946_v1, %v1945_v42  ;;  %v7427_v45 = vor.u32 %v1949_v48, %v1948_v6  ;;  %v2243_v9 = vand.u32 2139095040, %v7392_v37  ;;  %10707 = vst [vmem:[#allocation40_spill] sm:$0xff] %v7431_v39 }
 0x148   : > { %v1935_v53 = vand.u32 8388607, %v10706_v57  ;;  %v803_v21 = vsel %vm535_vm1, %v496_v17, 0.0  ;;  %v7433_v2 = vor.u32 %v1952_v40, %v1951_v54  ;;  %vm1963_vm14 = vcmp.lt.s32.totalorder %v7386_v11, 4  ;;  %v273_v40 = vld [vmem:[%s6122_s20 + $0x2e8] sm:$0xff]  ;;  %v7458_v17 = vpop.xlane.xlu1 %627 }
 0x149   : > { %v806_v56 = vsel %vm535_vm1, %v497_v23, 0.0  ;;  %v498_v63 = vsel %vm406_vm0, %v271_v52, 0.0  ;;  %v1902_v1 = vshll.u32 %v7359_v58, 23  ;;  %v7443_v48 = vsel %vm5573_vm13, 0, %v7342_v4  ;;  %804 = vadd.xlane.f32.xlu0 %v803_v21  ;;  %v274_v4 = vld [vmem:[%s6122_s20 + $0x2f0] sm:$0xff]  ;;  %10709 = vst [vmem:[#allocation42_spill] sm:$0xff] %v7458_v17 }
 0x14a   : > { %v1969_v50 = vsel %vm1963_vm14, %v1956_v13, 920167782  ;;  %v499_v60 = vsel %vm406_vm0, %v272_v43, 0.0  ;;  %v1936_v27 = vor.u32 8388608, %v1935_v53  ;;  %vm1960_vm15 = vcmp.lt.s32.totalorder %v7386_v11, 1  ;;  %807 = vadd.xlane.f32.xlu1 %v806_v56 }
 0x14b   : > { %v1973_v52 = vsel %vm1963_vm14, %v1959_v7, 1326507024  ;;  %v7455_v58 = vsub.f32 %v6585_v49, %v6027_v20  ;;  %v2093_v42 = vadd.s32 536870912, %v7418_v8  ;;  %vm1962_vm12 = vcmp.lt.s32.totalorder %v7386_v11, 3 }
 0x14c   : > { %v1968_v43 = vsel %vm1960_vm15, %v7425_v14, %v7427_v45  ;;  %v809_v53 = vsel %vm535_vm1, %v498_v63, 0.0  ;;  %v10710_v49 = vand.u32 2147483647, %v6542_v25  ;;  %v1970_v6 = vsel %vm1962_vm12, %v7433_v2, %v1969_v50  ;;  %v7488_v50 = vpop.xlane.xlu0 %630 }
 0x14d   : > { %10708 = vst [vmem:[#allocation41_spill] sm:$0xff] %v7455_v58  ;;  %v2244_v23 = vshrl.u32 %v2243_v9, 23  ;;  %v812_v57 = vsel %vm535_vm1, %v499_v60, 0.0  ;;  %v500_v54 = vsel %vm406_vm0, %v273_v40, 0.0  ;;  %v1903_v21 = vor.u32 4788187, %v1902_v1  ;;  %810 = vadd.xlane.f32.xlu0 %v809_v53 }
 0x14e   : > { %vm7469_vm3 = vcmp.le.f32.partialorder %v10710_v49, 0.7853982  ;;  %v1972_v56 = vsel %vm1960_vm15, %v7427_v45, %v7433_v2  ;;  %v1974_v63 = vsel %vm1962_vm12, %v1956_v13, %v1973_v52  ;;  %v501_v20 = vsel %vm406_vm0, %v274_v4, 0.0  ;;  %v275_v49 = vld [vmem:[%s6122_s20 + $0x2f8] sm:$0xff]  ;;  %10713 = vst [vmem:[#allocation43_spill] sm:$0xff] %v7488_v50  ;;  %v276_v40 = vld [vmem:[%s6122_s20 + $0x300] sm:$0xff]  ;;  %813 = vadd.xlane.f32.xlu1 %v812_v57 }
 0x14f   : > { %v1492_v9 = vxor.u32 2147483648, %v7350_v36  ;;  %v1796_v60 = vsub.s32 4294967266, %v7443_v48  ;;  %vm1961_vm4 = vcmp.lt.s32.totalorder %v7386_v11, 2  ;;  %v2139_v1 = vand.u32 2139095040, %v7455_v58  ;;  %v277_v57 = vld [vmem:[%s6122_s20 + $0x308] sm:$0xff] }
 0x150   : > { %v7495_v17 = vshrl.u32 %v2093_v42, 30  ;;  %v1971_v13 = vsel %vm1961_vm4, %v1968_v43, %v1970_v6  ;;  %v7499_v52 = vshll.u32 %v1936_v27, 8  ;;  %v815_v4 = vsel %vm535_vm1, %v500_v54, 0.0  ;;  %v7507_v42 = vpop.xlane.xlu1 %633 }
 0x151   : > { %v1975_v50 = vsel %vm1961_vm4, %v1972_v56, %v1974_v63  ;;  %v5590_v39 = vadd.s32 4294967169, %v2244_v23  ;;  %v818_v5 = vsel %vm535_vm1, %v501_v20, 0.0  ;;  %v502_v53 = vsel %vm406_vm0, %v275_v49, 0.0  ;;  %10714 = vst [vmem:[#allocation44_spill] sm:$0xff] %v7507_v42  ;;  %816 = vadd.xlane.f32.xlu0 %v815_v4  ;;  %v280_v4 = vld [vmem:[%s6122_s20 + $0x320] sm:$0xff] }
 0x152   : > { %v1904_v26 = vand.u32 2147483647, %v1903_v21  ;;  %v1906_v43 = vcvt.s32.f32 %v7369_v12  ;;  %v1776_v27 = vadd.s32 %v6979_v0, %v6988_v29  ;;  %v503_v6 = vsel %vm406_vm0, %v276_v40, 0.0  ;;  %v278_v21 = vld [vmem:[%s6122_s20 + $0x310] sm:$0xff]  ;;  %819 = vadd.xlane.f32.xlu1 %v818_v5  ;;  %v7527_v29 = vpop.xlane.xlu0 %636 }
 0x153   : > { %v1792_v54 = vsub.s32 32, %v7443_v48  ;;  %v7517_v23 = vmul.u32.u64.low %v7499_v52, %v1971_v13  ;;  %v7518_v56 = vmul.u32.u64.high %v7499_v52, %v1971_v13, %v7517_v23  ;;  %v2140_v63 = vshrl.u32 %v2139_v1, 23  ;;  %10715 = vst [vmem:[#allocation45_spill] sm:$0xff] %v7527_v29 }
 0x154   : > { %v1797_v20 = vadd.s32 127, %v1796_v60  ;;  %v7523_v12 = vmul.u32.u64.low %v7499_v52, %v1975_v50  ;;  %v7524_v49 = vmul.u32.u64.high %v7499_v52, %v1975_v50, %v7523_v12  ;;  %v821_v0 = vsel %vm535_vm1, %v502_v53, 0.0  ;;  %v7548_v42 = vpop.xlane.xlu1 %639 }
 0x155   : > { %vm1715_vm5 = vcmp.eq.s32.totalorder %v7104_v46, 2  ;;  %v2095_v40 = vshll.u32 %v7495_v17, 30  ;;  %v2250_v13 = vadd.s32 1, %v5590_v39  ;;  %v824_v1 = vsel %vm535_vm1, %v503_v6, 0.0  ;;  %v279_v12 = vld [vmem:[%s6122_s20 + $0x318] sm:$0xff]  ;;  %822 = vadd.xlane.f32.xlu0 %v821_v0  ;;  %10716 = vst [vmem:[#allocation46_spill] sm:$0xff] %v7548_v42 }
 0x156   : > { %v504_v60 = vsel %vm406_vm0, %v277_v57, 0.0  ;;  %v1493_v5 = vsel %vm1410_vm9, %v1492_v9, %v7350_v36  ;;  %v1913_v50 = vsel %vm7469_vm3, 0, %v7364_v10  ;;  %v505_v53 = vsel %vm406_vm0, %v278_v21, 0.0  ;;  %825 = vadd.xlane.f32.xlu1 %v824_v1 }
 0x157   : > { %v1907_v39 = vmul.f32 %v1906_v43, %v1904_v26  ;;  %v1794_v29 = vshrl.u32 %v1776_v27, %v1792_v54  ;;  %v1965_v6 = vsel %vm1963_vm14, %v7433_v2, 2102212464  ;;  %v5586_v57 = vadd.s32 4294967169, %v2140_v63  ;;  %v281_v54 = vld [vmem:[%s6122_s20 + $0x328] sm:$0xff]  ;;  %v7572_v63 = vpop.xlane.xlu0 %642 }
 0x158   : > { %v1793_v36 = vshll.u32 %v7230_v3, %v7443_v48  ;;  %v1798_v10 = vshll.u32 %v1797_v20, 23  ;;  %v1944_v9 = vshrl.u32 %v10677_v16, %v7345_v55  ;;  %v827_v26 = vsel %vm535_vm1, %v504_v60, 0.0  ;;  %10717 = vst [vmem:[#allocation47_spill] sm:$0xff] %v7572_v63 }
 0x159   : > { %v7556_v43 = vsub.s32 %v7418_v8, %v2095_v40  ;;  %vm2251_vm9 = vcmp.gt.s32.totalorder %v2250_v13, 0  ;;  %v830_v2 = vsel %vm535_vm1, %v505_v53, 0.0  ;;  %v506_v27 = vsel %vm406_vm0, %v279_v12, 0.0  ;;  %828 = vadd.xlane.f32.xlu0 %v827_v26 }
 0x15a   : > { %vm1712_vm6 = vcmp.eq.s32.totalorder %v7104_v46, 0  ;;  %v1964_v3 = vsel %vm1960_vm15, %v1944_v9, %v7425_v14  ;;  %v1966_v55 = vsel %vm1962_vm12, %v7427_v45, %v1965_v6  ;;  %v10602_v8 = vand.u32 2147483647, %v7392_v37  ;;  %v282_v14 = vld [vmem:[%s6122_s20 + $0x330] sm:$0xff]  ;;  %831 = vadd.xlane.f32.xlu1 %v830_v2  ;;  %v7586_v6 = vpop.xlane.xlu1 %645  ;;  %v283_v9 = vld [vmem:[%s6122_s20 + $0x338] sm:$0xff] }
 0x15b   : > { %v507_v48 = vsel %vm406_vm0, %v280_v4, 0.0  ;;  %v1908_v21 = vxor.u32 2147483648, %v1907_v39  ;;  %v1795_v20 = vor.u32 %v1794_v29, %v1793_v36  ;;  %v1986_v0 = vadd.s32 1, %v7518_v56  ;;  %10718 = vst [vmem:[#allocation48_spill] sm:$0xff] %v7586_v6  ;;  %v7611_v33 = vpop.xlane.xlu0 %648  ;;  %v290_v6 = vld [vmem:[%s6122_s20 + $0x370] sm:$0xff] }
 0x15c   : > { %v2146_v40 = vadd.s32 1, %v5586_v57  ;;  %v1799_v1 = vor.u32 4788187, %v1798_v10  ;;  %vm1985_vm7 = vc.u32 %v7524_v49, %v7517_v23  ;;  %v2252_v45 = vsel %vm2251_vm9, %v2250_v13, 0  ;;  %10720 = vst [vmem:[#allocation49_spill] sm:$0xff] %v7611_v33 }
 0x15d   : > { %v833_v60 = vsel %vm535_vm1, %v506_v27, 0.0  ;;  %v2098_v4 = vsub.s32 0, %v7556_v43  ;;  %v1967_v29 = vsel %vm1961_vm4, %v1964_v3, %v1966_v55  ;;  %v836_v53 = vsel %vm535_vm1, %v507_v48, 0.0  ;;  %v284_v3 = vld [vmem:[%s6122_s20 + $0x340] sm:$0xff] }
 0x15e   : > { %v508_v12 = vsel %vm406_vm0, %v281_v54, 0.0  ;;  %v10719_v57 = vxor.u32 2147483648, %v7216_v38  ;;  %v1917_v36 = vadd.s32 3, %v1913_v50  ;;  %v2247_v10 = vand.u32 8388607, %v10602_v8  ;;  %834 = vadd.xlane.f32.xlu0 %v833_v60  ;;  %837 = vadd.xlane.f32.xlu1 %v836_v53 }
 0x15f   : > { %v509_v11 = vsel %vm406_vm0, %v282_v14, 0.0  ;;  %v1496_v26 = vsel %vm7108_vm2, %v6481_v32, %v1493_v5  ;;  %v1987_v2 = vsel %vm1985_vm7, %v1986_v0, %v7518_v56  ;;  %v7604_v27 = vand.u32 31, %v2252_v45 }
 0x160   : > { %v7593_v13 = vsel %vm1715_vm5, %v10719_v57, %v7226_v24  ;;  %vm2147_vm8 = vcmp.gt.s32.totalorder %v2146_v40, 0  ;;  %v1909_v50 = vsel %vm1826_vm10, %v1908_v21, %v1907_v39  ;;  %v1800_v55 = vand.u32 2147483647, %v1799_v1  ;;  %v285_v1 = vld [vmem:[%s6122_s20 + $0x348] sm:$0xff] }
 0x161   : > { %v1983_v48 = vmul.u32 %v7499_v52, %v1967_v29  ;;  %v839_v54 = vsel %vm535_vm1, %v508_v12, 0.0  ;;  %v1802_v5 = vcvt.s32.f32 %v1795_v20  ;;  %v7614_v56 = vmin.u32 %v2098_v4, %v7556_v43  ;;  %v7639_v12 = vpop.xlane.xlu1 %651 }
 0x162   : > { %v842_v0 = vsel %vm535_vm1, %v509_v11, 0.0  ;;  %v510_v14 = vsel %vm406_vm0, %v283_v9, 0.0  ;;  %v2248_v39 = vor.u32 8388608, %v2247_v10  ;;  %v7621_v21 = vsel %vm2147_vm8, %v2146_v40, 0  ;;  %840 = vadd.xlane.f32.xlu0 %v839_v54  ;;  %v286_v40 = vld [vmem:[%s6122_s20 + $0x350] sm:$0xff]  ;;  %10722 = vst [vmem:[#allocation50_spill] sm:$0xff] %v7639_v12 }
 0x163   : > { %v7619_v60 = vadd.s32 %v1987_v2, %v1983_v48  ;;  %v511_v52 = vsel %vm406_vm0, %v284_v3, 0.0  ;;  %v10721_v29 = vxor.u32 2147483648, %v7226_v24  ;;  %5716 = vcosq.f32 %v1496_v26  ;;  %843 = vadd.xlane.f32.xlu1 %v842_v0  ;;  %v289_v12 = vld [vmem:[%s6122_s20 + $0x368] sm:$0xff] }
 0x164   : > { %v7633_v4 = vand.u32 3, %v1917_v36  ;;  %v7636_v53 = vsub.s32 32, %v7604_v27  ;;  %5718 = vsinq.f32 %v1496_v26  ;;  %v7644_v24 = vsel %vm7469_vm3, %v6542_v25, %v1909_v50  ;;  %v287_v50 = vld [vmem:[%s6122_s20 + $0x358] sm:$0xff] }
 0x165   : > { %v7631_v20 = vsel %vm1712_vm6, %v7216_v38, %v10721_v29  ;;  %v7646_v57 = vmul.f32 %v1802_v5, %v1800_v55  ;;  %v845_v38 = vsel %vm535_vm1, %v510_v14, 0.0  ;;  %v7651_v10 = vand.u32 31, %v7621_v21  ;;  %v7663_v55 = vpop.xlane.xlu0 %654  ;;  %v288_v14 = vld [vmem:[%s6122_s20 + $0x360] sm:$0xff]  ;;  %v7689_v36 = vpop.xlane.xlu1 %657 }
 0x166   : > { %v848_v11 = vsel %vm535_vm1, %v511_v52, 0.0  ;;  %v512_v9 = vsel %vm406_vm0, %v285_v1, 0.0  ;;  %v1989_v7 = vadd.s32 536870912, %v7619_v60  ;;  %v7657_v26 = vshll.u32 %v2248_v39, 8  ;;  %10723 = vst [vmem:[#allocation51_spill] sm:$0xff] %v7663_v55  ;;  %846 = vadd.xlane.f32.xlu0 %v845_v38  ;;  %10724 = vst [vmem:[#allocation52_spill] sm:$0xff] %v7689_v36 }
 0x167   : > { %v513_v3 = vsel %vm406_vm0, %v286_v40, 0.0  ;;  %v7665_v48 = vshrl.u32 %v2252_v45, 5  ;;  %v2257_v54 = vshll.u32 %v10677_v16, %v7604_v27  ;;  %v2258_v5 = vshrl.u32 %v10662_v47, %v7636_v53  ;;  %849 = vadd.xlane.f32.xlu1 %v848_v11 }
 0x168   : > { %v2267_v0 = vshrl.u32 %v10690_v19, %v7636_v53  ;;  %v2261_v39 = vshrl.u32 %v10663_v35, %v7636_v53  ;;  %v2264_v52 = vshrl.u32 %v10660_v41, %v7636_v53  ;;  %v2266_v45 = vshll.u32 %v10660_v41, %v7604_v27 }
 0x169   : > { %v851_v1 = vsel %vm535_vm1, %v512_v9, 0.0  ;;  %v2270_v29 = vshrl.u32 %v10691_v15, %v7636_v53  ;;  %v7684_v40 = vsub.s32 32, %v7651_v10  ;;  %v854_v38 = vsel %vm535_vm1, %v513_v3, 0.0 }
 0x16a   : > { %v514_v8 = vsel %vm406_vm0, %v287_v50, 0.0  ;;  %v7691_v2 = vshrl.u32 %v1989_v7, 30  ;;  %v2260_v11 = vshll.u32 %v10662_v47, %v7604_v27  ;;  %v2263_v9 = vshll.u32 %v10663_v35, %v7604_v27  ;;  %852 = vadd.xlane.f32.xlu0 %v851_v1 }
 0x16b   : > { %v515_v55 = vsel %vm406_vm0, %v288_v14, 0.0  ;;  %v7700_v33 = vor.u32 %v2258_v5, %v2257_v54  ;;  %v7702_v3 = vor.u32 %v2267_v0, %v2266_v45  ;;  %v2269_v50 = vshll.u32 %v10690_v19, %v7604_v27  ;;  %855 = vadd.xlane.f32.xlu1 %v854_v38  ;;  %v7717_v5 = vpop.xlane.xlu0 %660 }
 0x16c   : > { %v10725_v7 = vand.u32 2147483647, %v7455_v58  ;;  %v7711_v63 = vor.u32 %v2261_v39, %v2260_v11  ;;  %v7713_v42 = vor.u32 %v2264_v52, %v2263_v9  ;;  %vm2272_vm2 = vcmp.lt.s32.totalorder %v7665_v48, 1  ;;  %10726 = vst [vmem:[#allocation53_spill] sm:$0xff] %v7717_v5  ;;  %v292_v9 = vld [vmem:[%s6122_s20 + $0x380] sm:$0xff] }
 0x16d   : > { %v857_v54 = vsel %vm535_vm1, %v514_v8, 0.0  ;;  %v7719_v0 = vpop.eup %5716  ;;  %v2271_v27 = vor.u32 %v2270_v29, %v2269_v50  ;;  %v2163_v14 = vshrl.u32 %v10690_v19, %v7684_v40  ;;  %v860_v39 = vsel %vm535_vm1, %v515_v55, 0.0  ;;  %v291_v29 = vld [vmem:[%s6122_s20 + $0x378] sm:$0xff]  ;;  %v7746_v50 = vpop.xlane.xlu1 %663 }
 0x16e   : > { %v7708_v36 = vand.u32 8388607, %v10725_v7  ;;  %v516_v52 = vsel %vm406_vm0, %v289_v12, 0.0  ;;  %v7726_v45 = vpop.eup %5718  ;;  %vm2274_vm10 = vcmp.lt.s32.totalorder %v7665_v48, 3  ;;  %vm2275_vm11 = vcmp.lt.s32.totalorder %v7665_v48, 4  ;;  %858 = vadd.xlane.f32.xlu0 %v857_v54  ;;  %10727 = vst [vmem:[#allocation54_spill] sm:$0xff] %v7746_v50 }
 0x16f   : > { %v2166_v8 = vshrl.u32 %v10691_v15, %v7684_v40  ;;  %v517_v1 = vsel %vm406_vm0, %v290_v6, 0.0  ;;  %v2281_v55 = vsel %vm2275_vm11, %v7702_v3, 920167782  ;;  %v7739_v38 = vshrl.u32 %v7621_v21, 5  ;;  %861 = vadd.xlane.f32.xlu1 %v860_v39 }
 0x170   : > { %v2154_v12 = vshrl.u32 %v10662_v47, %v7684_v40  ;;  %v2162_v11 = vshll.u32 %v10660_v41, %v7651_v10  ;;  %v2157_v6 = vshrl.u32 %v10663_v35, %v7684_v40  ;;  %v2160_v7 = vshrl.u32 %v10660_v41, %v7684_v40 }
 0x171   : > { %v2165_v21 = vshll.u32 %v10690_v19, %v7651_v10  ;;  %v863_v5 = vsel %vm535_vm1, %v516_v52, 0.0  ;;  %v2153_v54 = vshll.u32 %v10677_v16, %v7651_v10  ;;  %v866_v37 = vsel %vm535_vm1, %v517_v1, 0.0  ;;  %v293_v52 = vld [vmem:[%s6122_s20 + $0x388] sm:$0xff]  ;;  %v7767_v19 = vpop.xlane.xlu0 %666 }
 0x172   : > { %v2164_v58 = vor.u32 %v2163_v14, %v2162_v11  ;;  %v518_v50 = vsel %vm406_vm0, %v291_v29, 0.0  ;;  %v2156_v62 = vshll.u32 %v10662_v47, %v7651_v10  ;;  %v2159_v41 = vshll.u32 %v10663_v35, %v7651_v10  ;;  %10728 = vst [vmem:[#allocation55_spill] sm:$0xff] %v7767_v19  ;;  %864 = vadd.xlane.f32.xlu0 %v863_v5 }
 0x173   : > { %v2167_v15 = vor.u32 %v2166_v8, %v2165_v21  ;;  %v519_v39 = vsel %vm406_vm0, %v292_v9, 0.0  ;;  %v2280_v14 = vsel %vm2272_vm2, %v7700_v33, %v7711_v63  ;;  %v2282_v1 = vsel %vm2274_vm10, %v7713_v42, %v2281_v55  ;;  %v294_v8 = vld [vmem:[%s6122_s20 + $0x390] sm:$0xff]  ;;  %867 = vadd.xlane.f32.xlu1 %v866_v37 }
 0x174   : > { %v2285_v29 = vsel %vm2275_vm11, %v2271_v27, 1326507024  ;;  %v7778_v10 = vor.u32 %v2154_v12, %v2153_v54  ;;  %v7781_v11 = vor.u32 %v2157_v6, %v2156_v62  ;;  %v7783_v9 = vor.u32 %v2160_v7, %v2159_v41  ;;  %v7793_v62 = vpop.xlane.xlu1 %669  ;;  %v295_v6 = vld [vmem:[%s6122_s20 + $0x398] sm:$0xff] }
 0x175   : > { %vm2171_vm13 = vcmp.lt.s32.totalorder %v7739_v38, 4  ;;  %v869_v21 = vsel %vm535_vm1, %v518_v50, 0.0  ;;  %v1991_v55 = vshll.u32 %v7691_v2, 30  ;;  %v872_v12 = vsel %vm535_vm1, %v519_v39, 0.0  ;;  %10729 = vst [vmem:[#allocation56_spill] sm:$0xff] %v7793_v62  ;;  %v296_v39 = vld [vmem:[%s6122_s20 + $0x3a0] sm:$0xff] }
 0x176   : > { %v2177_v27 = vsel %vm2171_vm13, %v2164_v58, 920167782  ;;  %v520_v5 = vsel %vm406_vm0, %v293_v52, 0.0  ;;  %vm2273_vm14 = vcmp.lt.s32.totalorder %v7665_v48, 2  ;;  %v2284_v41 = vsel %vm2272_vm2, %v7711_v63, %v7713_v42  ;;  %870 = vadd.xlane.f32.xlu0 %v869_v21  ;;  %v297_v62 = vld [vmem:[%s6122_s20 + $0x3a8] sm:$0xff] }
 0x177   : > { %v2181_v37 = vsel %vm2171_vm13, %v2167_v15, 1326507024  ;;  %v521_v50 = vsel %vm406_vm0, %v294_v8, 0.0  ;;  %v2283_v7 = vsel %vm2273_vm14, %v2280_v14, %v2282_v1  ;;  %v2286_v54 = vsel %vm2274_vm10, %v7702_v3, %v2285_v29  ;;  %873 = vadd.xlane.f32.xlu1 %v872_v12  ;;  %v7822_v1 = vpop.xlane.xlu0 %672 }
 0x178   : > { %vm2168_vm15 = vcmp.lt.s32.totalorder %v7739_v38, 1  ;;  %vm2170_vm12 = vcmp.lt.s32.totalorder %v7739_v38, 3  ;;  %v2144_v15 = vor.u32 8388608, %v7708_v36  ;;  %v875_v3 = vsel %vm535_vm1, %v520_v5, 0.0  ;;  %10730 = vst [vmem:[#allocation57_spill] sm:$0xff] %v7822_v1 }
 0x179   : > { %v2176_v52 = vsel %vm2168_vm15, %v7778_v10, %v7781_v11  ;;  %v2178_v14 = vsel %vm2170_vm12, %v7783_v9, %v2177_v27  ;;  %vm1722_vm3 = vcmp.lt.s32.totalorder %v6590_v34, 0  ;;  %v2180_v36 = vsel %vm2168_vm15, %v7781_v11, %v7783_v9 }
 0x17a   : > { %v2182_v29 = vsel %vm2170_vm12, %v2164_v58, %v2181_v37  ;;  %v878_v8 = vsel %vm535_vm1, %v521_v50, 0.0  ;;  %v522_v21 = vsel %vm406_vm0, %v295_v6, 0.0  ;;  %v10731_v27 = vclz %v7614_v56  ;;  %876 = vadd.xlane.f32.xlu0 %v875_v3  ;;  %v298_v6 = vld [vmem:[%s6122_s20 + $0x3b0] sm:$0xff] }
 0x17b   : > { %v2287_v5 = vsel %vm2273_vm14, %v2284_v41, %v2286_v54  ;;  %vm2169_vm4 = vcmp.lt.s32.totalorder %v7739_v38, 2  ;;  %v523_v1 = vsel %vm406_vm0, %v296_v39, 0.0  ;;  %v7843_v58 = vsub.s32 %v7619_v60, %v1991_v55  ;;  %v7852_v41 = vpop.xlane.xlu1 %675  ;;  %v6028_v60 = vld [vmem:[%s6079_s15 + $0x58] sm:$0xff]  ;;  %879 = vadd.xlane.f32.xlu1 %v878_v8  ;;  %v7879_v8 = vpop.xlane.xlu0 %678 }
 0x17c   : > { %v5584_v12 = vadd.s32 4294967294, %v10731_v27  ;;  %v7846_v37 = vmul.u32.u64.low %v7657_v26, %v2283_v7  ;;  %v7847_v50 = vmul.u32.u64.high %v7657_v26, %v2283_v7, %v7846_v37  ;;  %v2179_v56 = vsel %vm2169_vm4, %v2176_v52, %v2178_v14  ;;  %10732 = vst [vmem:[#allocation58_spill] sm:$0xff] %v7852_v41  ;;  %10734 = vst [vmem:[#allocation60_spill] sm:$0xff] %v7879_v8 }
 0x17d   : > { %v2183_v54 = vsel %vm2169_vm4, %v2180_v36, %v2182_v29  ;;  %v7857_v39 = vshll.u32 %v2144_v15, 8  ;;  %v7861_v55 = vsub.f32 %v6667_v51, %v6028_v60  ;;  %v881_v7 = vsel %vm535_vm1, %v522_v21, 0.0  ;;  %v299_v21 = vld [vmem:[%s6122_s20 + $0x3b8] sm:$0xff] }
 0x17e   : > { %v7865_v52 = vmul.u32.u64.low %v7657_v26, %v2287_v5  ;;  %v7866_v14 = vmul.u32.u64.high %v7657_v26, %v2287_v5, %v7865_v52  ;;  %v884_v3 = vsel %vm535_vm1, %v523_v1, 0.0  ;;  %v524_v27 = vsel %vm406_vm0, %v297_v62, 0.0  ;;  %882 = vadd.xlane.f32.xlu0 %v881_v7 }
 0x17f   : > { %10733 = vst [vmem:[#allocation59_spill] sm:$0xff] %v7861_v55  ;;  %v1804_v15 = vxor.u32 2147483648, %v7646_v57  ;;  %v7873_v36 = vmul.u32.u64.low %v7857_v39, %v2179_v56  ;;  %v7874_v29 = vmul.u32.u64.high %v7857_v39, %v2179_v56, %v7873_v36  ;;  %v525_v51 = vsel %vm406_vm0, %v298_v6, 0.0  ;;  %v300_v6 = vld [vmem:[%s6122_s20 + $0x3c0] sm:$0xff]  ;;  %885 = vadd.xlane.f32.xlu1 %v884_v3 }
 0x180   : > { %v10735_v5 = vand.u32 2147483647, %v6590_v34  ;;  %v1806_v62 = vsub.s32 4, %v7168_v61  ;;  %v1994_v60 = vsub.s32 0, %v7843_v58  ;;  %5720 = vcosq.f32 %v7644_v24 }
 0x181   : > { %v7891_v56 = vmul.u32.u64.low %v7857_v39, %v2183_v54  ;;  %v7892_v52 = vmul.u32.u64.high %v7857_v39, %v2183_v54, %v7891_v56  ;;  %vm5585_vm9 = vcmp.lt.s32.totalorder %v5584_v12, 0  ;;  %v2451_v8 = vand.u32 2139095040, %v7861_v55 }
 0x182   : > { %vm7884_vm5 = vcmp.le.f32.partialorder %v10735_v5, 0.7853982  ;;  %v887_v5 = vsel %vm535_vm1, %v524_v27, 0.0  ;;  %v2256_v41 = vshrl.u32 %v10677_v16, %v7636_v53  ;;  %v2277_v54 = vsel %vm2275_vm11, %v7713_v42, 2102212464  ;;  %v7904_v56 = vpop.xlane.xlu1 %681  ;;  %v301_v27 = vld [vmem:[%s6122_s20 + $0x3c8] sm:$0xff] }
 0x183   : > { %v890_v7 = vsel %vm535_vm1, %v525_v51, 0.0  ;;  %10738 = vst [vmem:[#allocation61_spill] sm:$0xff] %v7904_v56  ;;  %v526_v19 = vsel %vm406_vm0, %v299_v21, 0.0  ;;  %5722 = vsinq.f32 %v7644_v24  ;;  %v1805_v3 = vsel %vm1722_vm3, %v1804_v15, %v7646_v57  ;;  %888 = vadd.xlane.f32.xlu0 %v887_v5  ;;  %v302_v15 = vld [vmem:[%s6122_s20 + $0x3d0] sm:$0xff] }
 0x184   : > { %v2173_v53 = vsel %vm2171_vm13, %v7783_v9, 2102212464  ;;  %v527_v42 = vsel %vm406_vm0, %v300_v6, 0.0  ;;  %v7919_v51 = vsel %vm5585_vm9, 0, %v5584_v12  ;;  %v5579_v56 = vmin.u32 %v1994_v60, %v7843_v58  ;;  %891 = vadd.xlane.f32.xlu1 %v890_v7  ;;  %v7933_v6 = vpop.xlane.xlu0 %684 }
 0x185   : > { %v2276_v24 = vsel %vm2272_vm2, %v2256_v41, %v7700_v33  ;;  %v2152_v57 = vshrl.u32 %v10677_v16, %v7684_v40  ;;  %v2278_v9 = vsel %vm2274_vm10, %v7711_v63, %v2277_v54  ;;  %v2298_v21 = vadd.s32 1, %v7847_v50  ;;  %10739 = vst [vmem:[#allocation62_spill] sm:$0xff] %v7933_v6 }
 0x186   : > { %v2452_v12 = vshrl.u32 %v2451_v8, 23  ;;  %v893_v60 = vsel %vm535_vm1, %v526_v19, 0.0  ;;  %v2174_v40 = vsel %vm2170_vm12, %v7781_v11, %v2173_v53  ;;  %v896_v41 = vsel %vm535_vm1, %v527_v42, 0.0  ;;  %v7961_v53 = vpop.xlane.xlu1 %687  ;;  %v304_v42 = vld [vmem:[%s6122_s20 + $0x3e0] sm:$0xff] }
 0x187   : > { %v2172_v33 = vsel %vm2168_vm15, %v2152_v57, %v7778_v10  ;;  %v528_v63 = vsel %vm406_vm0, %v301_v27, 0.0  ;;  %v1508_v8 = vxor.u32 2147483648, %v7719_v0  ;;  %vm2297_vm6 = vc.u32 %v7866_v14, %v7846_v37  ;;  %v303_v10 = vld [vmem:[%s6122_s20 + $0x3d8] sm:$0xff]  ;;  %894 = vadd.xlane.f32.xlu0 %v893_v60  ;;  %10740 = vst [vmem:[#allocation63_spill] sm:$0xff] %v7961_v53  ;;  %v305_v60 = vld [vmem:[%s6122_s20 + $0x3e8] sm:$0xff] }
 0x188   : > { %v2194_v19 = vadd.s32 1, %v7874_v29  ;;  %v529_v5 = vsel %vm406_vm0, %v302_v15, 0.0  ;;  %v7954_v11 = vsel %vm1722_vm3, %v1806_v62, %v7168_v61  ;;  %v2108_v54 = vsub.s32 4294967266, %v7919_v51  ;;  %897 = vadd.xlane.f32.xlu1 %v896_v41 }
 0x189   : > { %v2279_v7 = vsel %vm2273_vm14, %v2276_v24, %v2278_v9  ;;  %vm2193_vm7 = vc.u32 %v7892_v52, %v7873_v36  ;;  %v1808_v27 = vsel %vm7884_vm5, %v6590_v34, %v1805_v3  ;;  %v2175_v61 = vsel %vm2169_vm4, %v2172_v33, %v2174_v40 }
 0x18a   : > { %v5598_v62 = vadd.s32 4294967169, %v2452_v12  ;;  %v899_v48 = vsel %vm535_vm1, %v528_v63, 0.0  ;;  %vm1504_vm8 = vcmp.eq.s32.totalorder %v7323_v30, 0  ;;  %vm1507_vm2 = vcmp.eq.s32.totalorder %v7323_v30, 2  ;;  %v7979_v15 = vpop.eup %5720 }
 0x18b   : > { %v1996_v24 = vclz %v5579_v56  ;;  %v2299_v57 = vsel %vm2297_vm6, %v2298_v21, %v7847_v50  ;;  %v902_v3 = vsel %vm535_vm1, %v529_v5, 0.0  ;;  %v530_v38 = vsel %vm406_vm0, %v303_v10, 0.0  ;;  %v7988_v50 = vpop.xlane.xlu0 %690  ;;  %900 = vadd.xlane.f32.xlu0 %v899_v48 }
 0x18c   : > { %v1505_v9 = vxor.u32 2147483648, %v7726_v45  ;;  %vm2034_vm10 = vcmp.lt.s32.totalorder %v6883_v22, 0  ;;  %v2295_v12 = vmul.u32 %v7657_v26, %v2279_v7  ;;  %v2195_v56 = vsel %vm2193_vm7, %v2194_v19, %v7874_v29  ;;  %10741 = vst [vmem:[#allocation64_spill] sm:$0xff] %v7988_v50  ;;  %v306_v26 = vld [vmem:[%s6122_s20 + $0x3f0] sm:$0xff]  ;;  %903 = vadd.xlane.f32.xlu1 %v902_v3  ;;  %v8012_v7 = vpop.xlane.xlu1 %693 }
 0x18d   : > { %v531_v21 = vsel %vm406_vm0, %v304_v42, 0.0  ;;  %v1809_v33 = vsel %vm7884_vm5, 0, %v7954_v11  ;;  %5724 = vcosq.f32 %v1808_v27  ;;  %v2109_v40 = vadd.s32 127, %v2108_v54  ;;  %v5723_v63 = vpop.eup %5722  ;;  %10745 = vst [vmem:[#allocation65_spill] sm:$0xff] %v8012_v7 }
 0x18e   : > { %v2191_v41 = vmul.u32 %v7857_v39, %v2175_v61  ;;  %vm1920_vm11 = vcmp.eq.s32.totalorder %v7633_v4, 0  ;;  %v2104_v29 = vsub.s32 32, %v7919_v51  ;;  %v8000_v19 = vadd.s32 %v2299_v57, %v2295_v12  ;;  %v6029_v57 = vld [vmem:[%s6079_s15 + $0x50] sm:$0xff] }
 0x18f   : > { %v2458_v5 = vadd.s32 1, %v5598_v62  ;;  %v905_v1 = vsel %vm535_vm1, %v530_v38, 0.0  ;;  %vm1711_vm13 = vcmp.lt.s32.totalorder %v7104_v46, 2  ;;  %v10742_v10 = vand.u32 2147483647, %v6883_v22  ;;  %v307_v38 = vld [vmem:[%s6122_s20 + $0x3f8] sm:$0xff] }
 0x190   : > { %v5580_v11 = vadd.s32 4294967294, %v1996_v24  ;;  %v8010_v54 = vadd.s32 %v2195_v56, %v2191_v41  ;;  %v908_v42 = vsel %vm535_vm1, %v531_v21, 0.0  ;;  %v532_v61 = vsel %vm406_vm0, %v305_v60, 0.0  ;;  %906 = vadd.xlane.f32.xlu0 %v905_v1 }
 0x191   : > { %vm8006_vm14 = vcmp.le.f32.partialorder %v10742_v10, 0.7853982  ;;  %vm1503_vm15 = vcmp.lt.s32.totalorder %v7323_v30, 2  ;;  %v1924_v62 = vxor.u32 2147483648, %v7979_v15  ;;  %v2088_v48 = vadd.s32 %v7294_v44, %v7304_v28  ;;  %909 = vadd.xlane.f32.xlu1 %v908_v42  ;;  %v8030_v44 = vpop.xlane.xlu0 %696 }
 0x192   : > { %v8023_v3 = vsub.f32 %v6618_v31, %v6029_v57  ;;  %v533_v24 = vsel %vm406_vm0, %v306_v26, 0.0  ;;  %v1921_v12 = vxor.u32 2147483648, %v5723_v63  ;;  %5726 = vsinq.f32 %v1808_v27  ;;  %10747 = vst [vmem:[#allocation67_spill] sm:$0xff] %v8030_v44  ;;  %v8035_v26 = vpop.xlane.xlu1 %699 }
 0x193   : > { %v2110_v56 = vshll.u32 %v2109_v40, 23  ;;  %v2118_v21 = vsub.s32 4, %v7495_v17  ;;  %v2106_v60 = vshrl.u32 %v2088_v48, %v2104_v29  ;;  %v2301_v41 = vadd.s32 536870912, %v8000_v19  ;;  %10748 = vst [vmem:[#allocation68_spill] sm:$0xff] %v8035_v26 }
 0x194   : > { %10746 = vst [vmem:[#allocation66_spill] sm:$0xff] %v8023_v3  ;;  %vm2459_vm12 = vcmp.gt.s32.totalorder %v2458_v5, 0  ;;  %v911_v31 = vsel %vm535_vm1, %v532_v61, 0.0  ;;  %vm1708_vm3 = vweird.f32 %v6317_v59  ;;  %vm5581_vm4 = vcmp.lt.s32.totalorder %v5580_v11, 0 }
 0x195   : > { %v2197_v28 = vadd.s32 536870912, %v8010_v54  ;;  %v914_v27 = vsel %vm535_vm1, %v533_v24, 0.0  ;;  %v534_v40 = vsel %vm406_vm0, %v307_v38, 0.0  ;;  %vm1500_vm5 = vweird.f32 %v6481_v32  ;;  %912 = vadd.xlane.f32.xlu0 %v911_v31  ;;  %v8063_v57 = vpop.xlane.xlu0 %702 }
 0x196   : > { %v1506_v29 = vsel %vm1504_vm8, %v7719_v0, %v1505_v9  ;;  %v1509_v1 = vsel %vm1507_vm2, %v1508_v8, %v7726_v45  ;;  %vm1923_vm9 = vcmp.eq.s32.totalorder %v7633_v4, 2  ;;  %v2347_v10 = vand.u32 2139095040, %v8023_v3  ;;  %915 = vadd.xlane.f32.xlu1 %v914_v27  ;;  %10750 = vst [vmem:[#allocation70_spill] sm:$0xff] %v8063_v57 }
 0x197   : > { %vm1916_vm6 = vweird.f32 %v6542_v25  ;;  %v2105_v42 = vshll.u32 %v7556_v43, %v7919_v51  ;;  %v2111_v61 = vor.u32 4788187, %v2110_v56  ;;  %v2119_v9 = vsel %vm2034_vm10, %v2118_v21, %v7495_v17  ;;  %v8066_v43 = vpop.eup %5724 }
 0x198   : > { %v8058_v48 = vsel %vm2459_vm12, %v2458_v5, 0  ;;  %v1813_v0 = vadd.s32 3, %v1809_v33  ;;  %v1999_v45 = vsel %vm5581_vm4, 0, %v5580_v11  ;;  %v8061_v8 = vshrl.u32 %v2301_v41, 30  ;;  %v8075_v11 = vpop.xlane.xlu1 %705 }
 0x199   : > { %v917_v24 = vsel %vm535_vm1, %v534_v40, 0.0  ;;  %v1922_v17 = vsel %vm1920_vm11, %v7979_v15, %v1921_v12  ;;  %v1925_v51 = vsel %vm1923_vm9, %v1924_v62, %v5723_v63  ;;  %v2107_v5 = vor.u32 %v2106_v60, %v2105_v42  ;;  %10752 = vst [vmem:[#allocation72_spill] sm:$0xff] %v8075_v11 }
 0x19a   : > { %10749 = vst [vmem:[#allocation69_spill] sm:$0xff] %v8061_v8  ;;  %v8073_v33 = vshrl.u32 %v2197_v28, 30  ;;  %v1718_v38 = vsel %vm1711_vm13, %v7631_v20, %v7593_v13  ;;  %v2121_v56 = vsel %vm8006_vm14, 0, %v2119_v9  ;;  %v8084_v21 = vand.u32 31, %v8058_v48  ;;  %918 = vadd.xlane.f32.xlu0 %v917_v24  ;;  %v8092_v20 = vpop.xlane.xlu0 %708 }
 0x19b   : > { %v2348_v15 = vshrl.u32 %v2347_v10, 23  ;;  %v1510_v63 = vsel %vm1503_vm15, %v1506_v29, %v1509_v1  ;;  %vm1919_vm0 = vcmp.lt.s32.totalorder %v7633_v4, 2  ;;  %v2112_v62 = vand.u32 2147483647, %v2111_v61  ;;  %10753 = vst [vmem:[#allocation73_spill] sm:$0xff] %v8092_v20 }
 0x19c   : > { %10751 = vst [vmem:[#allocation71_spill] sm:$0xff] %v8073_v33  ;;  %v2004_v12 = vsub.s32 4294967266, %v1999_v45  ;;  %v1926_v60 = vsel %vm1919_vm0, %v1922_v17, %v1925_v51  ;;  %v8089_v41 = vand.u32 3, %v1813_v0  ;;  %v2000_v46 = vsub.s32 32, %v1999_v45  ;;  %v8094_v31 = vpop.eup %5726  ;;  %v8098_v4 = vpop.xlane.xlu1 %711 }
 0x19d   : > { %v2303_v13 = vshll.u32 %v8061_v8, 30  ;;  %v1820_v28 = vxor.u32 2147483648, %v8066_v43  ;;  %v2114_v27 = vcvt.s32.f32 %v2107_v5  ;;  %v2125_v30 = vadd.s32 3, %v2121_v56  ;;  %10754 = vst [vmem:[#allocation74_spill] sm:$0xff] %v8098_v4 }
 0x19e   : > { %v2199_v40 = vshll.u32 %v8073_v33, 30  ;;  %v8102_v29 = vsel %vm1708_vm3, nan, %v1718_v38  ;;  %v1984_v1 = vadd.s32 %v7517_v23, %v7524_v49  ;;  %v8107_v10 = vsub.s32 32, %v8084_v21  ;;  %v8126_v51 = vpop.xlane.xlu0 %714 }
 0x19f   : > { %10755 = vst [vmem:[#allocation75_spill] sm:$0xff] %v8102_v29  ;;  %v5594_v42 = vadd.s32 4294967169, %v2348_v15  ;;  %v8111_v61 = vsel %vm1500_vm5, nan, %v1510_v63  ;;  %v8113_v9 = vmul.f32 %v2114_v27, %v2112_v62  ;;  %v2005_v0 = vadd.s32 127, %v2004_v12  ;;  %10759 = vst [vmem:[#allocation78_spill] sm:$0xff] %v8126_v51 }
 0x1a0   : > { %v10756_v24 = vlaneseq  ;;  %v8120_v59 = vsel %vm1916_vm6, nan, %v1926_v60  ;;  %vm1819_vm7 = vcmp.eq.s32.totalorder %v8089_v41, 2  ;;  %v2002_v23 = vshrl.u32 %v1984_v1, %v2000_v46  ;;  %v8137_v25 = vpop.xlane.xlu1 %717 }
 0x1a1   : > { %10758 = vst [vmem:[#allocation77_spill] sm:$0xff] %v8120_v59  ;;  %v8124_v49 = vsub.s32 %v8000_v19, %v2303_v13  ;;  %v8130_v5 = vsel %vm1819_vm7, %v1820_v28, %v8094_v31  ;;  %v8132_v38 = vand.u32 3, %v2125_v30  ;;  %v8135_v56 = vsub.s32 %v8010_v54, %v2199_v40  ;;  %10761 = vst [vmem:[#allocation80_spill] sm:$0xff] %v8137_v25  ;;  %v10768_v25 = vld [vmem:[#allocation26_spill] sm:$0xff] }
 0x1a2   : > { %v8116_v17 = vshrl.u32 %v10756_v24, 7  ;;  %10760 = vst [vmem:[#allocation79_spill] sm:$0xff] %v8130_v5  ;;  %v2001_v15 = vshll.u32 %v7843_v58, %v1999_v45  ;;  %v10762_v19 = vmov 920167782   ;;  %v2354_v12 = vadd.s32 1, %v5594_v42  ;;  %v8155_v1 = vpop.xlane.xlu0 %720 }
 0x1a3   : > { %v2475_v62 = vshrl.u32 %v10762_v19, %v8107_v10  ;;  %v2116_v60 = vxor.u32 2147483648, %v8113_v9  ;;  %v2006_v46 = vshll.u32 %v2005_v0, 23  ;;  %v10763_v13 = vmov 1326507024   ;;  %10765 = vst [vmem:[#allocation81_spill] sm:$0xff] %v8155_v1 }
 0x1a4   : > { %10757 = vst [vmem:[#allocation76_spill] sm:$0xff] %v8116_v17  ;;  %v2478_v28 = vshrl.u32 %v10763_v13, %v8107_v10  ;;  %v8147_v27 = vsub.s32 0, %v8116_v17  ;;  %v8149_v54 = vor.u32 %v2002_v23, %v2001_v15  ;;  %v2306_v30 = vsub.s32 0, %v8124_v49  ;;  %v8165_v15 = vpop.xlane.xlu1 %723 }
 0x1a5   : > { %v10764_v45 = vmov 2102212464   ;;  %v2202_v42 = vsub.s32 0, %v8135_v56  ;;  %v8159_v0 = vshrl.u32 %v8058_v48, 5  ;;  %v2466_v24 = vshrl.u32 %v10662_v47, %v8107_v10  ;;  %10766 = vst [vmem:[#allocation82_spill] sm:$0xff] %v8165_v15 }
 0x1a6   : > { %v2474_v40 = vshll.u32 %v10764_v45, %v8084_v21  ;;  %v2477_v23 = vshll.u32 %v10762_v19, %v8084_v21  ;;  %v2469_v32 = vshrl.u32 %v10663_v35, %v8107_v10  ;;  %v2472_v63 = vshrl.u32 %v10764_v45, %v8107_v10 }
 0x1a7   : > { %vm2355_vm8 = vcmp.gt.s32.totalorder %v2354_v12, 0  ;;  %vm1930_vm2 = vcmp.lt.s32.totalorder %v10767_v18, 0  ;;  %v2007_v48 = vor.u32 4788187, %v2006_v46  ;;  %v2987_v51 = vrot.slane %v10768_v25, %v8147_v27 }
 0x1a8   : > { %v2476_v58 = vor.u32 %v2475_v62, %v2474_v40  ;;  %v2479_v1 = vor.u32 %v2478_v28, %v2477_v23  ;;  %v8175_v4 = vsub.s32 2, %v8116_v17  ;;  %v5591_v15 = vmin.u32 %v2306_v30, %v8124_v49  ;;  %v8184_v40 = vpop.xlane.xlu0 %726  ;;  %v8190_v30 = vpop.xlane.xlu1 %729 }
 0x1a9   : > { %v2465_v20 = vshll.u32 %v10677_v16, %v8084_v21  ;;  %v2468_v11 = vshll.u32 %v10662_v47, %v8084_v21  ;;  %v2471_v62 = vshll.u32 %v10663_v35, %v8084_v21  ;;  %10769 = vst [vmem:[#allocation23_spill] sm:$0xff] %v8184_v40  ;;  %v5587_v46 = vmin.u32 %v2202_v42, %v8135_v56 }
 0x1aa   : > { %v10770_v28 = vand.u32 2147483647, %v7861_v55  ;;  %vm2483_vm11 = vcmp.lt.s32.totalorder %v8159_v0, 4  ;;  %v2356_v57 = vsel %vm2355_vm8, %v2354_v12, 0  ;;  %10771 = vst [vmem:[#allocation26_spill] sm:$0xff] %v8190_v30  ;;  %2989 = vbcast.lane.b32.xlu1 %v2987_v51, 256  ;;  %v2308_v51 = vclz %v5591_v15 }
 0x1ab   : > { %v8192_v26 = vor.u32 %v2466_v24, %v2465_v20  ;;  %v8194_v44 = vor.u32 %v2469_v32, %v2468_v11  ;;  %v2473_v7 = vor.u32 %v2472_v63, %v2471_v62  ;;  %v2489_v21 = vsel %vm2483_vm11, %v2476_v58, 920167782 }
 0x1ac   : > { %v2455_v23 = vand.u32 8388607, %v10770_v28  ;;  %v2493_v42 = vsel %vm2483_vm11, %v2479_v1, 1326507024  ;;  %v3001_v28 = vrot.slane %v10768_v25, %v8175_v4  ;;  %v8203_v40 = vsub.s32 3, %v8116_v17  ;;  %v8209_v63 = vpop.xlane.xlu0 %732  ;;  %v8213_v1 = vpop.xlane.xlu1 %735 }
 0x1ad   : > { %v8206_v12 = vsub.s32 1, %v8116_v17  ;;  %v2008_v20 = vand.u32 2147483647, %v2007_v48  ;;  %v2010_v11 = vcvt.s32.f32 %v8149_v54  ;;  %v2358_v32 = vand.u32 31, %v2356_v57  ;;  %10772 = vst [vmem:[#allocation83_spill] sm:$0xff] %v8209_v63  ;;  %10773 = vst [vmem:[#allocation84_spill] sm:$0xff] %v8213_v1 }
 0x1ae   : > { %v2204_v24 = vclz %v5587_v46  ;;  %v2456_v62 = vor.u32 8388608, %v2455_v23  ;;  %vm2480_vm13 = vcmp.lt.s32.totalorder %v8159_v0, 1  ;;  %vm2482_vm15 = vcmp.lt.s32.totalorder %v8159_v0, 3  ;;  %3003 = vbcast.lane.b32.xlu1 %v3001_v28, 256 }
 0x1af   : > { %v2488_v48 = vsel %vm2480_vm13, %v8192_v26, %v8194_v44  ;;  %v2490_v54 = vsel %vm2482_vm15, %v2473_v7, %v2489_v21  ;;  %v2492_v15 = vsel %vm2480_vm13, %v8194_v44, %v2473_v7  ;;  %v2494_v46 = vsel %vm2482_vm15, %v2476_v58, %v2493_v42 }
 0x1b0   : > { %v3008_v23 = vrot.slane %v10768_v25, %v8203_v40  ;;  %v2994_v28 = vrot.slane %v10768_v25, %v8206_v12  ;;  %v8231_v1 = vsub.s32 5, %v8116_v17  ;;  %v8234_v63 = vsub.s32 4, %v8116_v17  ;;  %v8249_v50 = vpop.xlane.xlu0 %738 }
 0x1b1   : > { %v2117_v21 = vsel %vm2034_vm10, %v2116_v60, %v8113_v9  ;;  %v10774_v30 = vsub.s32 4, %v7691_v2  ;;  %vm2481_vm12 = vcmp.lt.s32.totalorder %v8159_v0, 2  ;;  %v8247_v42 = vsub.s32 32, %v2358_v32  ;;  %10775 = vst [vmem:[#allocation85_spill] sm:$0xff] %v8249_v50  ;;  %v8255_v60 = vpop.xlane.xlu1 %741 }
 0x1b2   : > { %v8251_v53 = vmul.f32 %v2010_v11, %v2008_v20  ;;  %v5592_v6 = vadd.s32 4294967294, %v2308_v51  ;;  %v5588_v55 = vadd.s32 4294967294, %v2204_v24  ;;  %v2491_v9 = vsel %vm2481_vm12, %v2488_v48, %v2490_v54  ;;  %10776 = vst [vmem:[#allocation86_spill] sm:$0xff] %v8255_v60  ;;  %3010 = vbcast.lane.b32.xlu1 %v3008_v23, 256  ;;  %2996 = vbcast.lane.b32.xlu0 %v2994_v28, 256 }
 0x1b3   : > { %v8244_v58 = vsel %vm1930_vm2, %v10774_v30, %v7691_v2  ;;  %v2464_v2 = vshrl.u32 %v10677_v16, %v8107_v10  ;;  %v2495_v30 = vsel %vm2481_vm12, %v2492_v15, %v2494_v46  ;;  %v8261_v59 = vshll.u32 %v2456_v62, 8 }
 0x1b4   : > { %v3022_v11 = vrot.slane %v10768_v25, %v8231_v1  ;;  %v3015_v51 = vrot.slane %v10768_v25, %v8234_v63  ;;  %v8269_v24 = vsub.s32 7, %v8116_v17  ;;  %v8272_v48 = vsub.s32 6, %v8116_v17  ;;  %v8283_v46 = vpop.xlane.xlu0 %744 }
 0x1b5   : > { %v2485_v10 = vsel %vm2483_vm11, %v2473_v7, 2102212464  ;;  %v8277_v62 = vmul.u32.u64.low %v8261_v59, %v2491_v9  ;;  %v8278_v54 = vmul.u32.u64.high %v8261_v59, %v2491_v9, %v8277_v62  ;;  %v2371_v15 = vshrl.u32 %v10762_v19, %v8247_v42  ;;  %10778 = vst [vmem:[#allocation88_spill] sm:$0xff] %v8283_v46  ;;  %v8291_v17 = vpop.xlane.xlu1 %747 }
 0x1b6   : > { %vm5589_vm10 = vcmp.lt.s32.totalorder %v5588_v55, 0  ;;  %v8286_v23 = vmul.u32.u64.low %v8261_v59, %v2495_v30  ;;  %v8287_v28 = vmul.u32.u64.high %v8261_v59, %v2495_v30, %v8286_v23  ;;  %v2374_v20 = vshrl.u32 %v10763_v13, %v8247_v42  ;;  %10780 = vst [vmem:[#allocation90_spill] sm:$0xff] %v8291_v17  ;;  %3024 = vbcast.lane.b32.xlu1 %v3022_v11, 256  ;;  %3017 = vbcast.lane.b32.xlu0 %v3015_v51, 256 }
 0x1b7   : > { %10777 = vst [vmem:[#allocation87_spill] sm:$0xff] %v8277_v62  ;;  %v8293_v7 = vshrl.u32 %v2356_v57, 5  ;;  %v2362_v9 = vshrl.u32 %v10662_v47, %v8247_v42  ;;  %v2365_v46 = vshrl.u32 %v10663_v35, %v8247_v42  ;;  %v2370_v60 = vshll.u32 %v10764_v45, %v2358_v32 }
 0x1b8   : > { %10779 = vst [vmem:[#allocation89_spill] sm:$0xff] %v8287_v28  ;;  %v2368_v30 = vshrl.u32 %v10764_v45, %v8247_v42  ;;  %v2373_v23 = vshll.u32 %v10762_v19, %v2358_v32  ;;  %v3036_v17 = vrot.slane %v10768_v25, %v8269_v24  ;;  %v3029_v57 = vrot.slane %v10768_v25, %v8272_v48  ;;  %v8309_v13 = vpop.xlane.xlu0 %750 }
 0x1b9   : > { %vm5593_vm3 = vcmp.lt.s32.totalorder %v5592_v6, 0  ;;  %v2361_v11 = vshll.u32 %v10677_v16, %v2358_v32  ;;  %v2364_v51 = vshll.u32 %v10662_v47, %v2358_v32  ;;  %v2372_v50 = vor.u32 %v2371_v15, %v2370_v60  ;;  %10781 = vst [vmem:[#allocation91_spill] sm:$0xff] %v8309_v13  ;;  %v8317_v5 = vpop.xlane.xlu1 %753 }
 0x1ba   : > { %v2484_v45 = vsel %vm2480_vm13, %v2464_v2, %v8192_v26  ;;  %v10782_v19 = vand.u32 2147483647, %v8023_v3  ;;  %v2367_v33 = vshll.u32 %v10663_v35, %v2358_v32  ;;  %v2375_v8 = vor.u32 %v2374_v20, %v2373_v23  ;;  %10783 = vst [vmem:[#allocation92_spill] sm:$0xff] %v8317_v5  ;;  %3038 = vbcast.lane.b32.xlu1 %v3036_v17, 256 }
 0x1bb   : > { %3031 = vbcast.lane.b32.xlu0 %v3029_v57, 256  ;;  %v8320_v25 = vsel %vm5589_vm10, 0, %v5588_v55  ;;  %v2486_v60 = vsel %vm2482_vm15, %v8194_v44, %v2485_v10  ;;  %v8325_v15 = vor.u32 %v2362_v9, %v2361_v11  ;;  %v8327_v26 = vor.u32 %v2365_v46, %v2364_v51 }
 0x1bc   : > { %v2351_v29 = vand.u32 8388607, %v10782_v19  ;;  %v10784_v19 = vand.u32 2147483647, %v10767_v18  ;;  %v8335_v2 = vor.u32 %v2368_v30, %v2367_v33  ;;  %vm2379_vm5 = vcmp.lt.s32.totalorder %v8293_v7, 4  ;;  %v8351_v46 = vpop.xlane.xlu0 %756 }
 0x1bd   : > { %v3050_v55 = vrot.slane %v8111_v61, %v8206_v12  ;;  %v3043_v44 = vrot.slane %v8111_v61, %v8147_v27  ;;  %v2120_v17 = vsel %vm8006_vm14, %v6883_v22, %v2117_v21  ;;  %v2012_v20 = vxor.u32 2147483648, %v8251_v53  ;;  %10787 = vst [vmem:[#allocation93_spill] sm:$0xff] %v8351_v46  ;;  %v8358_v21 = vpop.xlane.xlu1 %759 }
 0x1be   : > { %vm8331_vm4 = vcmp.le.f32.partialorder %v10784_v19, 0.7853982  ;;  %v8347_v10 = vsel %vm5593_vm3, 0, %v5592_v6  ;;  %v2385_v33 = vsel %vm2379_vm5, %v2372_v50, 920167782  ;;  %v2212_v9 = vsub.s32 4294967266, %v8320_v25 }
 0x1bf   : > { %v2487_v30 = vsel %vm2481_vm12, %v2484_v45, %v2486_v60  ;;  %v2352_v23 = vor.u32 8388608, %v2351_v29  ;;  %v2389_v39 = vsel %vm2379_vm5, %v2375_v8, 1326507024  ;;  %10788 = vst [vmem:[#allocation94_spill] sm:$0xff] %v8358_v21  ;;  %3052 = vbcast.lane.b32.xlu1 %v3050_v55, 256  ;;  %3045 = vbcast.lane.b32.xlu0 %v3043_v44, 256  ;;  %vm2505_vm14 = vc.u32 %v8287_v28, %v8277_v62 }
 0x1c0   : > { %v2506_v6 = vadd.s32 1, %v8278_v54  ;;  %vm2376_vm9 = vcmp.lt.s32.totalorder %v8293_v7, 1  ;;  %vm2378_vm6 = vcmp.lt.s32.totalorder %v8293_v7, 3  ;;  %vm1816_vm0 = vcmp.eq.s32.totalorder %v8089_v41, 0  ;;  %v8384_v60 = vpop.xlane.xlu0 %762  ;;  %v6030_v44 = vld [vmem:[%s6079_s15 + $0x68] sm:$0xff] }
 0x1c1   : > { %v2384_v8 = vsel %vm2376_vm9, %v8325_v15, %v8327_v26  ;;  %v2386_v29 = vsel %vm2378_vm6, %v8335_v2, %v2385_v33  ;;  %v3064_v45 = vrot.slane %v8111_v61, %v8203_v40  ;;  %v3057_v0 = vrot.slane %v8111_v61, %v8175_v4  ;;  %10789 = vst [vmem:[#allocation95_spill] sm:$0xff] %v8384_v60  ;;  %v10790_v33 = vld [vmem:[#allocation5_spill] sm:$0xff]  ;;  %v8395_v46 = vpop.xlane.xlu1 %765 }
 0x1c2   : > { %5728 = vcosq.f32 %v2120_v17  ;;  %v2316_v57 = vsub.s32 4294967266, %v8347_v10  ;;  %v2388_v11 = vsel %vm2376_vm9, %v8327_v26, %v8335_v2  ;;  %v2390_v51 = vsel %vm2378_vm6, %v2372_v50, %v2389_v39  ;;  %10792 = vst [vmem:[#allocation96_spill] sm:$0xff] %v8395_v46 }
 0x1c3   : > { %v2013_v19 = vsel %vm1930_vm2, %v2012_v20, %v8251_v53  ;;  %v2503_v55 = vmul.u32 %v8261_v59, %v2487_v30  ;;  %vm2377_vm7 = vcmp.lt.s32.totalorder %v8293_v7, 2  ;;  %v8393_v21 = vsub.f32 %v10790_v33, %v6030_v44  ;;  %3066 = vbcast.lane.b32.xlu1 %v3064_v45, 256  ;;  %3059 = vbcast.lane.b32.xlu0 %v3057_v0, 256  ;;  %v6031_v59 = vld [vmem:[%s6079_s15 + $0x60] sm:$0xff]  ;;  %v10793_v20 = vld [vmem:[#allocation3_spill] sm:$0xff]  ;;  %v10807_v7 = vld [vmem:[#allocation69_spill] sm:$0xff] }
 0x1c4   : > { %v2213_v5 = vadd.s32 127, %v2212_v9  ;;  %v2507_v50 = vsel %vm2505_vm14, %v2506_v6, %v8278_v54  ;;  %v2387_v53 = vsel %vm2377_vm7, %v2384_v8, %v2386_v29  ;;  %v8405_v30 = vsub.f32 %v10793_v20, %v6031_v59  ;;  %v8421_v29 = vpop.xlane.xlu0 %768 }
 0x1c5   : > { %10791 = vst [vmem:[#allocation5_spill] sm:$0xff] %v8393_v21  ;;  %v2391_v39 = vsel %vm2377_vm7, %v2388_v11, %v2390_v51  ;;  %v8409_v44 = vshll.u32 %v2352_v23, 8  ;;  %v3078_v9 = vrot.slane %v8111_v61, %v8231_v1  ;;  %v3071_v45 = vrot.slane %v8111_v61, %v8234_v63  ;;  %10795 = vst [vmem:[#allocation97_spill] sm:$0xff] %v8421_v29 }
 0x1c6   : > { %10794 = vst [vmem:[#allocation3_spill] sm:$0xff] %v8405_v30  ;;  %5730 = vsinq.f32 %v2120_v17  ;;  %v2016_v54 = vsel %vm8331_vm4, %v10767_v18, %v2013_v19  ;;  %v2017_v6 = vsel %vm8331_vm4, 0, %v8244_v58  ;;  %v2317_v8 = vadd.s32 127, %v2316_v57  ;;  %v8431_v17 = vpop.xlane.xlu1 %771 }
 0x1c7   : > { %v2208_v23 = vsub.s32 32, %v8320_v25  ;;  %v8424_v0 = vadd.s32 %v2507_v50, %v2503_v55  ;;  %v8427_v11 = vmul.u32.u64.low %v8409_v44, %v2387_v53  ;;  %v8428_v51 = vmul.u32.u64.high %v8409_v44, %v2387_v53, %v8427_v11  ;;  %10796 = vst [vmem:[#allocation98_spill] sm:$0xff] %v8431_v17  ;;  %3080 = vbcast.lane.b32.xlu1 %v3078_v9, 256  ;;  %3073 = vbcast.lane.b32.xlu0 %v3071_v45, 256 }
 0x1c8   : > { %v2214_v19 = vshll.u32 %v2213_v5, 23  ;;  %v8434_v32 = vmul.u32.u64.low %v8409_v44, %v2391_v39  ;;  %v8435_v58 = vmul.u32.u64.high %v8409_v44, %v2391_v39, %v8434_v32  ;;  %v2555_v57 = vand.u32 2139095040, %v8405_v30 }
 0x1c9   : > { %vm1815_vm8 = vcmp.lt.s32.totalorder %v8089_v41, 2  ;;  %v2192_v55 = vadd.s32 %v7873_v36, %v7892_v52  ;;  %v2659_v33 = vand.u32 2139095040, %v8393_v21  ;;  %v3092_v50 = vrot.slane %v8111_v61, %v8269_v24  ;;  %v8454_v52 = vpop.xlane.xlu0 %774 }
 0x1ca   : > { %v3085_v53 = vrot.slane %v8111_v61, %v8272_v48  ;;  %v10797_v5 = vxor.u32 2147483648, %v8094_v31  ;;  %v2021_v20 = vadd.s32 3, %v2017_v6  ;;  %v2296_v39 = vadd.s32 %v7846_v37, %v7866_v14  ;;  %10798 = vst [vmem:[#allocation99_spill] sm:$0xff] %v8454_v52  ;;  %v8460_v61 = vpop.xlane.xlu1 %777 }
 0x1cb   : > { %v2312_v36 = vsub.s32 32, %v8347_v10  ;;  %5732 = vcosq.f32 %v2016_v54  ;;  %v2210_v9 = vshrl.u32 %v2192_v55, %v2208_v23  ;;  %v2509_v45 = vadd.s32 536870912, %v8424_v0  ;;  %10799 = vst [vmem:[#allocation100_spill] sm:$0xff] %v8460_v61  ;;  %3094 = vbcast.lane.b32.xlu1 %v3092_v50, 256  ;;  %v10801_v50 = vld [vmem:[#allocation38_spill] sm:$0xff] }
 0x1cc   : > { %v1818_v59 = vsel %vm1816_vm0, %v8066_v43, %v10797_v5  ;;  %v2381_v31 = vsel %vm2379_vm5, %v8335_v2, 2102212464  ;;  %3087 = vbcast.lane.b32.xlu0 %v3085_v53, 256  ;;  %v8462_v43 = vpop.eup %5728  ;;  %v2318_v6 = vshll.u32 %v2317_v8, 23  ;;  %v2215_v37 = vor.u32 4788187, %v2214_v19 }
 0x1cd   : > { %v2360_v14 = vshrl.u32 %v10677_v16, %v8247_v42  ;;  %v2556_v32 = vshrl.u32 %v2555_v57, 23  ;;  %v2209_v23 = vshll.u32 %v8135_v56, %v8320_v25  ;;  %v2660_v55 = vshrl.u32 %v2659_v33, 23  ;;  %v10800_v5 = vld [vmem:[#allocation25_spill] sm:$0xff]  ;;  %v8480_v25 = vpop.xlane.xlu0 %780 }
 0x1ce   : > { %v3106_v52 = vrot.slane %v10800_v5, %v8206_v12  ;;  %v3099_v2 = vrot.slane %v10800_v5, %v8147_v27  ;;  %vm1812_vm2 = vweird.f32 %v6590_v34  ;;  %5734 = vsinq.f32 %v2016_v54  ;;  %10802 = vst [vmem:[#allocation25_spill] sm:$0xff] %v8480_v25  ;;  %v8487_v53 = vpop.xlane.xlu1 %783 }
 0x1cf   : > { %vm2242_vm11 = vcmp.lt.s32.totalorder %v10801_v50, 0  ;;  %v2314_v8 = vshrl.u32 %v2296_v39, %v2312_v36  ;;  %v2380_v42 = vsel %vm2376_vm9, %v2360_v14, %v8325_v15  ;;  %v2382_v56 = vsel %vm2378_vm6, %v8327_v26, %v2381_v31  ;;  %10804 = vst [vmem:[#allocation102_spill] sm:$0xff] %v8487_v53 }
 0x1d0   : > { %v2313_v19 = vshll.u32 %v8124_v49, %v8347_v10  ;;  %v2211_v57 = vor.u32 %v2210_v9, %v2209_v23  ;;  %v8484_v33 = vshrl.u32 %v2509_v45, 30  ;;  %v2402_v54 = vadd.s32 1, %v8428_v51  ;;  %3108 = vbcast.lane.b32.xlu1 %v3106_v52, 256  ;;  %3101 = vbcast.lane.b32.xlu0 %v3099_v2, 256  ;;  %v5731_v39 = vpop.eup %5730  ;;  %v10805_v45 = vld [vmem:[#allocation79_spill] sm:$0xff] }
 0x1d1   : > { %v2319_v15 = vor.u32 4788187, %v2318_v6  ;;  %v2216_v36 = vand.u32 2147483647, %v2215_v37  ;;  %vm2401_vm13 = vc.u32 %v8435_v58, %v8427_v11  ;;  %v5602_v26 = vadd.s32 4294967169, %v2556_v32  ;;  %v8504_v14 = vpop.xlane.xlu0 %786 }
 0x1d2   : > { %10803 = vst [vmem:[#allocation101_spill] sm:$0xff] %v8484_v33  ;;  %vm2128_vm15 = vcmp.eq.s32.totalorder %v8132_v38, 0  ;;  %v2383_v49 = vsel %vm2377_vm7, %v2380_v42, %v2382_v56  ;;  %v5606_v10 = vadd.s32 4294967169, %v2660_v55  ;;  %v3120_v9 = vrot.slane %v10800_v5, %v8203_v40  ;;  %10806 = vst [vmem:[#allocation79_spill] sm:$0xff] %v8504_v14  ;;  %v8509_v42 = vpop.xlane.xlu1 %789 }
 0x1d3   : > { %v3113_v52 = vrot.slane %v10800_v5, %v8175_v4  ;;  %v1822_v31 = vsel %vm1815_vm8, %v1818_v59, %v10805_v45  ;;  %vm2131_vm12 = vcmp.eq.s32.totalorder %v8132_v38, 2  ;;  %v8502_v6 = vand.u32 3, %v2021_v20  ;;  %10808 = vst [vmem:[#allocation69_spill] sm:$0xff] %v8509_v42 }
 0x1d4   : > { %v2315_v37 = vor.u32 %v2314_v8, %v2313_v19  ;;  %v2326_v32 = vsub.s32 4, %v10807_v7  ;;  %v2218_v23 = vcvt.s32.f32 %v2211_v57  ;;  %v2511_v55 = vshll.u32 %v8484_v33, 30  ;;  %3122 = vbcast.lane.b32.xlu1 %v3120_v9, 256 }
 0x1d5   : > { %v2403_v2 = vsel %vm2401_vm13, %v2402_v54, %v8428_v51  ;;  %3115 = vbcast.lane.b32.xlu0 %v3113_v52, 256  ;;  %v2132_v41 = vxor.u32 2147483648, %v8462_v43  ;;  %v2320_v59 = vand.u32 2147483647, %v2319_v15  ;;  %v2399_v20 = vmul.u32 %v8409_v44, %v2383_v49  ;;  %v5733_v8 = vpop.eup %5732 }
 0x1d6   : > { %v2562_v56 = vadd.s32 1, %v5602_v26  ;;  %vm2127_vm10 = vcmp.lt.s32.totalorder %v8132_v38, 2  ;;  %v2219_v19 = vmul.f32 %v2218_v23, %v2216_v36  ;;  %v2666_v45 = vadd.s32 1, %v5606_v10  ;;  %v8526_v26 = vpop.xlane.xlu0 %792  ;;  %v10813_v10 = vld [vmem:[#allocation41_spill] sm:$0xff] }
 0x1d7   : > { %v3134_v57 = vrot.slane %v10800_v5, %v8231_v1  ;;  %v3127_v51 = vrot.slane %v10800_v5, %v8234_v63  ;;  %v2129_v54 = vxor.u32 2147483648, %v5731_v39  ;;  %v10809_v9 = vand.u32 2147483647, %v10801_v50  ;;  %10812 = vst [vmem:[#allocation103_spill] sm:$0xff] %v8526_v26 }
 0x1d8   : > { %v2322_v44 = vcvt.s32.f32 %v2315_v37  ;;  %v8524_v15 = vadd.s32 %v2403_v2, %v2399_v20  ;;  %v8530_v36 = vsel %vm1812_vm2, nan, %v1822_v31  ;;  %v2327_v49 = vsel %vm2242_vm11, %v2326_v32, %v10807_v7  ;;  %v8544_v2 = vpop.xlane.xlu1 %795  ;;  %v5735_v34 = vpop.eup %5734 }
 0x1d9   : > { %vm8520_vm3 = vcmp.le.f32.partialorder %v10809_v9, 0.7853982  ;;  %v10814_v23 = vand.u32 2147483647, %v10813_v10  ;;  %v8542_v37 = vsub.s32 %v8424_v0, %v2511_v55  ;;  %10818 = vst [vmem:[#allocation105_spill] sm:$0xff] %v8544_v2  ;;  %3136 = vbcast.lane.b32.xlu1 %v3134_v57, 256  ;;  %vm2124_vm5 = vweird.f32 %v6883_v22 }
 0x1da   : > { %3129 = vbcast.lane.b32.xlu0 %v3127_v51, 256  ;;  %v2133_v31 = vsel %vm2131_vm12, %v2132_v41, %v5731_v39  ;;  %v2323_v7 = vmul.f32 %v2322_v44, %v2320_v59  ;;  %vm2138_vm14 = vcmp.lt.s32.totalorder %v10813_v10, 0  ;;  %vm2563_vm9 = vcmp.gt.s32.totalorder %v2562_v56, 0  ;;  %v8561_v59 = vpop.xlane.xlu0 %798  ;;  %v10820_v44 = vld [vmem:[#allocation71_spill] sm:$0xff] }
 0x1db   : > { %vm8537_vm4 = vcmp.le.f32.partialorder %v10814_v23, 0.7853982  ;;  %10817 = vst [vmem:[#allocation104_spill] sm:$0xff] %v8542_v37  ;;  %vm2023_vm6 = vcmp.lt.s32.totalorder %v8502_v6, 2  ;;  %v2220_v32 = vxor.u32 2147483648, %v2219_v19  ;;  %vm2667_vm0 = vcmp.gt.s32.totalorder %v2666_v45, 0 }
 0x1dc   : > { %v3148_v0 = vrot.slane %v10800_v5, %v8269_v24  ;;  %v3141_v55 = vrot.slane %v10800_v5, %v8272_v48  ;;  %v2130_v20 = vsel %vm2128_vm15, %v8462_v43, %v2129_v54  ;;  %v2028_v57 = vxor.u32 2147483648, %v5733_v8  ;;  %10819 = vst [vmem:[#allocation106_spill] sm:$0xff] %v8561_v59  ;;  %v8565_v42 = vpop.xlane.xlu1 %801  ;;  %v10822_v59 = vld [vmem:[#allocation75_spill] sm:$0xff] }
 0x1dd   : > { %v2329_v39 = vsel %vm8520_vm3, 0, %v2327_v49  ;;  %v2405_v41 = vadd.s32 536870912, %v8524_v15  ;;  %v2025_v51 = vxor.u32 2147483648, %v5735_v34  ;;  %v2222_v23 = vsub.s32 4, %v10820_v44  ;;  %10821 = vst [vmem:[#allocation71_spill] sm:$0xff] %v8565_v42 }
 0x1de   : > { %v2514_v2 = vsub.s32 0, %v8542_v37  ;;  %v2564_v26 = vsel %vm2563_vm9, %v2562_v56, 0  ;;  %3150 = vbcast.lane.b32.xlu1 %v3148_v0, 256  ;;  %3143 = vbcast.lane.b32.xlu0 %v3141_v55, 256  ;;  %vm2024_vm7 = vcmp.eq.s32.totalorder %v8502_v6, 0  ;;  %vm2027_vm8 = vcmp.eq.s32.totalorder %v8502_v6, 2  ;;  %v8582_v25 = vpop.xlane.xlu0 %804 }
 0x1df   : > { %v2324_v43 = vxor.u32 2147483648, %v2323_v7  ;;  %v2668_v5 = vsel %vm2667_vm0, %v2666_v45, 0  ;;  %v2333_v54 = vadd.s32 3, %v2329_v39  ;;  %v2221_v49 = vsel %vm2138_vm14, %v2220_v32, %v2219_v19  ;;  %10824 = vst [vmem:[#allocation107_spill] sm:$0xff] %v8582_v25  ;;  %v10830_v6 = vld [vmem:[#allocation4_spill] sm:$0xff] }
 0x1e0   : > { %v3162_v14 = vrot.slane %v10822_v59, %v8206_v12  ;;  %v3155_v56 = vrot.slane %v10822_v59, %v8147_v27  ;;  %v2134_v0 = vsel %vm2127_vm10, %v2130_v20, %v2133_v31  ;;  %v2029_v55 = vsel %vm2027_vm8, %v2028_v57, %v5735_v34  ;;  %v8594_v38 = vpop.xlane.xlu1 %807 }
 0x1e1   : > { %v8578_v42 = vshrl.u32 %v2405_v41, 30  ;;  %v8580_v53 = vand.u32 31, %v2564_v26  ;;  %v2026_v45 = vsel %vm2024_vm7, %v5733_v8, %v2025_v51  ;;  %v8587_v19 = vsel %vm2138_vm14, %v2222_v23, %v10820_v44  ;;  %10825 = vst [vmem:[#allocation108_spill] sm:$0xff] %v8594_v38 }
 0x1e2   : > { %v8590_v32 = vmin.u32 %v2514_v2, %v8542_v37  ;;  %v8592_v39 = vand.u32 31, %v2668_v5  ;;  %3164 = vbcast.lane.b32.xlu1 %v3162_v14, 256  ;;  %3157 = vbcast.lane.b32.xlu0 %v3155_v56, 256  ;;  %v2325_v34 = vsel %vm2242_vm11, %v2324_v43, %v2323_v7  ;;  %v8601_v8 = vsel %vm8537_vm4, %v10813_v10, %v2221_v49  ;;  %v8626_v23 = vpop.xlane.xlu0 %810 }
 0x1e3   : > { %10823 = vst [vmem:[#allocation75_spill] sm:$0xff] %v8578_v42  ;;  %v10627_v31 = vand.u32 2147483647, %v8393_v21  ;;  %v10628_v20 = vand.u32 2147483647, %v8405_v30  ;;  %v8607_v2 = vsel %vm2124_vm5, nan, %v2134_v0  ;;  %v3176_v14 = vrot.slane %v10822_v59, %v8203_v40 }
 0x1e4   : > { %v8609_v57 = vand.u32 3, %v2333_v54  ;;  %v3169_v7 = vrot.slane %v10822_v59, %v8175_v4  ;;  %v8617_v41 = vsel %vm2023_vm6, %v2026_v45, %v2029_v55  ;;  %v2407_v51 = vshll.u32 %v8578_v42, 30  ;;  %10827 = vst [vmem:[#allocation110_spill] sm:$0xff] %v8626_v23  ;;  %v8638_v49 = vpop.xlane.xlu1 %813  ;;  %v6032_v0 = vld [vmem:[%s6079_s15 + $0x78] sm:$0xff]  ;;  %v10829_v55 = vld [vmem:[#allocation7_spill] sm:$0xff] }
 0x1e5   : > { %v8624_v44 = vsub.s32 32, %v8580_v53  ;;  %v8631_v43 = vsel %vm8520_vm3, %v10801_v50, %v2325_v34  ;;  %5736 = vcosq.f32 %v8601_v8  ;;  %v8636_v54 = vsub.s32 32, %v8592_v39  ;;  %10828 = vst [vmem:[#allocation111_spill] sm:$0xff] %v8638_v49  ;;  %v6033_v34 = vld [vmem:[%s6079_s15 + $0x70] sm:$0xff] }
 0x1e6   : > { %10826 = vst [vmem:[#allocation109_spill] sm:$0xff] %v8609_v57  ;;  %3178 = vbcast.lane.b32.xlu1 %v3176_v14, 256  ;;  %3171 = vbcast.lane.b32.xlu0 %v3169_v7, 256  ;;  %v8642_v56 = vand.u32 8388607, %v10627_v31  ;;  %v8650_v45 = vsub.f32 %v10829_v55, %v6032_v0  ;;  %v8654_v22 = vsub.f32 %v10830_v6, %v6033_v34  ;;  %v8656_v23 = vshrl.u32 %v2668_v5, 5  ;;  %v8675_v34 = vpop.xlane.xlu0 %816 }
 0x1e7   : > { %v8646_v52 = vand.u32 8388607, %v10628_v20  ;;  %v8660_v14 = vshll.u32 %v10677_v16, %v8592_v39  ;;  %v3190_v7 = vrot.slane %v10822_v59, %v8231_v1  ;;  %v3183_v31 = vrot.slane %v10822_v59, %v8234_v63  ;;  %10832 = vst [vmem:[#allocation7_spill] sm:$0xff] %v8675_v34 }
 0x1e8   : > { %v8667_v20 = vsub.s32 %v8524_v15, %v2407_v51  ;;  %v2676_v0 = vshll.u32 %v10662_v47, %v8592_v39  ;;  %v2679_v5 = vshll.u32 %v10663_v35, %v8592_v39  ;;  %v10831_v6 = vmov 920167782   ;;  %v8685_v17 = vpop.xlane.xlu1 %819 }
 0x1e9   : > { %v2579_v55 = vshrl.u32 %v10831_v6, %v8624_v44  ;;  %v2677_v49 = vshrl.u32 %v10663_v35, %v8636_v54  ;;  %v10833_v38 = vmov 2102212464   ;;  %v8681_v61 = vshrl.u32 %v2564_v26, 5  ;;  %10835 = vst [vmem:[#allocation4_spill] sm:$0xff] %v8685_v17 }
 0x1ea   : > { %v2682_v25 = vshll.u32 %v10833_v38, %v8592_v39  ;;  %v10834_v15 = vmov 1326507024   ;;  %3192 = vbcast.lane.b32.xlu1 %v3190_v7, 256  ;;  %3185 = vbcast.lane.b32.xlu0 %v3183_v31, 256  ;;  %v2570_v29 = vshrl.u32 %v10662_v47, %v8624_v44  ;;  %v2573_v34 = vshrl.u32 %v10663_v35, %v8624_v44  ;;  %v8707_v50 = vpop.xlane.xlu0 %822 }
 0x1eb   : > { %v2582_v51 = vshrl.u32 %v10834_v15, %v8624_v44  ;;  %v2578_v46 = vshll.u32 %v10833_v38, %v8580_v53  ;;  %v2763_v60 = vand.u32 2139095040, %v8654_v22  ;;  %v2576_v26 = vshrl.u32 %v10833_v38, %v8624_v44  ;;  %10836 = vst [vmem:[#allocation112_spill] sm:$0xff] %v8707_v50 }
 0x1ec   : > { %v2581_v13 = vshll.u32 %v10831_v6, %v8580_v53  ;;  %v3204_v31 = vrot.slane %v10822_v59, %v8269_v24  ;;  %v3197_v7 = vrot.slane %v10822_v59, %v8272_v48  ;;  %v2410_v17 = vsub.s32 0, %v8667_v20  ;;  %v8714_v28 = vpop.xlane.xlu1 %825 }
 0x1ed   : > { %v2569_v21 = vshll.u32 %v10677_v16, %v8580_v53  ;;  %v2572_v30 = vshll.u32 %v10662_v47, %v8580_v53  ;;  %v2580_v33 = vor.u32 %v2579_v55, %v2578_v46  ;;  %v2680_v42 = vshrl.u32 %v10833_v38, %v8636_v54  ;;  %10837 = vst [vmem:[#allocation113_spill] sm:$0xff] %v8714_v28 }
 0x1ee   : > { %v2560_v37 = vor.u32 8388608, %v8646_v52  ;;  %v2575_v62 = vshll.u32 %v10663_v35, %v8580_v53  ;;  %v2583_v59 = vor.u32 %v2582_v51, %v2581_v13  ;;  %3206 = vbcast.lane.b32.xlu1 %v3204_v31, 256  ;;  %3199 = vbcast.lane.b32.xlu0 %v3197_v7, 256  ;;  %v2686_v57 = vshrl.u32 %v10834_v15, %v8636_v54 }
 0x1ef   : > { %v8718_v3 = vor.u32 %v2570_v29, %v2569_v21  ;;  %v8720_v46 = vor.u32 %v2573_v34, %v2572_v30  ;;  %v2764_v55 = vshrl.u32 %v2763_v60, 23  ;;  %v8722_v50 = vpop.eup %5736  ;;  %vm2587_vm2 = vcmp.lt.s32.totalorder %v8681_v61, 4  ;;  %v8738_v30 = vpop.xlane.xlu0 %828 }
 0x1f0   : > { %v8724_v10 = vor.u32 %v2576_v26, %v2575_v62  ;;  %v3218_v13 = vrot.slane %v8530_v36, %v8206_v12  ;;  %v3211_v53 = vrot.slane %v8530_v36, %v8147_v27  ;;  %v5595_v52 = vmin.u32 %v2410_v17, %v8667_v20  ;;  %10838 = vst [vmem:[#allocation114_spill] sm:$0xff] %v8738_v30  ;;  %v8748_v26 = vpop.xlane.xlu1 %831 }
 0x1f1   : > { %v2683_v21 = vshrl.u32 %v10831_v6, %v8636_v54  ;;  %v2685_v60 = vshll.u32 %v10831_v6, %v8592_v39  ;;  %v2593_v62 = vsel %vm2587_vm2, %v2580_v33, 920167782  ;;  %v2674_v29 = vshrl.u32 %v10662_v47, %v8636_v54  ;;  %10839 = vst [vmem:[#allocation115_spill] sm:$0xff] %v8748_v26 }
 0x1f2   : > { %v8742_v34 = vor.u32 %v2677_v49, %v2676_v0  ;;  %v8744_v51 = vor.u32 %v2680_v42, %v2679_v5  ;;  %v2597_v17 = vsel %vm2587_vm2, %v2583_v59, 1326507024  ;;  %3220 = vbcast.lane.b32.xlu1 %v3218_v13, 256  ;;  %3213 = vbcast.lane.b32.xlu0 %v3211_v53, 256  ;;  %vm2584_vm11 = vcmp.lt.s32.totalorder %v8681_v61, 1 }
 0x1f3   : > { %v2687_v39 = vor.u32 %v2686_v57, %v2685_v60  ;;  %vm2586_vm13 = vcmp.lt.s32.totalorder %v8681_v61, 3  ;;  %v5610_v31 = vadd.s32 4294967169, %v2764_v55  ;;  %v2592_v49 = vsel %vm2584_vm11, %v8718_v3, %v8720_v46  ;;  %v8769_v13 = vpop.xlane.xlu0 %834 }
 0x1f4   : > { %v2594_v42 = vsel %vm2586_vm13, %v8724_v10, %v2593_v62  ;;  %v3232_v0 = vrot.slane %v8530_v36, %v8203_v40  ;;  %v3225_v57 = vrot.slane %v8530_v36, %v8175_v4  ;;  %v2412_v5 = vclz %v5595_v52  ;;  %10840 = vst [vmem:[#allocation116_spill] sm:$0xff] %v8769_v13  ;;  %v8775_v52 = vpop.xlane.xlu1 %837 }
 0x1f5   : > { %v2684_v7 = vor.u32 %v2683_v21, %v2682_v25  ;;  %v2596_v59 = vsel %vm2584_vm11, %v8720_v46, %v8724_v10  ;;  %v2598_v55 = vsel %vm2586_vm13, %v2580_v33, %v2597_v17  ;;  %v2664_v53 = vor.u32 8388608, %v8642_v56  ;;  %10841 = vst [vmem:[#allocation117_spill] sm:$0xff] %v8775_v52 }
 0x1f6   : > { %vm2688_vm15 = vcmp.lt.s32.totalorder %v8656_v23, 1  ;;  %vm2691_vm12 = vcmp.lt.s32.totalorder %v8656_v23, 4  ;;  %vm2585_vm10 = vcmp.lt.s32.totalorder %v8681_v61, 2  ;;  %3234 = vbcast.lane.b32.xlu1 %v3232_v0, 256  ;;  %3227 = vbcast.lane.b32.xlu0 %v3225_v57, 256  ;;  %v8778_v25 = vor.u32 %v2674_v29, %v8660_v14 }
 0x1f7   : > { %v2701_v33 = vsel %vm2691_vm12, %v2687_v39, 1326507024  ;;  %v2595_v21 = vsel %vm2585_vm10, %v2592_v49, %v2594_v42  ;;  %v2770_v56 = vadd.s32 1, %v5610_v31  ;;  %v2599_v60 = vsel %vm2585_vm10, %v2596_v59, %v2598_v55  ;;  %v8799_v31 = vpop.xlane.xlu0 %840 }
 0x1f8   : > { %v8786_v62 = vshll.u32 %v2560_v37, 8  ;;  %v3246_v17 = vrot.slane %v8530_v36, %v8231_v1  ;;  %v3239_v0 = vrot.slane %v8530_v36, %v8234_v63  ;;  %v5596_v14 = vadd.s32 4294967294, %v2412_v5  ;;  %10842 = vst [vmem:[#allocation118_spill] sm:$0xff] %v8799_v31  ;;  %v8810_v5 = vpop.xlane.xlu1 %843 }
 0x1f9   : > { %vm2690_vm3 = vcmp.lt.s32.totalorder %v8656_v23, 3  ;;  %v2697_v29 = vsel %vm2691_vm12, %v2684_v7, 920167782  ;;  %v2700_v39 = vsel %vm2688_vm15, %v8742_v34, %v8744_v51  ;;  %vm2020_vm5 = vweird.f32 %v10767_v18  ;;  %10843 = vst [vmem:[#allocation119_spill] sm:$0xff] %v8810_v5 }
 0x1fa   : > { %v2702_v37 = vsel %vm2690_vm3, %v2684_v7, %v2701_v33  ;;  %v8805_v49 = vmul.u32.u64.low %v8786_v62, %v2595_v21  ;;  %v8806_v42 = vmul.u32.u64.high %v8786_v62, %v2595_v21, %v8805_v49  ;;  %v2867_v57 = vand.u32 2139095040, %v8650_v45  ;;  %3248 = vbcast.lane.b32.xlu1 %v3246_v17, 256  ;;  %3241 = vbcast.lane.b32.xlu0 %v3239_v0, 256 }
 0x1fb   : > { %vm2689_vm14 = vcmp.lt.s32.totalorder %v8656_v23, 2  ;;  %v8814_v59 = vmul.u32.u64.low %v8786_v62, %v2599_v60  ;;  %v8815_v55 = vmul.u32.u64.high %v8786_v62, %v2599_v60, %v8814_v59  ;;  %vm2771_vm9 = vcmp.gt.s32.totalorder %v2770_v56, 0  ;;  %v8836_v31 = vpop.xlane.xlu0 %846 }
 0x1fc   : > { %v2696_v7 = vsel %vm2688_vm15, %v8778_v25, %v8742_v34  ;;  %v2698_v33 = vsel %vm2690_vm3, %v8744_v51, %v2697_v29  ;;  %v3260_v21 = vrot.slane %v8530_v36, %v8269_v24  ;;  %v3253_v17 = vrot.slane %v8530_v36, %v8272_v48  ;;  %10845 = vst [vmem:[#allocation120_spill] sm:$0xff] %v8836_v31  ;;  %v8844_v9 = vpop.xlane.xlu1 %849 }
 0x1fd   : > { %v10844_v60 = vsel %vm8537_vm4, 0, %v8587_v19  ;;  %vm5597_vm6 = vcmp.lt.s32.totalorder %v5596_v14, 0  ;;  %v2703_v59 = vsel %vm2689_vm14, %v2700_v39, %v2702_v37  ;;  %v8834_v5 = vshll.u32 %v2664_v53, 8  ;;  %10846 = vst [vmem:[#allocation121_spill] sm:$0xff] %v8844_v9 }
 0x1fe   : > { %v2229_v0 = vadd.s32 3, %v10844_v60  ;;  %5738 = vcosq.f32 %v8631_v43  ;;  %v2589_v29 = vsel %vm2587_vm2, %v8724_v10, 2102212464  ;;  %v2868_v36 = vshrl.u32 %v2867_v57, 23  ;;  %3262 = vbcast.lane.b32.xlu1 %v3260_v21, 256  ;;  %3255 = vbcast.lane.b32.xlu0 %v3253_v17, 256 }
 0x1ff   : > { %v8842_v52 = vsel %vm2771_vm9, %v2770_v56, 0  ;;  %v10847_v19 = vclz %v8590_v32  ;;  %v2693_v53 = vsel %vm2691_vm12, %v8744_v51, 2102212464  ;;  %v2699_v37 = vsel %vm2689_vm14, %v2696_v7, %v2698_v33  ;;  %v10848_v21 = vld [vmem:[#allocation77_spill] sm:$0xff]  ;;  %v8875_v33 = vpop.xlane.xlu0 %852 }
 0x200   : > { %v2568_v10 = vshrl.u32 %v10677_v16, %v8624_v44  ;;  %v8856_v56 = vmul.u32.u64.low %v8834_v5, %v2703_v59  ;;  %v8857_v57 = vmul.u32.u64.high %v8834_v5, %v2703_v59, %v8856_v56  ;;  %v3274_v17 = vrot.slane %v10848_v21, %v8206_v12  ;;  %10849 = vst [vmem:[#allocation77_spill] sm:$0xff] %v8875_v33  ;;  %v8883_v31 = vpop.xlane.xlu1 %855 }
 0x201   : > { %v5600_v39 = vadd.s32 4294967294, %v10847_v19  ;;  %v3267_v32 = vrot.slane %v10848_v21, %v8147_v27  ;;  %v8864_v60 = vsel %vm5597_vm6, 0, %v5596_v14  ;;  %v2590_v44 = vsel %vm2586_vm13, %v8720_v46, %v2589_v29  ;;  %10850 = vst [vmem:[#allocation122_spill] sm:$0xff] %v8883_v31 }
 0x202   : > { %v2588_v51 = vsel %vm2584_vm11, %v2568_v10, %v8718_v3  ;;  %v8873_v7 = vand.u32 31, %v8842_v52  ;;  %v8878_v59 = vmul.u32.u64.low %v8834_v5, %v2699_v37  ;;  %v8879_v19 = vmul.u32.u64.high %v8834_v5, %v2699_v37, %v8878_v59  ;;  %3276 = vbcast.lane.b32.xlu1 %v3274_v17, 256 }
 0x203   : > { %v2610_v14 = vadd.s32 1, %v8806_v42  ;;  %v5614_v56 = vadd.s32 4294967169, %v2868_v36  ;;  %3269 = vbcast.lane.b32.xlu0 %v3267_v32, 256  ;;  %v8888_v3 = vsel %vm2020_vm5, nan, %v8617_v41  ;;  %5740 = vsinq.f32 %v8631_v43  ;;  %v8911_v61 = vpop.xlane.xlu0 %858 }
 0x204   : > { %v2672_v46 = vshrl.u32 %v10677_v16, %v8636_v54  ;;  %vm2609_vm4 = vc.u32 %v8815_v55, %v8805_v49  ;;  %vm5601_vm0 = vcmp.lt.s32.totalorder %v5600_v39, 0  ;;  %v2591_v29 = vsel %vm2585_vm10, %v2588_v51, %v2590_v44  ;;  %10851 = vst [vmem:[#allocation123_spill] sm:$0xff] %v8911_v61  ;;  %v8917_v51 = vpop.xlane.xlu1 %861 }
 0x205   : > { %v3288_v36 = vrot.slane %v10848_v21, %v8203_v40  ;;  %v3281_v18 = vrot.slane %v10848_v21, %v8175_v4  ;;  %v2420_v41 = vsub.s32 4294967266, %v8864_v60  ;;  %v2694_v54 = vsel %vm2690_vm3, %v8742_v34, %v2693_v53  ;;  %10852 = vst [vmem:[#allocation124_spill] sm:$0xff] %v8917_v51 }
 0x206   : > { %v2692_v43 = vsel %vm2688_vm15, %v2672_v46, %v8778_v25  ;;  %v8909_v37 = vsub.s32 32, %v8873_v7  ;;  %5742 = vsinq.f32 %v8601_v8  ;;  %v8914_v10 = vand.u32 3, %v2229_v0 }
 0x207   : > { %v2611_v17 = vsel %vm2609_vm4, %v2610_v14, %v8806_v42  ;;  %v2874_v32 = vadd.s32 1, %v5614_v56  ;;  %3290 = vbcast.lane.b32.xlu1 %v3288_v36, 256  ;;  %3283 = vbcast.lane.b32.xlu0 %v3281_v18, 256  ;;  %v8921_v34 = vsel %vm5601_vm0, 0, %v5600_v39  ;;  %v2400_v53 = vadd.s32 %v8427_v11, %v8435_v58 }
 0x208   : > { %v2607_v44 = vmul.u32 %v8786_v62, %v2591_v29  ;;  %v8926_v8 = vpop.eup %5738  ;;  %v2416_v0 = vsub.s32 32, %v8864_v60  ;;  %v2695_v42 = vsel %vm2689_vm14, %v2692_v43, %v2694_v54  ;;  %v3302_v14 = vrot.slane %v10848_v21, %v8231_v1  ;;  %v8941_v62 = vpop.xlane.xlu0 %864 }
 0x209   : > { %v3295_v56 = vrot.slane %v10848_v21, %v8234_v63  ;;  %v2421_v39 = vadd.s32 127, %v2420_v41  ;;  %vm2713_vm7 = vc.u32 %v8857_v57, %v8878_v59  ;;  %v2787_v58 = vshrl.u32 %v10831_v6, %v8909_v37  ;;  %10853 = vst [vmem:[#allocation125_spill] sm:$0xff] %v8941_v62  ;;  %v8947_v36 = vpop.xlane.xlu1 %867 }
 0x20a   : > { %v8937_v11 = vadd.s32 %v2611_v17, %v2607_v44  ;;  %v2714_v23 = vadd.s32 1, %v8879_v19  ;;  %vm2875_vm8 = vcmp.gt.s32.totalorder %v2874_v32, 0  ;;  %v2790_v29 = vshrl.u32 %v10834_v15, %v8909_v37  ;;  %10854 = vst [vmem:[#allocation126_spill] sm:$0xff] %v8947_v36 }
 0x20b   : > { %3304 = vbcast.lane.b32.xlu1 %v3302_v14, 256  ;;  %3297 = vbcast.lane.b32.xlu0 %v3295_v56, 256  ;;  %v8950_v18 = vshrl.u32 %v8842_v52, 5  ;;  %v2778_v41 = vshrl.u32 %v10662_v47, %v8909_v37  ;;  %v2781_v43 = vshrl.u32 %v10663_v35, %v8909_v37  ;;  %v2786_v54 = vshll.u32 %v10833_v38, %v8873_v7 }
 0x20c   : > { %v2784_v17 = vshrl.u32 %v10833_v38, %v8909_v37  ;;  %v2789_v44 = vshll.u32 %v10831_v6, %v8873_v7  ;;  %v3316_v14 = vrot.slane %v10848_v21, %v8269_v24  ;;  %v3309_v52 = vrot.slane %v10848_v21, %v8272_v48  ;;  %v8973_v51 = vpop.xlane.xlu0 %870 }
 0x20d   : > { %v8966_v56 = vpop.eup %5740  ;;  %v2613_v25 = vadd.s32 536870912, %v8937_v11  ;;  %v2777_v46 = vshll.u32 %v10677_v16, %v8873_v7  ;;  %v2780_v36 = vshll.u32 %v10662_v47, %v8873_v7  ;;  %v2788_v62 = vor.u32 %v2787_v58, %v2786_v54  ;;  %10855 = vst [vmem:[#allocation127_spill] sm:$0xff] %v8973_v51  ;;  %v8978_v9 = vpop.xlane.xlu1 %873 }
 0x20e   : > { %v2422_v61 = vshll.u32 %v2421_v39, 23  ;;  %v2876_v31 = vsel %vm2875_vm8, %v2874_v32, 0  ;;  %v2783_v33 = vshll.u32 %v10663_v35, %v8873_v7  ;;  %v2791_v21 = vor.u32 %v2790_v29, %v2789_v44  ;;  %10856 = vst [vmem:[#allocation128_spill] sm:$0xff] %v8978_v9 }
 0x20f   : > { %3318 = vbcast.lane.b32.xlu1 %v3316_v14, 256  ;;  %3311 = vbcast.lane.b32.xlu0 %v3309_v52, 256  ;;  %v2715_v13 = vsel %vm2713_vm7, %v2714_v23, %v8879_v19  ;;  %v10857_v58 = vand.u32 2147483647, %v8654_v22  ;;  %v8986_v51 = vor.u32 %v2778_v41, %v2777_v46  ;;  %v8988_v39 = vor.u32 %v2781_v43, %v2780_v36 }
 0x210   : > { %v8990_v32 = vpop.eup %5742  ;;  %v8992_v7 = vor.u32 %v2784_v17, %v2783_v33  ;;  %vm2795_vm2 = vcmp.lt.s32.totalorder %v8950_v18, 4  ;;  %v3330_v29 = vrot.slane %v8888_v3, %v8206_v12  ;;  %v3323_v44 = vrot.slane %v8888_v3, %v8147_v27  ;;  %v9006_v41 = vpop.xlane.xlu0 %876 }
 0x211   : > { %v2767_v54 = vand.u32 8388607, %v10857_v58  ;;  %v2711_v19 = vmul.u32 %v8834_v5, %v2695_v42  ;;  %v9000_v23 = vshrl.u32 %v2613_v25, 30  ;;  %v9002_v46 = vand.u32 31, %v2876_v31  ;;  %10858 = vst [vmem:[#allocation129_spill] sm:$0xff] %v9006_v41  ;;  %v9014_v52 = vpop.xlane.xlu1 %879 }
 0x212   : > { %v2801_v36 = vsel %vm2795_vm2, %v2788_v62, 920167782  ;;  %v2417_v33 = vshll.u32 %v8667_v20, %v8864_v60  ;;  %v2418_v43 = vshrl.u32 %v2400_v53, %v2416_v0  ;;  %v9010_v17 = vor.u32 4788187, %v2422_v61  ;;  %10859 = vst [vmem:[#allocation130_spill] sm:$0xff] %v9014_v52 }
 0x213   : > { %v2805_v14 = vsel %vm2795_vm2, %v2791_v21, 1326507024  ;;  %3332 = vbcast.lane.b32.xlu1 %v3330_v29, 256  ;;  %3325 = vbcast.lane.b32.xlu0 %v3323_v44, 256  ;;  %v9016_v5 = vadd.s32 %v2715_v13, %v2711_v19  ;;  %v2768_v25 = vor.u32 8388608, %v2767_v54  ;;  %vm2792_vm11 = vcmp.lt.s32.totalorder %v8950_v18, 1 }
 0x214   : > { %vm2794_vm13 = vcmp.lt.s32.totalorder %v8950_v18, 3  ;;  %v2800_v20 = vsel %vm2792_vm11, %v8986_v51, %v8988_v39  ;;  %v3344_v61 = vrot.slane %v8888_v3, %v8203_v40  ;;  %v3337_v13 = vrot.slane %v8888_v3, %v8175_v4  ;;  %v9041_v58 = vpop.xlane.xlu0 %882 }
 0x215   : > { %v2802_v60 = vsel %vm2794_vm13, %v8992_v7, %v2801_v36  ;;  %v2615_v53 = vshll.u32 %v9000_v23, 30  ;;  %v9033_v0 = vsub.s32 32, %v9002_v46  ;;  %v2804_v42 = vsel %vm2792_vm11, %v8988_v39, %v8992_v7  ;;  %10860 = vst [vmem:[#allocation131_spill] sm:$0xff] %v9041_v58  ;;  %v9047_v19 = vpop.xlane.xlu1 %885 }
 0x216   : > { %v2806_v21 = vsel %vm2794_vm13, %v2788_v62, %v2805_v14  ;;  %vm2793_vm15 = vcmp.lt.s32.totalorder %v8950_v18, 2  ;;  %10861 = vst [vmem:[#allocation132_spill] sm:$0xff] %v9047_v19  ;;  %v9049_v36 = vor.u32 %v2418_v43, %v2417_v33  ;;  %v9057_v54 = vshll.u32 %v2768_v25, 8 }
 0x217   : > { %3346 = vbcast.lane.b32.xlu1 %v3344_v61, 256  ;;  %3339 = vbcast.lane.b32.xlu0 %v3337_v13, 256  ;;  %v2803_v14 = vsel %vm2793_vm15, %v2800_v20, %v2802_v60  ;;  %v2807_v29 = vsel %vm2793_vm15, %v2804_v42, %v2806_v21  ;;  %v3358_v44 = vrot.slane %v8888_v3, %v8231_v1  ;;  %v2717_v33 = vadd.s32 536870912, %v9016_v5 }
 0x218   : > { %v3351_v61 = vrot.slane %v8888_v3, %v8234_v63  ;;  %v9065_v43 = vsub.s32 %v8937_v11, %v2615_v53  ;;  %v9067_v13 = vshrl.u32 %v2876_v31, 5  ;;  %v2891_v20 = vshrl.u32 %v10831_v6, %v9033_v0  ;;  %v9071_v60 = vpop.xlane.xlu0 %888 }
 0x219   : > { %10862 = vst [vmem:[#allocation133_spill] sm:$0xff] %v9071_v60  ;;  %v2890_v25 = vshll.u32 %v10833_v38, %v9002_v46  ;;  %v2894_v42 = vshrl.u32 %v10834_v15, %v9033_v0  ;;  %v9078_v21 = vmul.u32.u64.low %v9057_v54, %v2803_v14  ;;  %v9079_v52 = vmul.u32.u64.high %v9057_v54, %v2803_v14, %v9078_v21  ;;  %v9082_v11 = vpop.xlane.xlu1 %891 }
 0x21a   : > { %10863 = vst [vmem:[#allocation134_spill] sm:$0xff] %v9082_v11  ;;  %v2882_v31 = vshrl.u32 %v10662_v47, %v9033_v0  ;;  %v2885_v53 = vshrl.u32 %v10663_v35, %v9033_v0  ;;  %v9089_v62 = vmul.u32.u64.low %v9057_v54, %v2807_v29  ;;  %v9090_v60 = vmul.u32.u64.high %v9057_v54, %v2807_v29, %v9089_v62 }
 0x21b   : > { %3360 = vbcast.lane.b32.xlu1 %v3358_v44, 256  ;;  %3353 = vbcast.lane.b32.xlu0 %v3351_v61, 256  ;;  %v2888_v15 = vshrl.u32 %v10833_v38, %v9033_v0  ;;  %v2893_v14 = vshll.u32 %v10831_v6, %v9002_v46  ;;  %v3372_v44 = vrot.slane %v8888_v3, %v8269_v24  ;;  %vm2235_vm12 = vcmp.eq.s32.totalorder %v8914_v10, 2 }
 0x21c   : > { %v3365_v61 = vrot.slane %v8888_v3, %v8272_v48  ;;  %v2618_v11 = vsub.s32 0, %v9065_v43  ;;  %v2881_v29 = vshll.u32 %v10677_v16, %v9002_v46  ;;  %v2884_v62 = vshll.u32 %v10662_v47, %v9002_v46  ;;  %v9106_v19 = vpop.xlane.xlu0 %894 }
 0x21d   : > { %v2892_v38 = vor.u32 %v2891_v20, %v2890_v25  ;;  %10864 = vst [vmem:[#allocation135_spill] sm:$0xff] %v9106_v19  ;;  %vm2232_vm10 = vcmp.eq.s32.totalorder %v8914_v10, 0  ;;  %v10865_v6 = vand.u32 2147483647, %v8650_v45  ;;  %v2887_v3 = vshll.u32 %v10663_v35, %v9002_v46  ;;  %v9116_v26 = vpop.xlane.xlu1 %897 }
 0x21e   : > { %v2895_v41 = vor.u32 %v2894_v42, %v2893_v14  ;;  %v2797_v9 = vsel %vm2795_vm2, %v8992_v7, 2102212464  ;;  %10866 = vst [vmem:[#allocation136_spill] sm:$0xff] %v9116_v26  ;;  %v9118_v47 = vshrl.u32 %v2717_v33, 30  ;;  %v9120_v20 = vor.u32 %v2882_v31, %v2881_v29 }
 0x21f   : > { %v2871_v58 = vand.u32 8388607, %v10865_v6  ;;  %3374 = vbcast.lane.b32.xlu1 %v3372_v44, 256  ;;  %3367 = vbcast.lane.b32.xlu0 %v3365_v61, 256  ;;  %v9122_v25 = vor.u32 %v2885_v53, %v2884_v62  ;;  %v2776_v6 = vshrl.u32 %v10677_v16, %v8909_v37  ;;  %v9126_v19 = vor.u32 %v2888_v15, %v2887_v3 }
 0x220   : > { %vm2899_vm3 = vcmp.lt.s32.totalorder %v9067_v13, 4  ;;  %v3386_v35 = vrot.slane %v8607_v2, %v8206_v12  ;;  %v3379_v7 = vrot.slane %v8607_v2, %v8147_v27  ;;  %v5603_v46 = vmin.u32 %v2618_v11, %v9065_v43  ;;  %v9142_v31 = vpop.xlane.xlu0 %900 }
 0x221   : > { %v2905_v33 = vsel %vm2899_vm3, %v2892_v38, 920167782  ;;  %v2796_v42 = vsel %vm2792_vm11, %v2776_v6, %v8986_v51  ;;  %v2798_v37 = vsel %vm2794_vm13, %v8988_v39, %v2797_v9  ;;  %10867 = vst [vmem:[#allocation137_spill] sm:$0xff] %v9142_v31  ;;  %v2426_v53 = vcvt.s32.f32 %v9049_v36  ;;  %v9149_v14 = vpop.xlane.xlu1 %903  ;;  %v10869_v39 = vld [vmem:[#allocation41_spill] sm:$0xff] }
 0x222   : > { %vm2896_vm5 = vcmp.lt.s32.totalorder %v9067_v13, 1  ;;  %v2909_v11 = vsel %vm2899_vm3, %v2895_v41, 1326507024  ;;  %v2818_v15 = vadd.s32 1, %v9079_v52  ;;  %10868 = vst [vmem:[#allocation138_spill] sm:$0xff] %v9149_v14  ;;  %v2872_v51 = vor.u32 8388608, %v2871_v58 }
 0x223   : > { %3388 = vbcast.lane.b32.xlu1 %v3386_v35, 256  ;;  %3381 = vbcast.lane.b32.xlu0 %v3379_v7, 256  ;;  %vm2898_vm14 = vcmp.lt.s32.totalorder %v9067_v13, 3  ;;  %v2904_v9 = vsel %vm2896_vm5, %v9120_v20, %v9122_v25  ;;  %vm2817_vm9 = vc.u32 %v9090_v60, %v9078_v21  ;;  %vm2228_vm6 = vweird.f32 %v10869_v39 }
 0x224   : > { %v2906_v41 = vsel %vm2898_vm14, %v9126_v19, %v2905_v33  ;;  %v2799_v36 = vsel %vm2793_vm15, %v2796_v42, %v2798_v37  ;;  %v3400_v58 = vrot.slane %v8607_v2, %v8203_v40  ;;  %v3393_v44 = vrot.slane %v8607_v2, %v8175_v4  ;;  %v9175_v6 = vpop.xlane.xlu0 %906 }
 0x225   : > { %v2719_v61 = vshll.u32 %v9118_v47, 30  ;;  %v2620_v29 = vclz %v5603_v46  ;;  %v2908_v62 = vsel %vm2896_vm5, %v9122_v25, %v9126_v19  ;;  %v2910_v3 = vsel %vm2898_vm14, %v2892_v38, %v2909_v11  ;;  %10870 = vst [vmem:[#allocation41_spill] sm:$0xff] %v9175_v6  ;;  %v10873_v46 = vld [vmem:[#allocation66_spill] sm:$0xff]  ;;  %v9187_v37 = vpop.xlane.xlu1 %909 }
 0x226   : > { %v10871_v18 = vxor.u32 2147483648, %v8722_v50  ;;  %v10872_v7 = vsub.s32 4294967266, %v8921_v34  ;;  %vm2346_vm4 = vcmp.lt.s32.totalorder %v10873_v46, 0  ;;  %vm2897_vm0 = vcmp.lt.s32.totalorder %v9067_v13, 2  ;;  %10874 = vst [vmem:[#allocation66_spill] sm:$0xff] %v9187_v37 }
 0x227   : > { %v2819_v42 = vsel %vm2817_vm9, %v2818_v15, %v9079_v52  ;;  %3402 = vbcast.lane.b32.xlu1 %v3400_v58, 256  ;;  %3395 = vbcast.lane.b32.xlu0 %v3393_v44, 256  ;;  %v10875_v38 = vxor.u32 2147483648, %v8990_v32  ;;  %v2815_v14 = vmul.u32 %v9057_v54, %v2799_v36  ;;  %v2911_v52 = vsel %vm2897_vm0, %v2908_v62, %v2910_v3  ;;  %v10880_v36 = vld [vmem:[#allocation87_spill] sm:$0xff] }
 0x228   : > { %v2237_v35 = vsel %vm2235_vm12, %v10871_v18, %v8990_v32  ;;  %v2525_v33 = vadd.s32 127, %v10872_v7  ;;  %v10876_v18 = vand.u32 2147483647, %v9010_v17  ;;  %v2907_v7 = vsel %vm2897_vm0, %v2904_v9, %v2906_v41  ;;  %v9214_v9 = vpop.xlane.xlu0 %912  ;;  %v10879_v41 = vld [vmem:[#allocation89_spill] sm:$0xff] }
 0x229   : > { %v2234_v11 = vsel %vm2232_vm10, %v8722_v50, %v10875_v38  ;;  %v9201_v15 = vshll.u32 %v2872_v51, 8  ;;  %v3414_v32 = vrot.slane %v8607_v2, %v8231_v1  ;;  %v3407_v58 = vrot.slane %v8607_v2, %v8234_v63  ;;  %v10877_v50 = vld [vmem:[#allocation109_spill] sm:$0xff]  ;;  %v9223_v38 = vpop.xlane.xlu1 %915 }
 0x22a   : > { %v2427_v6 = vmul.f32 %v2426_v53, %v10876_v18  ;;  %vm2339_vm7 = vcmp.eq.s32.totalorder %v10877_v50, 2  ;;  %vm2231_vm8 = vcmp.lt.s32.totalorder %v8914_v10, 2  ;;  %v9210_v17 = vsub.s32 %v9016_v5, %v2719_v61  ;;  %10878 = vst [vmem:[#allocation109_spill] sm:$0xff] %v9214_v9  ;;  %10881 = vst [vmem:[#allocation89_spill] sm:$0xff] %v9223_v38 }
 0x22b   : > { %v5604_v53 = vadd.s32 4294967294, %v2620_v29  ;;  %v9212_v54 = vadd.s32 %v2819_v42, %v2815_v14  ;;  %v2238_v51 = vsel %vm2231_vm8, %v2234_v11, %v2237_v35  ;;  %v2504_v44 = vadd.s32 %v10880_v36, %v10879_v41  ;;  %3416 = vbcast.lane.b32.xlu1 %v3414_v32, 256  ;;  %3409 = vbcast.lane.b32.xlu0 %v3407_v58, 256 }
 0x22c   : > { %v9219_v62 = vmul.u32.u64.low %v9201_v15, %v2907_v7  ;;  %v9220_v3 = vmul.u32.u64.high %v9201_v15, %v2907_v7, %v9219_v62  ;;  %v2526_v10 = vshll.u32 %v2525_v33, 23  ;;  %v2428_v5 = vxor.u32 2147483648, %v2427_v6  ;;  %v9247_v58 = vpop.xlane.xlu0 %918 }
 0x22d   : > { %v9226_v14 = vmul.u32.u64.low %v9201_v15, %v2911_v52  ;;  %v9227_v61 = vmul.u32.u64.high %v9201_v15, %v2911_v52, %v9226_v14  ;;  %v10882_v29 = vsub.s32 32, %v8921_v34  ;;  %v10883_v42 = vand.u32 2147483647, %v10873_v46  ;;  %10886 = vst [vmem:[#allocation87_spill] sm:$0xff] %v9247_v58  ;;  %v9256_v39 = vpop.permute.xlu1 %2989 }
 0x22e   : > { %v3428_v18 = vrot.slane %v8607_v2, %v8269_v24  ;;  %v3421_v33 = vrot.slane %v8607_v2, %v8272_v48  ;;  %v9243_v7 = vsel %vm2228_vm6, nan, %v2238_v51  ;;  %v2722_v52 = vsub.s32 0, %v9210_v17 }
 0x22f   : > { %v2522_v35 = vshrl.u32 %v2504_v44, %v10882_v29  ;;  %vm9233_vm2 = vcmp.le.f32.partialorder %v10883_v42, 0.7853982  ;;  %vm5605_vm11 = vcmp.lt.s32.totalorder %v5604_v53, 0  ;;  %v2821_v32 = vadd.s32 536870912, %v9212_v54  ;;  %v10887_v44 = vld [vmem:[#allocation104_spill] sm:$0xff] }
 0x230   : > { %v2337_v41 = vxor.u32 2147483648, %v8966_v56  ;;  %v2340_v36 = vxor.u32 2147483648, %v8926_v8  ;;  %v2521_v14 = vshll.u32 %v10887_v44, %v8921_v34  ;;  %v2901_v2 = vsel %vm2899_vm3, %v9126_v19, 2102212464  ;;  %3430 = vbcast.lane.b32.xlu1 %v3428_v18, 256  ;;  %3423 = vbcast.lane.b32.xlu0 %v3421_v33, 256 }
 0x231   : > { %v2527_v51 = vor.u32 4788187, %v2526_v10  ;;  %v2429_v29 = vsel %vm2346_vm4, %v2428_v5, %v2427_v6  ;;  %v2880_v42 = vshrl.u32 %v10677_v16, %v9033_v0  ;;  %v9263_v38 = vsel %vm5605_vm11, 0, %v5604_v53  ;;  %v9278_v53 = vpop.permute.xlu0 %2996  ;;  %v9288_v18 = vpop.permute.xlu1 %3003 }
 0x232   : > { %v2523_v58 = vor.u32 %v2522_v35, %v2521_v14  ;;  %v3442_v34 = vrot.slane %v9243_v7, %v8206_v12  ;;  %v3435_v19 = vrot.slane %v9243_v7, %v8147_v27  ;;  %v6049_v44 = vmov 0  }
 0x233   : > { %5703 = vset.pattern.permute.xlu1 %v6049_v44  ;;  %5702 = vset.pattern.permute.xlu0 %v6049_v44  ;;  %v5607_v10 = vmin.u32 %v2722_v52, %v9210_v17  ;;  %v2900_v6 = vsel %vm2896_vm5, %v2880_v42, %v9120_v20  ;;  %v2902_v16 = vsel %vm2898_vm14, %v9122_v25, %v2901_v2  ;;  %v9276_v0 = vshrl.u32 %v2821_v32, 30  ;;  %v10888_v32 = vld [vmem:[#allocation75_spill] sm:$0xff] }
 0x234   : > { %vm2336_vm13 = vcmp.eq.s32.totalorder %v10877_v50, 0  ;;  %v2341_v5 = vsel %vm2339_vm7, %v2340_v36, %v8966_v56  ;;  %v2432_v35 = vsel %vm9233_vm2, %v10873_v46, %v2429_v29  ;;  %v2922_v20 = vadd.s32 1, %v9220_v3  ;;  %3444 = vbcast.lane.b32.xlu1 %v3442_v34, 256  ;;  %3437 = vbcast.lane.b32.xlu0 %v3435_v19, 256 }
 0x235   : > { %v2338_v25 = vsel %vm2336_vm13, %v8926_v8, %v2337_v41  ;;  %v2528_v33 = vand.u32 2147483647, %v2527_v51  ;;  %v2628_v52 = vsub.s32 4294967266, %v9263_v38  ;;  %vm2921_vm15 = vc.u32 %v9227_v61, %v9219_v62  ;;  %v9302_v51 = vpop.permute.xlu0 %3017  ;;  %v9305_v34 = vpop.permute.xlu1 %3010 }
 0x236   : > { %v2430_v56 = vsub.s32 4, %v10888_v32  ;;  %v2903_v36 = vsel %vm2897_vm0, %v2900_v6, %v2902_v16  ;;  %v3456_v14 = vrot.slane %v9243_v7, %v8203_v40  ;;  %v3449_v2 = vrot.slane %v9243_v7, %v8175_v4 }
 0x237   : > { %v2530_v29 = vcvt.s32.f32 %v2523_v58  ;;  %5744 = vcosq.f32 %v2432_v35  ;;  %v2724_v8 = vclz %v5607_v10  ;;  %v2823_v41 = vshll.u32 %v9276_v0, 30 }
 0x238   : > { %5746 = vsinq.f32 %v2432_v35  ;;  %v2923_v42 = vsel %vm2921_vm15, %v2922_v20, %v9220_v3  ;;  %3458 = vbcast.lane.b32.xlu1 %v3456_v14, 256  ;;  %3451 = vbcast.lane.b32.xlu0 %v3449_v2, 256  ;;  %vm2335_vm12 = vcmp.lt.s32.totalorder %v10877_v50, 2  ;;  %v2629_v19 = vadd.s32 127, %v2628_v52 }
 0x239   : > { %v2531_v13 = vmul.f32 %v2530_v29, %v2528_v33  ;;  %v2919_v44 = vmul.u32 %v9201_v15, %v2903_v36  ;;  %v2342_v58 = vsel %vm2335_vm12, %v2338_v25, %v2341_v5  ;;  %v2431_v10 = vsel %vm2346_vm4, %v2430_v56, %v10888_v32  ;;  %v9322_v15 = vpop.permute.xlu0 %3031  ;;  %v10889_v5 = vld [vmem:[#allocation38_spill] sm:$0xff]  ;;  %v9325_v25 = vpop.permute.xlu1 %3024 }
 0x23a   : > { %v3470_v6 = vrot.slane %v9243_v7, %v8231_v1  ;;  %v3463_v3 = vrot.slane %v9243_v7, %v8234_v63  ;;  %v5608_v16 = vadd.s32 4294967294, %v2724_v8  ;;  %v2624_v35 = vsub.s32 32, %v9263_v38 }
 0x23b   : > { %v9317_v20 = vadd.s32 %v2923_v42, %v2919_v44  ;;  %v9320_v50 = vsub.s32 %v9212_v54, %v2823_v41  ;;  %vm2332_vm10 = vweird.f32 %v10889_v5  ;;  %v2532_v33 = vxor.u32 2147483648, %v2531_v13  ;;  %v10890_v41 = vld [vmem:[#allocation59_spill] sm:$0xff] }
 0x23c   : > { %3472 = vbcast.lane.b32.xlu1 %v3470_v6, 256  ;;  %3465 = vbcast.lane.b32.xlu0 %v3463_v3, 256  ;;  %v2433_v52 = vsel %vm9233_vm2, 0, %v2431_v10  ;;  %v2608_v32 = vadd.s32 %v8805_v49, %v8815_v55  ;;  %v2630_v56 = vshll.u32 %v2629_v19, 23  ;;  %v9331_v36 = vsel %vm2332_vm10, nan, %v2342_v58 }
 0x23d   : > { %v3484_v54 = vrot.slane %v9243_v7, %v8269_v24  ;;  %v3477_v14 = vrot.slane %v9243_v7, %v8272_v48  ;;  %vm5609_vm3 = vcmp.lt.s32.totalorder %v5608_v16, 0  ;;  %v2925_v29 = vadd.s32 536870912, %v9317_v20  ;;  %v9339_v11 = vpop.permute.xlu0 %3045  ;;  %v9342_v55 = vpop.permute.xlu1 %3038 }
 0x23e   : > { %v2626_v2 = vshrl.u32 %v2608_v32, %v2624_v35  ;;  %v2826_v8 = vsub.s32 0, %v9320_v50  ;;  %vm2450_vm5 = vcmp.lt.s32.totalorder %v10890_v41, 0  ;;  %v2437_v49 = vadd.s32 3, %v2433_v52 }
 0x23f   : > { %v2533_v19 = vsel %vm2450_vm5, %v2532_v33, %v2531_v13  ;;  %v2625_v7 = vshll.u32 %v9065_v43, %v9263_v38  ;;  %v2631_v44 = vor.u32 4788187, %v2630_v56  ;;  %v9348_v10 = vsel %vm5609_vm3, 0, %v5608_v16 }
 0x240   : > { %3486 = vbcast.lane.b32.xlu1 %v3484_v54, 256  ;;  %3479 = vbcast.lane.b32.xlu0 %v3477_v14, 256  ;;  %v3498_v6 = vrot.slane %v9331_v36, %v8206_v12  ;;  %v3491_v3 = vrot.slane %v9331_v36, %v8147_v27  ;;  %v10891_v35 = vand.u32 2147483647, %v10890_v41  ;;  %v9360_v33 = vshrl.u32 %v2925_v29, 30  ;;  %v10894_v29 = vld [vmem:[#allocation101_spill] sm:$0xff] }
 0x241   : > { %v5745_v42 = vpop.eup %5744  ;;  %v2627_v13 = vor.u32 %v2626_v2, %v2625_v7  ;;  %v5611_v43 = vmin.u32 %v2826_v8, %v9320_v50  ;;  %v9363_v38 = vpop.permute.xlu0 %3059  ;;  %v2438_v52 = vand.u32 3, %v2437_v49  ;;  %v2732_v14 = vsub.s32 4294967266, %v9348_v10 }
 0x242   : > { %v5747_v58 = vpop.eup %5746  ;;  %vm9356_vm14 = vcmp.le.f32.partialorder %v10891_v35, 0.7853982  ;;  %v9368_v32 = vpop.permute.xlu1 %3052  ;;  %v2444_v54 = vxor.u32 2147483648, %v5745_v42  ;;  %v2632_v2 = vand.u32 2147483647, %v2631_v44  ;;  %v2534_v7 = vsub.s32 4, %v10894_v29 }
 0x243   : > { %v2536_v16 = vsel %vm9356_vm14, %v10890_v41, %v2533_v19  ;;  %v2441_v56 = vxor.u32 2147483648, %v5747_v58  ;;  %v3512_v8 = vrot.slane %v9331_v36, %v8203_v40  ;;  %v3505_v35 = vrot.slane %v9331_v36, %v8175_v4 }
 0x244   : > { %3500 = vbcast.lane.b32.xlu1 %v3498_v6, 256  ;;  %3493 = vbcast.lane.b32.xlu0 %v3491_v3, 256  ;;  %5748 = vcosq.f32 %v2536_v16  ;;  %v2634_v19 = vcvt.s32.f32 %v2627_v13  ;;  %v2927_v49 = vshll.u32 %v9360_v33, 30  ;;  %v2828_v9 = vclz %v5611_v43 }
 0x245   : > { %v9377_v6 = vpop.permute.xlu0 %3073  ;;  %5750 = vsinq.f32 %v2536_v16  ;;  %vm2440_vm9 = vcmp.eq.s32.totalorder %v2438_v52, 0  ;;  %vm2443_vm6 = vcmp.eq.s32.totalorder %v2438_v52, 2  ;;  %v2733_v31 = vadd.s32 127, %v2732_v14 }
 0x246   : > { %v9379_v3 = vpop.permute.xlu1 %3066  ;;  %v2442_v44 = vsel %vm2440_vm9, %v5745_v42, %v2441_v56  ;;  %v2445_v37 = vsel %vm2443_vm6, %v2444_v54, %v5747_v58  ;;  %v2635_v26 = vmul.f32 %v2634_v19, %v2632_v2  ;;  %v2535_v13 = vsel %vm2450_vm5, %v2534_v7, %v10894_v29 }
 0x247   : > { %v3526_v43 = vrot.slane %v9331_v36, %v8231_v1  ;;  %v3519_v16 = vrot.slane %v9331_v36, %v8234_v63  ;;  %vm2439_vm4 = vcmp.lt.s32.totalorder %v2438_v52, 2  ;;  %v2728_v30 = vsub.s32 32, %v9348_v10 }
 0x248   : > { %3514 = vbcast.lane.b32.xlu1 %v3512_v8, 256  ;;  %3507 = vbcast.lane.b32.xlu0 %v3505_v35, 256  ;;  %v9390_v8 = vsub.s32 %v9317_v20, %v2927_v49  ;;  %v5612_v42 = vadd.s32 4294967294, %v2828_v9  ;;  %v2446_v56 = vsel %vm2439_vm4, %v2442_v44, %v2445_v37  ;;  %v2537_v14 = vsel %vm9356_vm14, 0, %v2535_v13 }
 0x249   : > { %v9392_v58 = vpop.permute.xlu0 %3087  ;;  %v2712_v2 = vadd.s32 %v8878_v59, %v8857_v57  ;;  %v2734_v52 = vshll.u32 %v2733_v31, 23  ;;  %v2636_v29 = vxor.u32 2147483648, %v2635_v26  ;;  %vm2436_vm0 = vweird.f32 %v10873_v46  ;;  %v10895_v57 = vld [vmem:[#allocation3_spill] sm:$0xff] }
 0x24a   : > { %v9394_v54 = vpop.permute.xlu1 %3080  ;;  %v3540_v9 = vrot.slane %v9331_v36, %v8269_v24  ;;  %v3533_v37 = vrot.slane %v9331_v36, %v8272_v48  ;;  %v9405_v20 = vsel %vm2436_vm0, nan, %v2446_v56  ;;  %v2930_v35 = vsub.s32 0, %v9390_v8 }
 0x24b   : > { %v2730_v7 = vshrl.u32 %v2712_v2, %v2728_v30  ;;  %vm5613_vm7 = vcmp.lt.s32.totalorder %v5612_v42, 0  ;;  %v2541_v19 = vadd.s32 3, %v2537_v14  ;;  %vm2554_vm8 = vcmp.lt.s32.totalorder %v10895_v57, 0  ;;  %v10902_v14 = vld [vmem:[#allocation5_spill] sm:$0xff] }
 0x24c   : > { %3528 = vbcast.lane.b32.xlu1 %v3526_v43, 256  ;;  %3521 = vbcast.lane.b32.xlu0 %v3519_v16, 256  ;;  %v2729_v46 = vshll.u32 %v9210_v17, %v9348_v10  ;;  %v2735_v36 = vor.u32 4788187, %v2734_v52  ;;  %v2637_v30 = vsel %vm2554_vm8, %v2636_v29, %v2635_v26  ;;  %v9417_v44 = vsel %vm5613_vm7, 0, %v5612_v42 }
 0x24d   : > { %v9408_v5 = vpop.permute.xlu0 %3101  ;;  %v3554_v13 = vrot.slane %v9405_v20, %v8206_v12  ;;  %v3547_v43 = vrot.slane %v9405_v20, %v8147_v27  ;;  %v10896_v56 = vand.u32 2147483647, %v10895_v57  ;;  %v5615_v17 = vmin.u32 %v2930_v35, %v9390_v8 }
 0x24e   : > { %v9411_v59 = vpop.permute.xlu1 %3094  ;;  %v5749_v31 = vpop.eup %5748  ;;  %v2731_v16 = vor.u32 %v2730_v7, %v2729_v46  ;;  %v2542_v26 = vand.u32 3, %v2541_v19  ;;  %v2638_v7 = vsub.s32 4, %v9000_v23  ;;  %v3568_v35 = vrot.slane %v9405_v20, %v8203_v40 }
 0x24f   : > { %v5751_v49 = vpop.eup %5750  ;;  %vm9425_vm2 = vcmp.le.f32.partialorder %v10896_v56, 0.7853982  ;;  %v2548_v29 = vxor.u32 2147483648, %v5749_v31  ;;  %v3561_v19 = vrot.slane %v9405_v20, %v8175_v4  ;;  %vm2540_vm12 = vweird.f32 %v10890_v41 }
 0x250   : > { %3542 = vbcast.lane.b32.xlu1 %v3540_v9, 256  ;;  %3535 = vbcast.lane.b32.xlu0 %v3533_v37, 256  ;;  %v2640_v42 = vsel %vm9425_vm2, %v10895_v57, %v2637_v30  ;;  %v2545_v52 = vxor.u32 2147483648, %v5751_v49  ;;  %v2736_v9 = vand.u32 2147483647, %v2735_v36  ;;  %v2836_v37 = vsub.s32 4294967266, %v9417_v44 }
 0x251   : > { %v9430_v10 = vpop.permute.xlu0 %3115  ;;  %v2738_v46 = vcvt.s32.f32 %v2731_v16  ;;  %5752 = vcosq.f32 %v2640_v42  ;;  %v2932_v30 = vclz %v5615_v17  ;;  %vm2544_vm11 = vcmp.eq.s32.totalorder %v2542_v26, 0 }
 0x252   : > { %10899 = vst [vmem:[#allocation104_spill] sm:$0xff] %v9430_v10  ;;  %v9435_v2 = vpop.permute.xlu1 %3108  ;;  %vm2547_vm13 = vcmp.eq.s32.totalorder %v2542_v26, 2  ;;  %5754 = vsinq.f32 %v2640_v42  ;;  %v2546_v36 = vsel %vm2544_vm11, %v5749_v31, %v2545_v52  ;;  %v2837_v10 = vadd.s32 127, %v2836_v37 }
 0x253   : > { %10900 = vst [vmem:[#allocation75_spill] sm:$0xff] %v9435_v2  ;;  %v2739_v28 = vmul.f32 %v2738_v46, %v2736_v9  ;;  %v2639_v2 = vsel %vm2554_vm8, %v2638_v7, %v9000_v23  ;;  %v3582_v16 = vrot.slane %v9405_v20, %v8231_v1  ;;  %v3575_v17 = vrot.slane %v9405_v20, %v8234_v63 }
 0x254   : > { %3556 = vbcast.lane.b32.xlu1 %v3554_v13, 256  ;;  %3549 = vbcast.lane.b32.xlu0 %v3547_v43, 256  ;;  %v2549_v43 = vsel %vm2547_vm13, %v2548_v29, %v5751_v49  ;;  %vm2543_vm15 = vcmp.lt.s32.totalorder %v2542_v26, 2  ;;  %v5616_v42 = vadd.s32 4294967294, %v2932_v30  ;;  %v2641_v23 = vsel %vm9425_vm2, 0, %v2639_v2 }
 0x255   : > { %v9443_v56 = vpop.permute.xlu0 %3129  ;;  %v2550_v31 = vsel %vm2543_vm15, %v2546_v36, %v2549_v43  ;;  %v2740_v52 = vxor.u32 2147483648, %v2739_v28  ;;  %v2816_v29 = vadd.s32 %v9078_v21, %v9090_v60  ;;  %v2838_v9 = vshll.u32 %v2837_v10, 23 }
 0x256   : > { %10901 = vst [vmem:[#allocation38_spill] sm:$0xff] %v9443_v56  ;;  %v9445_v13 = vpop.permute.xlu1 %3122  ;;  %v2832_v56 = vsub.s32 32, %v9417_v44  ;;  %v3596_v26 = vrot.slane %v9405_v20, %v8269_v24  ;;  %v3589_v37 = vrot.slane %v9405_v20, %v8272_v48  ;;  %v9468_v7 = vsel %vm2540_vm12, nan, %v2550_v31 }
 0x257   : > { %vm5617_vm10 = vcmp.lt.s32.totalorder %v5616_v42, 0  ;;  %vm2658_vm3 = vcmp.lt.s32.totalorder %v10902_v14, 0  ;;  %v2645_v2 = vadd.s32 3, %v2641_v23  ;;  %v2833_v41 = vshll.u32 %v9320_v50, %v9417_v44 }
 0x258   : > { %3570 = vbcast.lane.b32.xlu1 %v3568_v35, 256  ;;  %3563 = vbcast.lane.b32.xlu0 %v3561_v19, 256  ;;  %v2834_v19 = vshrl.u32 %v2816_v29, %v2832_v56  ;;  %v2741_v21 = vsel %vm2658_vm3, %v2740_v52, %v2739_v28  ;;  %v2839_v20 = vor.u32 4788187, %v2838_v9  ;;  %v9479_v36 = vsel %vm5617_vm10, 0, %v5616_v42 }
 0x259   : > { %v9455_v35 = vpop.permute.xlu0 %3143  ;;  %v3610_v56 = vrot.slane %v9468_v7, %v8206_v12  ;;  %v3603_v43 = vrot.slane %v9468_v7, %v8147_v27  ;;  %v2646_v44 = vand.u32 3, %v2645_v2  ;;  %v2940_v29 = vsub.s32 4294967266, %v9479_v36 }
 0x25a   : > { %v9457_v49 = vpop.permute.xlu1 %3136  ;;  %v2835_v28 = vor.u32 %v2834_v19, %v2833_v41  ;;  %v2840_v9 = vand.u32 2147483647, %v2839_v20  ;;  %v3617_v19 = vrot.slane %v9468_v7, %v8175_v4  ;;  %vm2644_vm4 = vweird.f32 %v10895_v57 }
 0x25b   : > { %v5753_v60 = vpop.eup %5752  ;;  %vm2648_vm14 = vcmp.eq.s32.totalorder %v2646_v44, 0  ;;  %vm2651_vm9 = vcmp.eq.s32.totalorder %v2646_v44, 2  ;;  %vm2647_vm6 = vcmp.lt.s32.totalorder %v2646_v44, 2  ;;  %v3652_v44 = vrot.slane %v9468_v7, %v8269_v24 }
 0x25c   : > { %3584 = vbcast.lane.b32.xlu1 %v3582_v16, 256  ;;  %3577 = vbcast.lane.b32.xlu0 %v3575_v17, 256  ;;  %v5755_v10 = vpop.eup %5754  ;;  %v10903_v16 = vand.u32 2147483647, %v10902_v14  ;;  %v2652_v23 = vxor.u32 2147483648, %v5753_v60  ;;  %vm2762_vm0 = vcmp.lt.s32.totalorder %v8654_v22, 0  ;;  %vm2748_vm13 = vweird.f32 %v10902_v14 }
 0x25d   : > { %v9470_v46 = vpop.permute.xlu0 %3157  ;;  %v2649_v52 = vxor.u32 2147483648, %v5755_v10  ;;  %vm2866_vm15 = vcmp.lt.s32.totalorder %v8650_v45, 0 }
 0x25e   : > { %v9473_v30 = vpop.permute.xlu1 %3150  ;;  %vm9487_vm5 = vcmp.le.f32.partialorder %v10903_v16, 0.7853982 }
 0x25f   : > { %v2744_v50 = vsel %vm9487_vm5, %v10902_v14, %v2741_v21  ;;  %v2842_v21 = vcvt.s32.f32 %v2835_v28  ;;  %v2650_v20 = vsel %vm2648_vm14, %v5753_v60, %v2649_v52  ;;  %v3638_v28 = vrot.slane %v9468_v7, %v8231_v1 }
 0x260   : > { %3598 = vbcast.lane.b32.xlu1 %v3596_v26, 256  ;;  %3591 = vbcast.lane.b32.xlu0 %v3589_v37, 256  ;;  %v2742_v26 = vsub.s32 4, %v9118_v47  ;;  %v3624_v37 = vrot.slane %v9468_v7, %v8203_v40  ;;  %5756 = vcosq.f32 %v2744_v50  ;;  %vm2852_vm14 = vweird.f32 %v8654_v22 }
 0x261   : > { %v9491_v31 = vpop.permute.xlu0 %3171  ;;  %5758 = vsinq.f32 %v2744_v50  ;;  %v2843_v16 = vmul.f32 %v2842_v21, %v2840_v9  ;;  %v3631_v50 = vrot.slane %v9468_v7, %v8234_v63 }
 0x262   : > { %10906 = vst [vmem:[#allocation59_spill] sm:$0xff] %v9491_v31  ;;  %v9496_v42 = vpop.permute.xlu1 %3164  ;;  %v2743_v31 = vsel %vm2658_vm3, %v2742_v26, %v9118_v47  ;;  %v2920_v47 = vadd.s32 %v9219_v62, %v9227_v61  ;;  %v2937_v61 = vshll.u32 %v9390_v8, %v9479_v36 }
 0x264   : > { %3612 = vbcast.lane.b32.xlu1 %v3610_v56, 256  ;;  %3605 = vbcast.lane.b32.xlu0 %v3603_v43, 256  ;;  %v2653_v56 = vsel %vm2651_vm9, %v2652_v23, %v5755_v10  ;;  %v2941_v43 = vadd.s32 127, %v2940_v29  ;;  %v2745_v10 = vsel %vm9487_vm5, 0, %v2743_v31  ;;  %v2844_v23 = vxor.u32 2147483648, %v2843_v16 }
 0x265   : > { %v9504_v2 = vpop.permute.xlu0 %3185  ;;  %v3645_v29 = vrot.slane %v9468_v7, %v8272_v48  ;;  %v2749_v21 = vadd.s32 3, %v2745_v10 }
 0x266   : > { %10907 = vst [vmem:[#allocation101_spill] sm:$0xff] %v9504_v2  ;;  %v9506_v41 = vpop.permute.xlu1 %3178  ;;  %v2936_v2 = vsub.s32 32, %v9479_v36  ;;  %v2942_v52 = vshll.u32 %v2941_v43, 23  ;;  %v2845_v31 = vsel %vm2762_vm0, %v2844_v23, %v2843_v16  ;;  %v10909_v43 = vand.u32 2147483647, %v8654_v22 }
 0x267   : > { %10908 = vst [vmem:[#allocation3_spill] sm:$0xff] %v9506_v41 }
 0x268   : > { %3626 = vbcast.lane.b32.xlu1 %v3624_v37, 256  ;;  %3619 = vbcast.lane.b32.xlu0 %v3617_v19, 256  ;;  %v2654_v37 = vsel %vm2647_vm6, %v2650_v20, %v2653_v56  ;;  %v2938_v26 = vshrl.u32 %v2920_v47, %v2936_v2  ;;  %v2943_v57 = vor.u32 4788187, %v2942_v52  ;;  %vm9542_vm7 = vcmp.le.f32.partialorder %v10909_v43, 0.7853982 }
 0x269   : > { %v9516_v41 = vpop.permute.xlu0 %3199  ;;  %v2655_v9 = vsel %vm2644_vm4, nan, %v2654_v37  ;;  %v2750_v37 = vand.u32 3, %v2749_v21  ;;  %v2848_v8 = vsel %vm9542_vm7, %v8654_v22, %v2845_v31  ;;  %v2846_v52 = vsub.s32 4, %v9276_v0 }
 0x26a   : > { %v9518_v60 = vpop.permute.xlu1 %3192  ;;  %v5757_v62 = vpop.eup %5756  ;;  %v3666_v2 = vrot.slane %v2655_v9, %v8206_v12  ;;  %v3659_v20 = vrot.slane %v2655_v9, %v8147_v27  ;;  %v2939_v56 = vor.u32 %v2938_v26, %v2937_v61  ;;  %v2944_v47 = vand.u32 2147483647, %v2943_v57 }
 0x26b   : > { %v5759_v7 = vpop.eup %5758  ;;  %v2756_v10 = vxor.u32 2147483648, %v5757_v62  ;;  %v3680_v23 = vrot.slane %v2655_v9, %v8203_v40  ;;  %5760 = vcosq.f32 %v2848_v8  ;;  %vm2752_vm8 = vcmp.eq.s32.totalorder %v2750_v37, 0 }
 0x26c   : > { %3640 = vbcast.lane.b32.xlu1 %v3638_v28, 256  ;;  %3633 = vbcast.lane.b32.xlu0 %v3631_v50, 256  ;;  %v2753_v16 = vxor.u32 2147483648, %v5759_v7  ;;  %vm2755_vm2 = vcmp.eq.s32.totalorder %v2750_v37, 2  ;;  %5762 = vsinq.f32 %v2848_v8  ;;  %vm2751_vm11 = vcmp.lt.s32.totalorder %v2750_v37, 2 }
 0x26d   : > { %v9529_v19 = vpop.permute.xlu0 %3213  ;;  %v2757_v31 = vsel %vm2755_vm2, %v2756_v10, %v5759_v7  ;;  %v3701_v7 = vrot.slane %v2655_v9, %v8272_v48  ;;  %vm5164_vm2 = vcmask 1043459  }
 0x26e   : > { %v9532_v17 = vpop.permute.xlu1 %3206  ;;  %v2754_v61 = vsel %vm2752_vm8, %v5757_v62, %v2753_v16  ;;  %vm5162_vm8 = vcmask 1042434  }
 0x270   : > { %3654 = vbcast.lane.b32.xlu1 %v3652_v44, 256  ;;  %3647 = vbcast.lane.b32.xlu0 %v3645_v29, 256  ;;  %v3673_v44 = vrot.slane %v2655_v9, %v8175_v4  ;;  %v2946_v29 = vcvt.s32.f32 %v2939_v56  ;;  %v3687_v56 = vrot.slane %v2655_v9, %v8234_v63 }
 0x271   : > { %v9546_v50 = vpop.permute.xlu0 %3227 }
 0x272   : > { %v9551_v36 = vpop.permute.xlu1 %3220  ;;  %v2947_v57 = vmul.f32 %v2946_v29, %v2944_v47 }
 0x274   : > { %3668 = vbcast.lane.b32.xlu1 %v3666_v2, 256  ;;  %3661 = vbcast.lane.b32.xlu0 %v3659_v20, 256  ;;  %v2847_v2 = vsel %vm2762_vm0, %v2846_v52, %v9276_v0  ;;  %v3694_v20 = vrot.slane %v2655_v9, %v8231_v1  ;;  %v3708_v0 = vrot.slane %v2655_v9, %v8269_v24  ;;  %v10913_v9 = vand.u32 2147483647, %v8650_v45 }
 0x275   : > { %v9556_v26 = vpop.permute.xlu0 %3241  ;;  %v2849_v62 = vsel %vm9542_vm7, 0, %v2847_v2  ;;  %v5761_v52 = vpop.eup %5760  ;;  %vm2956_vm0 = vweird.f32 %v8650_v45  ;;  %vm5160_vm7 = vcmask 1041409  }
 0x276   : > { %10912 = vst [vmem:[#allocation5_spill] sm:$0xff] %v9556_v26  ;;  %v9558_v21 = vpop.permute.xlu1 %3234  ;;  %v2758_v26 = vsel %vm2751_vm11, %v2754_v61, %v2757_v31  ;;  %v2853_v37 = vadd.s32 3, %v2849_v62  ;;  %vm9585_vm12 = vcmp.le.f32.partialorder %v10913_v9, 0.7853982  ;;  %vm5166_vm11 = vcmask 1044484  }
 0x277   : > { %v2759_v16 = vsel %vm2748_vm13, nan, %v2758_v26  ;;  %vm5168_vm13 = vcmask 1045509  }
 0x278   : > { %3682 = vbcast.lane.b32.xlu1 %v3680_v23, 256  ;;  %3675 = vbcast.lane.b32.xlu0 %v3673_v44, 256  ;;  %v2948_v23 = vxor.u32 2147483648, %v2947_v57  ;;  %v5763_v44 = vpop.eup %5762  ;;  %v3722_v14 = vrot.slane %v2759_v16, %v8206_v12  ;;  %v3715_v29 = vrot.slane %v2759_v16, %v8147_v27  ;;  %v2854_v2 = vand.u32 3, %v2853_v37 }
 0x279   : > { %v9565_v43 = vpop.permute.xlu0 %3255  ;;  %v3736_v62 = vrot.slane %v2759_v16, %v8203_v40  ;;  %v3750_v9 = vrot.slane %v2759_v16, %v8231_v1 }
 0x27a   : > { %v9567_v8 = vpop.permute.xlu1 %3248  ;;  %v2949_v28 = vsel %vm2866_vm15, %v2948_v23, %v2947_v57  ;;  %v2857_v57 = vxor.u32 2147483648, %v5763_v44  ;;  %v2950_v23 = vsub.s32 4, %v9360_v33  ;;  %vm2856_vm10 = vcmp.eq.s32.totalorder %v2854_v2, 0 }
 0x27b   : > { %v2952_v31 = vsel %vm9585_vm12, %v8650_v45, %v2949_v28  ;;  %vm2859_vm3 = vcmp.eq.s32.totalorder %v2854_v2, 2  ;;  %vm2855_vm5 = vcmp.lt.s32.totalorder %v2854_v2, 2 }
 0x27c   : > { %3696 = vbcast.lane.b32.xlu1 %v3694_v20, 256  ;;  %3689 = vbcast.lane.b32.xlu0 %v3687_v56, 256  ;;  %v2860_v56 = vxor.u32 2147483648, %v5761_v52  ;;  %5764 = vcosq.f32 %v2952_v31  ;;  %v2858_v37 = vsel %vm2856_vm10, %v5761_v52, %v2857_v57  ;;  %vm5391_vm10 = vcmask 195712  }
 0x27d   : > { %v9574_v10 = vpop.permute.xlu0 %3269  ;;  %5766 = vsinq.f32 %v2952_v31 }
 0x27e   : > { %v9577_v47 = vpop.permute.xlu1 %3262 }
 0x280   : > { %3710 = vbcast.lane.b32.xlu1 %v3708_v0, 256  ;;  %3703 = vbcast.lane.b32.xlu0 %v3701_v7, 256  ;;  %v3729_v0 = vrot.slane %v2759_v16, %v8175_v4 }
 0x281   : > { %v9589_v61 = vpop.permute.xlu0 %3283 }
 0x282   : > { %10916 = vst [vmem:[#allocation139_spill] sm:$0xff] %v9589_v61  ;;  %v9594_v20 = vpop.permute.xlu1 %3276  ;;  %v3743_v61 = vrot.slane %v2759_v16, %v8234_v63 }
 0x283   : > { %10917 = vst [vmem:[#allocation140_spill] sm:$0xff] %v9594_v20 }
 0x284   : > { %3724 = vbcast.lane.b32.xlu1 %v3722_v14, 256  ;;  %3717 = vbcast.lane.b32.xlu0 %v3715_v29, 256  ;;  %v2861_v14 = vsel %vm2859_vm3, %v2860_v56, %v5763_v44  ;;  %v2951_v29 = vsel %vm2866_vm15, %v2950_v23, %v9360_v33  ;;  %v3764_v44 = vrot.slane %v2759_v16, %v8269_v24  ;;  %vm5170_vm15 = vcmask 1046534  }
 0x285   : > { %v9599_v7 = vpop.permute.xlu0 %3297  ;;  %v2862_v31 = vsel %vm2855_vm5, %v2858_v37, %v2861_v14  ;;  %v2953_v52 = vsel %vm9585_vm12, 0, %v2951_v29  ;;  %v3757_v33 = vrot.slane %v2759_v16, %v8272_v48  ;;  %vm5172_vm12 = vcmask 1047559  }
 0x286   : > { %10918 = vst [vmem:[#allocation141_spill] sm:$0xff] %v9599_v7  ;;  %v9601_v28 = vpop.permute.xlu1 %3290  ;;  %v2863_v57 = vsel %vm2852_vm14, nan, %v2862_v31  ;;  %v2957_v2 = vadd.s32 3, %v2953_v52  ;;  %vm5398_vm3 = vcmask 261312   ;;  %vm5405_vm5 = vcmask 326912  }
 0x287   : > { %v3771_v26 = vrot.slane %v2863_v57, %v8147_v27  ;;  %v3785_v31 = vrot.slane %v2863_v57, %v8175_v4  ;;  %vm5412_vm14 = vcmask 392512  }
 0x288   : > { %3738 = vbcast.lane.b32.xlu1 %v3736_v62, 256  ;;  %3731 = vbcast.lane.b32.xlu0 %v3729_v0, 256  ;;  %v5765_v62 = vpop.eup %5764  ;;  %v2958_v22 = vand.u32 3, %v2957_v2 }
 0x289   : > { %v9608_v20 = vpop.permute.xlu0 %3311  ;;  %v5767_v0 = vpop.eup %5766  ;;  %v2964_v29 = vxor.u32 2147483648, %v5765_v62 }
 0x28a   : > { %v9610_v7 = vpop.permute.xlu1 %3304  ;;  %v2961_v16 = vxor.u32 2147483648, %v5767_v0  ;;  %vm2960_vm9 = vcmp.eq.s32.totalorder %v2958_v22, 0  ;;  %vm2963_vm6 = vcmp.eq.s32.totalorder %v2958_v22, 2  ;;  %vm2959_vm4 = vcmp.lt.s32.totalorder %v2958_v22, 2 }
 0x28b   : > { %v2965_v2 = vsel %vm2963_vm6, %v2964_v29, %v5767_v0  ;;  %vm5426_vm6 = vcmask 523712  }
 0x28c   : > { %3752 = vbcast.lane.b32.xlu1 %v3750_v9, 256  ;;  %3745 = vbcast.lane.b32.xlu0 %v3743_v61, 256  ;;  %v3778_v61 = vrot.slane %v2863_v57, %v8206_v12  ;;  %v3792_v9 = vrot.slane %v2863_v57, %v8203_v40 }
 0x28d   : > { %v9617_v56 = vpop.permute.xlu0 %3325 }
 0x28e   : > { %10919 = vst [vmem:[#allocation142_spill] sm:$0xff] %v9617_v56  ;;  %v9619_v23 = vpop.permute.xlu1 %3318 }
 0x290   : > { %3766 = vbcast.lane.b32.xlu1 %v3764_v44, 256  ;;  %3759 = vbcast.lane.b32.xlu0 %v3757_v33, 256  ;;  %v2962_v33 = vsel %vm2960_vm9, %v5765_v62, %v2961_v16  ;;  %v3813_v62 = vrot.slane %v2863_v57, %v8272_v48  ;;  %v10927_v16 = vld [vmem:[#allocation9_spill] sm:$0xff]  ;;  %vm5419_vm9 = vcmask 458112  }
 0x291   : > { %v9623_v37 = vpop.permute.xlu0 %3339  ;;  %v921_v29 = vmul.f32 -0.1, %v10927_v16 }
 0x292   : > { %10920 = vst [vmem:[#allocation143_spill] sm:$0xff] %v9623_v37  ;;  %v9625_v14 = vpop.permute.xlu1 %3332  ;;  %v3806_v37 = vrot.slane %v2863_v57, %v8231_v1 }
 0x293   : > { %10921 = vst [vmem:[#allocation144_spill] sm:$0xff] %v9625_v14  ;;  %v2966_v14 = vsel %vm2959_vm4, %v2962_v33, %v2965_v2  ;;  %v10929_v33 = vld [vmem:[#allocation8_spill] sm:$0xff]  ;;  %vm5433_vm4 = vcmask 589312  }
 0x294   : > { %3780 = vbcast.lane.b32.xlu1 %v3778_v61, 256  ;;  %3773 = vbcast.lane.b32.xlu0 %v3771_v26, 256  ;;  %v3799_v61 = vrot.slane %v2863_v57, %v8234_v63  ;;  %v2967_v0 = vsel %vm2956_vm0, nan, %v2966_v14  ;;  %vm5440_vm0 = vcmask 654912  }
 0x295   : > { %v9629_v52 = vpop.permute.xlu0 %3353  ;;  %v3834_v45 = vrot.slane %v2967_v0, %v8206_v12 }
 0x296   : > { %10922 = vst [vmem:[#allocation145_spill] sm:$0xff] %v9629_v52  ;;  %v9631_v44 = vpop.permute.xlu1 %3346  ;;  %v10926_v52 = vld [vmem:[#allocation6_spill] sm:$0xff] }
 0x297   : > { %10923 = vst [vmem:[#allocation146_spill] sm:$0xff] %v9631_v44  ;;  %v920_v44 = vmul.f32 -0.1, %v10926_v52  ;;  %v3827_v52 = vrot.slane %v2967_v0, %v8147_v27  ;;  %v10932_v27 = vld [vmem:[#allocation12_spill] sm:$0xff] }
 0x298   : > { %3794 = vbcast.lane.b32.xlu1 %v3792_v9, 256  ;;  %3787 = vbcast.lane.b32.xlu0 %v3785_v31, 256  ;;  %v3820_v9 = vrot.slane %v2863_v57, %v8269_v24 }
 0x299   : > { %v9635_v26 = vpop.permute.xlu0 %3367  ;;  %v1048_v2 = vmul.f32 1.442695, %v920_v44  ;;  %v3841_v44 = vrot.slane %v2967_v0, %v8175_v4 }
 0x29a   : > { %10924 = vst [vmem:[#allocation147_spill] sm:$0xff] %v9635_v26  ;;  %v9637_v56 = vpop.permute.xlu1 %3360  ;;  %v10930_v26 = vld [vmem:[#allocation10_spill] sm:$0xff] }
 0x29b   : > { %10925 = vst [vmem:[#allocation148_spill] sm:$0xff] %v9637_v56  ;;  %v923_v56 = vmul.f32 -0.1, %v10930_v26  ;;  %5768 = vpow2.f32 %v1048_v2 }
 0x29c   : > { %3808 = vbcast.lane.b32.xlu1 %v3806_v37, 256  ;;  %3801 = vbcast.lane.b32.xlu0 %v3799_v61, 256  ;;  %v922_v37 = vmul.f32 -0.1, %v10929_v33  ;;  %v1050_v61 = vmul.f32 1.442695, %v921_v29  ;;  %v3848_v33 = vrot.slane %v2967_v0, %v8203_v40  ;;  %v3855_v40 = vrot.slane %v2967_v0, %v8234_v63 }
 0x29d   : > { %v9644_v31 = vpop.permute.xlu0 %3381  ;;  %v1054_v12 = vmul.f32 1.442695, %v923_v56  ;;  %v925_v29 = vmul.f32 -0.1, %v10932_v27 }
 0x29e   : > { %10928 = vst [vmem:[#allocation6_spill] sm:$0xff] %v9644_v31  ;;  %v9646_v22 = vpop.permute.xlu1 %3374  ;;  %v1052_v16 = vmul.f32 1.442695, %v922_v37  ;;  %5770 = vpow2.f32 %v1050_v61  ;;  %v10933_v37 = vld [vmem:[#allocation13_spill] sm:$0xff]  ;;  %v10934_v61 = vld [vmem:[#allocation14_spill] sm:$0xff] }
 0x29f   : > { %v926_v2 = vmul.f32 -0.1, %v10933_v37  ;;  %v1058_v4 = vmul.f32 1.442695, %v925_v29  ;;  %v927_v56 = vmul.f32 -0.1, %v10934_v61 }
 0x2a0   : > { %3822 = vbcast.lane.b32.xlu1 %v3820_v9, 256  ;;  %3815 = vbcast.lane.b32.xlu0 %v3813_v62, 256  ;;  %v10931_v9 = vld [vmem:[#allocation11_spill] sm:$0xff]  ;;  %5772 = vpow2.f32 %v1052_v16 }
 0x2a1   : > { %v9652_v57 = vpop.permute.xlu0 %3395  ;;  %v924_v62 = vmul.f32 -0.1, %v10931_v9  ;;  %5774 = vpow2.f32 %v1054_v12  ;;  %v1060_v16 = vmul.f32 1.442695, %v926_v2  ;;  %v1062_v63 = vmul.f32 1.442695, %v927_v56 }
 0x2a2   : > { %v9654_v14 = vpop.permute.xlu1 %3388  ;;  %v10937_v12 = vld [vmem:[#allocation16_spill] sm:$0xff]  ;;  %v10940_v56 = vld [vmem:[#allocation18_spill] sm:$0xff] }
 0x2a3   : > { %v929_v29 = vmul.f32 -0.1, %v10937_v12 }
 0x2a4   : > { %3836 = vbcast.lane.b32.xlu1 %v3834_v45, 256  ;;  %3829 = vbcast.lane.b32.xlu0 %v3827_v52, 256  ;;  %v1056_v45 = vmul.f32 1.442695, %v924_v62  ;;  %v3862_v52 = vrot.slane %v2967_v0, %v8231_v1  ;;  %v3876_v62 = vrot.slane %v2967_v0, %v8269_v24  ;;  %v3869_v1 = vrot.slane %v2967_v0, %v8272_v48 }
 0x2a5   : > { %v9660_v31 = vpop.permute.xlu0 %3409  ;;  %v5769_v61 = vpop.eup %5768 }
 0x2a6   : > { %v9662_v26 = vpop.permute.xlu1 %3402  ;;  %5776 = vpow2.f32 %v1056_v45  ;;  %v10939_v45 = vld [vmem:[#allocation17_spill] sm:$0xff]  ;;  %v4008_v24 = vmul.f32 %v5769_v61, %v9256_v39 }
 0x2a7   : > { %5778 = vpow2.f32 %v1058_v4  ;;  %v930_v2 = vmul.f32 -0.1, %v10939_v45  ;;  %v1066_v4 = vmul.f32 1.442695, %v929_v29  ;;  %v10942_v29 = vld [vmem:[#allocation20_spill] sm:$0xff] }
 0x2a8   : > { %3850 = vbcast.lane.b32.xlu1 %v3848_v33, 256  ;;  %3843 = vbcast.lane.b32.xlu0 %v3841_v44, 256  ;;  %v10936_v33 = vld [vmem:[#allocation15_spill] sm:$0xff]  ;;  %5780 = vpow2.f32 %v1060_v16  ;;  %v933_v61 = vmul.f32 -0.1, %v10942_v29 }
 0x2a9   : > { %v9668_v9 = vpop.permute.xlu0 %3423  ;;  %v928_v44 = vmul.f32 -0.1, %v10936_v33  ;;  %5782 = vpow2.f32 %v1062_v63  ;;  %v931_v33 = vmul.f32 -0.1, %v10940_v56  ;;  %v10941_v16 = vld [vmem:[#allocation19_spill] sm:$0xff] }
 0x2aa   : > { %10935 = vst [vmem:[#allocation9_spill] sm:$0xff] %v9668_v9  ;;  %v9670_v27 = vpop.permute.xlu1 %3416 }
 0x2ab   : > { %v1070_v63 = vmul.f32 1.442695, %v931_v33 }
 0x2ac   : > { %3864 = vbcast.lane.b32.xlu1 %v3862_v52, 256  ;;  %3857 = vbcast.lane.b32.xlu0 %v3855_v40, 256  ;;  %v5771_v52 = vpop.eup %5770  ;;  %v1064_v40 = vmul.f32 1.442695, %v928_v44  ;;  %v1068_v44 = vmul.f32 1.442695, %v930_v2 }
 0x2ad   : > { %v9676_v37 = vpop.permute.xlu0 %3437  ;;  %v4009_v48 = vmul.f32 %v5771_v52, %v9278_v53  ;;  %v5773_v0 = vpop.eup %5772 }
 0x2ae   : > { %10938 = vst [vmem:[#allocation8_spill] sm:$0xff] %v9676_v37  ;;  %v9678_v9 = vpop.permute.xlu1 %3430  ;;  %5784 = vpow2.f32 %v1064_v40  ;;  %v4010_v39 = vmul.f32 %v5773_v0, %v9288_v18  ;;  %v10943_v40 = vld [vmem:[#allocation21_spill] sm:$0xff]  ;;  %v1074_v0 = vmul.f32 1.442695, %v933_v61 }
 0x2af   : > { %5786 = vpow2.f32 %v1066_v4  ;;  %v934_v2 = vmul.f32 -0.1, %v10943_v40  ;;  %v10944_v4 = vld [vmem:[#allocation22_spill] sm:$0xff] }
 0x2b0   : > { %3878 = vbcast.lane.b32.xlu1 %v3876_v62, 256  ;;  %3871 = vbcast.lane.b32.xlu0 %v3869_v1, 256  ;;  %v5775_v62 = vpop.eup %5774  ;;  %v932_v1 = vmul.f32 -0.1, %v10941_v16  ;;  %5788 = vpow2.f32 %v1068_v44  ;;  %v935_v33 = vmul.f32 -0.1, %v10944_v4 }
 0x2b1   : > { %v9684_v12 = vpop.permute.xlu0 %3451  ;;  %v4011_v53 = vmul.f32 %v5775_v62, %v9305_v34  ;;  %v5777_v45 = vpop.eup %5776  ;;  %5790 = vpow2.f32 %v1070_v63  ;;  %v10945_v44 = vld [vmem:[#allocation24_spill] sm:$0xff] }
 0x2b2   : > { %v9686_v37 = vpop.permute.xlu1 %3444  ;;  %v4012_v18 = vmul.f32 %v5777_v45, %v9302_v51  ;;  %v1078_v61 = vmul.f32 1.442695, %v935_v33  ;;  %v10946_v45 = vld [vmem:[#allocation27_spill] sm:$0xff]  ;;  %v10948_v33 = vld [vmem:[#allocation29_spill] sm:$0xff] }
 0x2b4   : > { %4268 = vperm.xlu1 %5703, %v4009_v48   ;;  %4265 = vperm.xlu0 %5702, %v4008_v24   ;;  %v5779_v24 = vpop.eup %5778  ;;  %v1072_v48 = vmul.f32 1.442695, %v932_v1  ;;  %v936_v1 = vmul.f32 -0.1, %v10945_v44 }
 0x2b5   : > { %v9692_v52 = vpop.permute.xlu0 %3465  ;;  %v4013_v34 = vmul.f32 %v5779_v24, %v9325_v25  ;;  %v5781_v16 = vpop.eup %5780  ;;  %v937_v24 = vmul.f32 -0.1, %v10946_v45 }
 0x2b6   : > { %v9694_v56 = vpop.permute.xlu1 %3458  ;;  %5792 = vpow2.f32 %v1072_v48  ;;  %v4014_v51 = vmul.f32 %v5781_v16, %v9322_v15  ;;  %v939_v16 = vmul.f32 -0.1, %v10948_v33 }
 0x2b7   : > { %5794 = vpow2.f32 %v1074_v0  ;;  %v1082_v0 = vmul.f32 1.442695, %v937_v24 }
 0x2b8   : > { %4271 = vperm.xlu1 %5703, %v4010_v39   ;;  %4274 = vperm.xlu0 %5702, %v4011_v53   ;;  %v5783_v39 = vpop.eup %5782  ;;  %v1076_v53 = vmul.f32 1.442695, %v934_v2  ;;  %v10947_v2 = vld [vmem:[#allocation28_spill] sm:$0xff] }
 0x2b9   : > { %v9700_v62 = vpop.permute.xlu0 %3479  ;;  %v4015_v25 = vmul.f32 %v5783_v39, %v9342_v55  ;;  %v5785_v63 = vpop.eup %5784  ;;  %v938_v48 = vmul.f32 -0.1, %v10947_v2 }
 0x2ba   : > { %v9702_v29 = vpop.permute.xlu1 %3472  ;;  %5796 = vpow2.f32 %v1076_v53  ;;  %v4016_v15 = vmul.f32 %v5785_v63, %v9339_v11  ;;  %v10949_v53 = vld [vmem:[#allocation30_spill] sm:$0xff]  ;;  %v1086_v63 = vmul.f32 1.442695, %v939_v16  ;;  %v10952_v16 = vld [vmem:[#allocation33_spill] sm:$0xff] }
 0x2bb   : > { %5798 = vpow2.f32 %v1078_v61  ;;  %v10950_v61 = vld [vmem:[#allocation31_spill] sm:$0xff] }
 0x2bc   : > { %4277 = vperm.xlu1 %5703, %v4012_v18   ;;  %4280 = vperm.xlu0 %5702, %v4013_v34   ;;  %v5787_v18 = vpop.eup %5786  ;;  %v1080_v34 = vmul.f32 1.442695, %v936_v1  ;;  %v940_v1 = vmul.f32 -0.1, %v10949_v53  ;;  %v941_v24 = vmul.f32 -0.1, %v10950_v61 }
 0x2bd   : > { %v9708_v40 = vpop.permute.xlu0 %3493  ;;  %v4017_v55 = vmul.f32 %v5787_v18, %v9368_v32  ;;  %v5789_v44 = vpop.eup %5788 }
 0x2be   : > { %v9710_v4 = vpop.permute.xlu1 %3486  ;;  %5800 = vpow2.f32 %v1080_v34  ;;  %v4018_v11 = vmul.f32 %v5789_v44, %v9363_v38  ;;  %v10951_v34 = vld [vmem:[#allocation32_spill] sm:$0xff]  ;;  %v943_v44 = vmul.f32 -0.1, %v10952_v16 }
 0x2bf   : > { %5802 = vpow2.f32 %v1082_v0  ;;  %v1090_v0 = vmul.f32 1.442695, %v941_v24  ;;  %v10954_v24 = vld [vmem:[#allocation35_spill] sm:$0xff] }
 0x2c0   : > { %4283 = vperm.xlu1 %5703, %v4014_v51   ;;  %4286 = vperm.xlu0 %5702, %v4015_v25   ;;  %v5791_v51 = vpop.eup %5790  ;;  %v1084_v25 = vmul.f32 1.442695, %v938_v48  ;;  %v1088_v48 = vmul.f32 1.442695, %v940_v1 }
 0x2c1   : > { %v9716_v39 = vpop.permute.xlu0 %3507  ;;  %v4019_v32 = vmul.f32 %v5791_v51, %v9379_v3  ;;  %v5793_v2 = vpop.eup %5792 }
 0x2c2   : > { %v9718_v45 = vpop.permute.xlu1 %3500  ;;  %5804 = vpow2.f32 %v1084_v25  ;;  %v4020_v38 = vmul.f32 %v5793_v2, %v9377_v6  ;;  %v10953_v25 = vld [vmem:[#allocation34_spill] sm:$0xff]  ;;  %v945_v2 = vmul.f32 -0.1, %v10954_v24 }
 0x2c3   : > { %5806 = vpow2.f32 %v1086_v63  ;;  %v944_v1 = vmul.f32 -0.1, %v10953_v25  ;;  %v1094_v63 = vmul.f32 1.442695, %v943_v44 }
 0x2c4   : > { %4289 = vperm.xlu1 %5703, %v4016_v15   ;;  %4292 = vperm.xlu0 %5702, %v4017_v55   ;;  %v5795_v15 = vpop.eup %5794  ;;  %v942_v55 = vmul.f32 -0.1, %v10951_v34  ;;  %5808 = vpow2.f32 %v1088_v48  ;;  %v10956_v48 = vld [vmem:[#allocation36_spill] sm:$0xff]  ;;  %v1098_v44 = vmul.f32 1.442695, %v945_v2 }
 0x2c5   : > { %v9724_v18 = vpop.permute.xlu0 %3521  ;;  %v4021_v3 = vmul.f32 %v5795_v15, %v9394_v54  ;;  %v5797_v53 = vpop.eup %5796  ;;  %5810 = vpow2.f32 %v1090_v0  ;;  %v10962_v2 = vld [vmem:[#allocation40_spill] sm:$0xff] }
 0x2c6   : > { %v9726_v33 = vpop.permute.xlu1 %3514  ;;  %v4022_v6 = vmul.f32 %v5797_v53, %v9392_v58  ;;  %v10957_v53 = vld [vmem:[#allocation75_spill] sm:$0xff] }
 0x2c8   : > { %4295 = vperm.xlu1 %5703, %v4018_v11   ;;  %4298 = vperm.xlu0 %5702, %v4019_v32   ;;  %v5799_v11 = vpop.eup %5798  ;;  %v1092_v32 = vmul.f32 1.442695, %v942_v55  ;;  %v946_v55 = vmul.f32 -0.1, %v10956_v48  ;;  %v10961_v48 = vld [vmem:[#allocation104_spill] sm:$0xff] }
 0x2c9   : > { %v9732_v51 = vpop.permute.xlu0 %3535  ;;  %v4023_v54 = vmul.f32 %v5799_v11, %v9411_v59  ;;  %v5801_v34 = vpop.eup %5800  ;;  %v10958_v11 = vld [vmem:[#allocation37_spill] sm:$0xff] }
 0x2ca   : > { %v9734_v61 = vpop.permute.xlu1 %3528  ;;  %5812 = vpow2.f32 %v1092_v32  ;;  %v4024_v58 = vmul.f32 %v5801_v34, %v9408_v5  ;;  %v947_v25 = vmul.f32 -0.1, %v10958_v11  ;;  %v10960_v32 = vld [vmem:[#allocation39_spill] sm:$0xff] }
 0x2cb   : > { %5814 = vpow2.f32 %v1094_v63 }
 0x2cc   : > { %4301 = vperm.xlu1 %5703, %v4020_v38   ;;  %4304 = vperm.xlu0 %5702, %v4021_v3   ;;  %v5803_v38 = vpop.eup %5802  ;;  %v1096_v3 = vmul.f32 1.442695, %v944_v1  ;;  %v1100_v1 = vmul.f32 1.442695, %v946_v55  ;;  %v1102_v63 = vmul.f32 1.442695, %v947_v25 }
 0x2cd   : > { %v9740_v15 = vpop.permute.xlu0 %3549  ;;  %v4025_v59 = vmul.f32 %v5803_v38, %v10957_v53  ;;  %v5805_v0 = vpop.eup %5804  ;;  %v949_v38 = vmul.f32 -0.1, %v10962_v2  ;;  %v10966_v25 = vld [vmem:[#allocation43_spill] sm:$0xff] }
 0x2ce   : > { %10955 = vst [vmem:[#allocation10_spill] sm:$0xff] %v9740_v15  ;;  %v9742_v16 = vpop.permute.xlu1 %3542  ;;  %5816 = vpow2.f32 %v1096_v3  ;;  %v4026_v5 = vmul.f32 %v5805_v0, %v10961_v48  ;;  %v10964_v3 = vld [vmem:[#allocation42_spill] sm:$0xff] }
 0x2cf   : > { %5818 = vpow2.f32 %v1098_v44  ;;  %v950_v55 = vmul.f32 -0.1, %v10964_v3  ;;  %v1106_v44 = vmul.f32 1.442695, %v949_v38 }
 0x2d0   : > { %4307 = vperm.xlu1 %5703, %v4022_v6   ;;  %4310 = vperm.xlu0 %5702, %v4023_v54   ;;  %v5807_v6 = vpop.eup %5806  ;;  %v948_v54 = vmul.f32 -0.1, %v10960_v32  ;;  %5820 = vpow2.f32 %v1100_v1  ;;  %v10965_v32 = vld [vmem:[#allocation38_spill] sm:$0xff]  ;;  %v10967_v1 = vld [vmem:[#allocation44_spill] sm:$0xff] }
 0x2d1   : > { %v9748_v24 = vpop.permute.xlu0 %3563  ;;  %v4027_v34 = vmul.f32 %v5807_v6, %v9445_v13  ;;  %v5809_v11 = vpop.eup %5808  ;;  %5822 = vpow2.f32 %v1102_v63  ;;  %v951_v6 = vmul.f32 -0.1, %v10966_v25 }
 0x2d2   : > { %10959 = vst [vmem:[#allocation11_spill] sm:$0xff] %v9748_v24  ;;  %v9750_v15 = vpop.permute.xlu1 %3556  ;;  %v4028_v0 = vmul.f32 %v5809_v11, %v10965_v32 }
 0x2d3   : > { %v1110_v38 = vmul.f32 1.442695, %v951_v6  ;;  %v10971_v6 = vld [vmem:[#allocation47_spill] sm:$0xff] }
 0x2d4   : > { %4313 = vperm.xlu1 %5703, %v4024_v58   ;;  %4316 = vperm.xlu0 %5702, %v4025_v59   ;;  %v5811_v58 = vpop.eup %5810  ;;  %v1104_v59 = vmul.f32 1.442695, %v948_v54  ;;  %v952_v54 = vmul.f32 -0.1, %v10967_v1 }
 0x2d5   : > { %v9756_v53 = vpop.permute.xlu0 %3577  ;;  %v4029_v13 = vmul.f32 %v5811_v58, %v9457_v49  ;;  %v5813_v2 = vpop.eup %5812  ;;  %v10968_v58 = vld [vmem:[#allocation45_spill] sm:$0xff] }
 0x2d6   : > { %10963 = vst [vmem:[#allocation12_spill] sm:$0xff] %v9756_v53  ;;  %v9758_v24 = vpop.permute.xlu1 %3570  ;;  %5824 = vpow2.f32 %v1104_v59  ;;  %v4030_v11 = vmul.f32 %v5813_v2, %v9455_v35  ;;  %v953_v3 = vmul.f32 -0.1, %v10968_v58  ;;  %v10970_v59 = vld [vmem:[#allocation46_spill] sm:$0xff]  ;;  %v955_v2 = vmul.f32 -0.1, %v10971_v6 }
 0x2d7   : > { %5826 = vpow2.f32 %v1106_v44 }
 0x2d8   : > { %4319 = vperm.xlu1 %5703, %v4026_v5   ;;  %4322 = vperm.xlu0 %5702, %v4027_v34   ;;  %v5815_v5 = vpop.eup %5814  ;;  %v1108_v34 = vmul.f32 1.442695, %v950_v55  ;;  %v1112_v55 = vmul.f32 1.442695, %v952_v54  ;;  %v1114_v44 = vmul.f32 1.442695, %v953_v3 }
 0x2d9   : > { %v9764_v48 = vpop.permute.xlu0 %3591  ;;  %v4031_v49 = vmul.f32 %v5815_v5, %v9473_v30  ;;  %v5817_v63 = vpop.eup %5816  ;;  %v10976_v3 = vld [vmem:[#allocation49_spill] sm:$0xff] }
 0x2da   : > { %v9766_v53 = vpop.permute.xlu1 %3584  ;;  %5828 = vpow2.f32 %v1108_v34  ;;  %v4032_v35 = vmul.f32 %v5817_v63, %v9470_v46  ;;  %v10973_v34 = vld [vmem:[#allocation48_spill] sm:$0xff]  ;;  %v10975_v63 = vld [vmem:[#allocation3_spill] sm:$0xff] }
 0x2db   : > { %5830 = vpow2.f32 %v1110_v38  ;;  %v956_v54 = vmul.f32 -0.1, %v10973_v34  ;;  %v1118_v38 = vmul.f32 1.442695, %v955_v2  ;;  %v10979_v34 = vld [vmem:[#allocation101_spill] sm:$0xff] }
 0x2dc   : > { %4325 = vperm.xlu1 %5703, %v4028_v0   ;;  %4328 = vperm.xlu0 %5702, %v4029_v13   ;;  %v5819_v0 = vpop.eup %5818  ;;  %v954_v13 = vmul.f32 -0.1, %v10970_v59  ;;  %5832 = vpow2.f32 %v1112_v55  ;;  %v10974_v59 = vld [vmem:[#allocation59_spill] sm:$0xff]  ;;  %v10978_v55 = vld [vmem:[#allocation50_spill] sm:$0xff] }
 0x2dd   : > { %v9772_v32 = vpop.permute.xlu0 %3605  ;;  %v4033_v30 = vmul.f32 %v5819_v0, %v9496_v42  ;;  %v5821_v1 = vpop.eup %5820  ;;  %5834 = vpow2.f32 %v1114_v44  ;;  %v957_v0 = vmul.f32 -0.1, %v10976_v3 }
 0x2de   : > { %10969 = vst [vmem:[#allocation13_spill] sm:$0xff] %v9772_v32  ;;  %v9774_v25 = vpop.permute.xlu1 %3598  ;;  %v4034_v46 = vmul.f32 %v5821_v1, %v10974_v59  ;;  %v10980_v59 = vld [vmem:[#allocation51_spill] sm:$0xff] }
 0x2df   : > { %v1122_v2 = vmul.f32 1.442695, %v957_v0  ;;  %v10982_v0 = vld [vmem:[#allocation53_spill] sm:$0xff] }
 0x2e0   : > { %4331 = vperm.xlu1 %5703, %v4030_v11   ;;  %4334 = vperm.xlu0 %5702, %v4031_v49   ;;  %v5823_v11 = vpop.eup %5822  ;;  %v1116_v49 = vmul.f32 1.442695, %v954_v13  ;;  %v958_v13 = vmul.f32 -0.1, %v10978_v55 }
 0x2e1   : > { %v9780_v5 = vpop.permute.xlu0 %3619  ;;  %v4035_v42 = vmul.f32 %v5823_v11, %v10975_v63  ;;  %v959_v63 = vmul.f32 -0.1, %v10980_v59 }
 0x2e2   : > { %10972 = vst [vmem:[#allocation14_spill] sm:$0xff] %v9780_v5  ;;  %v9782_v58 = vpop.permute.xlu1 %3612  ;;  %v5825_v5 = vpop.eup %5824  ;;  %5836 = vpow2.f32 %v1116_v49  ;;  %v10981_v49 = vld [vmem:[#allocation52_spill] sm:$0xff] }
 0x2e3   : > { %v4036_v1 = vmul.f32 %v5825_v5, %v10979_v34  ;;  %5838 = vpow2.f32 %v1118_v38  ;;  %v1126_v38 = vmul.f32 1.442695, %v959_v63 }
 0x2e4   : > { %4337 = vperm.xlu1 %5703, %v4032_v35   ;;  %4340 = vperm.xlu0 %5702, %v4033_v30   ;;  %v5827_v35 = vpop.eup %5826  ;;  %v1120_v30 = vmul.f32 1.442695, %v956_v54  ;;  %v1124_v54 = vmul.f32 1.442695, %v958_v13 }
 0x2e5   : > { %v9788_v6 = vpop.permute.xlu0 %3633  ;;  %v4037_v11 = vmul.f32 %v5827_v35, %v9518_v60  ;;  %v5829_v44 = vpop.eup %5828  ;;  %v961_v35 = vmul.f32 -0.1, %v10982_v0 }
 0x2e6   : > { %10977 = vst [vmem:[#allocation15_spill] sm:$0xff] %v9788_v6  ;;  %v9790_v32 = vpop.permute.xlu1 %3626  ;;  %5840 = vpow2.f32 %v1120_v30  ;;  %v4038_v5 = vmul.f32 %v5829_v44, %v9516_v41  ;;  %v10983_v30 = vld [vmem:[#allocation54_spill] sm:$0xff] }
 0x2e7   : > { %5842 = vpow2.f32 %v1122_v2  ;;  %v962_v13 = vmul.f32 -0.1, %v10983_v30  ;;  %v1130_v44 = vmul.f32 1.442695, %v961_v35  ;;  %v10984_v2 = vld [vmem:[#allocation55_spill] sm:$0xff] }
 0x2e8   : > { %4343 = vperm.xlu1 %5703, %v4034_v46   ;;  %4346 = vperm.xlu0 %5702, %v4035_v42   ;;  %v5831_v46 = vpop.eup %5830  ;;  %v960_v42 = vmul.f32 -0.1, %v10981_v49  ;;  %5844 = vpow2.f32 %v1124_v54  ;;  %v963_v63 = vmul.f32 -0.1, %v10984_v2  ;;  %v10985_v54 = vld [vmem:[#allocation56_spill] sm:$0xff] }
 0x2e9   : > { %v9796_v3 = vpop.permute.xlu0 %3647  ;;  %v4039_v60 = vmul.f32 %v5831_v46, %v9532_v17  ;;  %v5833_v34 = vpop.eup %5832  ;;  %5846 = vpow2.f32 %v1126_v38 }
 0x2ea   : > { %v9798_v6 = vpop.permute.xlu1 %3640  ;;  %v4040_v41 = vmul.f32 %v5833_v34, %v9529_v19  ;;  %v1134_v35 = vmul.f32 1.442695, %v963_v63  ;;  %v10986_v34 = vld [vmem:[#allocation57_spill] sm:$0xff]  ;;  %v10990_v63 = vld [vmem:[#allocation60_spill] sm:$0xff] }
 0x2ec   : > { %4349 = vperm.xlu1 %5703, %v4036_v1   ;;  %4352 = vperm.xlu0 %5702, %v4037_v11   ;;  %v5835_v1 = vpop.eup %5834  ;;  %v1128_v11 = vmul.f32 1.442695, %v960_v42  ;;  %v964_v42 = vmul.f32 -0.1, %v10985_v54  ;;  %v10989_v54 = vld [vmem:[#allocation5_spill] sm:$0xff] }
 0x2ed   : > { %v9804_v55 = vpop.permute.xlu0 %3661  ;;  %v4041_v17 = vmul.f32 %v5835_v1, %v9551_v36  ;;  %v5837_v49 = vpop.eup %5836  ;;  %v965_v1 = vmul.f32 -0.1, %v10986_v34 }
 0x2ee   : > { %v9806_v59 = vpop.permute.xlu1 %3654  ;;  %5848 = vpow2.f32 %v1128_v11  ;;  %v4042_v19 = vmul.f32 %v5837_v49, %v9546_v50  ;;  %v967_v49 = vmul.f32 -0.1, %v10990_v63 }
 0x2ef   : > { %5850 = vpow2.f32 %v1130_v44  ;;  %v1138_v44 = vmul.f32 1.442695, %v965_v1  ;;  %v10994_v1 = vld [vmem:[#allocation62_spill] sm:$0xff] }
 0x2f0   : > { %4355 = vperm.xlu1 %5703, %v4038_v5   ;;  %4358 = vperm.xlu0 %5702, %v4039_v60   ;;  %v5839_v5 = vpop.eup %5838  ;;  %v1132_v60 = vmul.f32 1.442695, %v962_v13  ;;  %v10988_v13 = vld [vmem:[#allocation58_spill] sm:$0xff] }
 0x2f1   : > { %v9812_v46 = vpop.permute.xlu0 %3675  ;;  %v4043_v36 = vmul.f32 %v5839_v5, %v9558_v21  ;;  %v5841_v38 = vpop.eup %5840  ;;  %v966_v11 = vmul.f32 -0.1, %v10988_v13 }
 0x2f2   : > { %v9814_v0 = vpop.permute.xlu1 %3668  ;;  %5852 = vpow2.f32 %v1132_v60  ;;  %v4044_v50 = vmul.f32 %v5841_v38, %v10989_v54  ;;  %v10993_v60 = vld [vmem:[#allocation61_spill] sm:$0xff] }
 0x2f3   : > { %5854 = vpow2.f32 %v1134_v35  ;;  %v1142_v35 = vmul.f32 1.442695, %v967_v49  ;;  %v10998_v49 = vld [vmem:[#allocation64_spill] sm:$0xff] }
 0x2f4   : > { %4361 = vperm.xlu1 %5703, %v4040_v41   ;;  %4364 = vperm.xlu0 %5702, %v4041_v17   ;;  %v5843_v41 = vpop.eup %5842  ;;  %v1136_v17 = vmul.f32 1.442695, %v964_v42  ;;  %v968_v42 = vmul.f32 -0.1, %v10993_v60 }
 0x2f5   : > { %v9820_v30 = vpop.permute.xlu0 %3689  ;;  %v4045_v21 = vmul.f32 %v5843_v41, %v9567_v8  ;;  %v5845_v34 = vpop.eup %5844  ;;  %v969_v41 = vmul.f32 -0.1, %v10994_v1 }
 0x2f6   : > { %10987 = vst [vmem:[#allocation16_spill] sm:$0xff] %v9820_v30  ;;  %v9822_v2 = vpop.permute.xlu1 %3682  ;;  %5856 = vpow2.f32 %v1136_v17  ;;  %v4046_v38 = vmul.f32 %v5845_v34, %v9565_v43  ;;  %v10996_v17 = vld [vmem:[#allocation63_spill] sm:$0xff]  ;;  %v10997_v34 = vld [vmem:[#allocation140_spill] sm:$0xff] }
 0x2f7   : > { %5858 = vpow2.f32 %v1138_v44  ;;  %v1146_v44 = vmul.f32 1.442695, %v969_v41  ;;  %v11001_v41 = vld [vmem:[#allocation67_spill] sm:$0xff] }
 0x2f8   : > { %4367 = vperm.xlu1 %5703, %v4042_v19   ;;  %4370 = vperm.xlu0 %5702, %v4043_v36   ;;  %v5847_v19 = vpop.eup %5846  ;;  %v1140_v36 = vmul.f32 1.442695, %v966_v11  ;;  %v1144_v11 = vmul.f32 1.442695, %v968_v42 }
 0x2f9   : > { %v9828_v5 = vpop.permute.xlu0 %3703  ;;  %v4047_v8 = vmul.f32 %v5847_v19, %v9577_v47  ;;  %v5849_v54 = vpop.eup %5848  ;;  %v971_v19 = vmul.f32 -0.1, %v10998_v49 }
 0x2fa   : > { %10991 = vst [vmem:[#allocation17_spill] sm:$0xff] %v9828_v5  ;;  %v9830_v30 = vpop.permute.xlu1 %3696  ;;  %5860 = vpow2.f32 %v1140_v36  ;;  %v4048_v43 = vmul.f32 %v5849_v54, %v9574_v10  ;;  %v10999_v36 = vld [vmem:[#allocation65_spill] sm:$0xff] }
 0x2fb   : > { %10992 = vst [vmem:[#allocation18_spill] sm:$0xff] %v9830_v30  ;;  %5862 = vpow2.f32 %v1142_v35  ;;  %v972_v42 = vmul.f32 -0.1, %v10999_v36  ;;  %v1150_v35 = vmul.f32 1.442695, %v971_v19  ;;  %v11004_v36 = vld [vmem:[#allocation141_spill] sm:$0xff] }
 0x2fc   : > { %4373 = vperm.xlu1 %5703, %v4044_v50   ;;  %4376 = vperm.xlu0 %5702, %v4045_v21   ;;  %v5851_v50 = vpop.eup %5850  ;;  %v970_v21 = vmul.f32 -0.1, %v10996_v17  ;;  %5864 = vpow2.f32 %v1144_v11  ;;  %v11000_v17 = vld [vmem:[#allocation139_spill] sm:$0xff]  ;;  %v11003_v11 = vld [vmem:[#allocation68_spill] sm:$0xff] }
 0x2fd   : > { %v9836_v13 = vpop.permute.xlu0 %3717  ;;  %v4049_v47 = vmul.f32 %v5851_v50, %v10997_v34  ;;  %v5853_v1 = vpop.eup %5852  ;;  %5866 = vpow2.f32 %v1146_v44  ;;  %v973_v50 = vmul.f32 -0.1, %v11001_v41 }
 0x2fe   : > { %v9838_v63 = vpop.permute.xlu1 %3710  ;;  %v4050_v10 = vmul.f32 %v5853_v1, %v11000_v17 }
 0x2ff   : > { %10995 = vst [vmem:[#allocation19_spill] sm:$0xff] %v9838_v63  ;;  %v1154_v19 = vmul.f32 1.442695, %v973_v50  ;;  %v11009_v50 = vld [vmem:[#allocation73_spill] sm:$0xff] }
 0x300   : > { %4379 = vperm.xlu1 %5703, %v4046_v38   ;;  %4382 = vperm.xlu0 %5702, %v4047_v8   ;;  %v5855_v38 = vpop.eup %5854  ;;  %v1148_v8 = vmul.f32 1.442695, %v970_v21  ;;  %v974_v21 = vmul.f32 -0.1, %v11003_v11 }
 0x301   : > { %v9844_v60 = vpop.permute.xlu0 %3731  ;;  %v4051_v54 = vmul.f32 %v5855_v38, %v9601_v28  ;;  %v5857_v49 = vpop.eup %5856  ;;  %v11005_v38 = vld [vmem:[#allocation70_spill] sm:$0xff] }
 0x302   : > { %v9846_v5 = vpop.permute.xlu1 %3724  ;;  %5868 = vpow2.f32 %v1148_v8  ;;  %v4052_v1 = vmul.f32 %v5857_v49, %v11004_v36  ;;  %v975_v17 = vmul.f32 -0.1, %v11005_v38  ;;  %v11008_v8 = vld [vmem:[#allocation72_spill] sm:$0xff] }
 0x303   : > { %5870 = vpow2.f32 %v1150_v35 }
 0x304   : > { %4385 = vperm.xlu1 %5703, %v4048_v43   ;;  %4388 = vperm.xlu0 %5702, %v4049_v47   ;;  %v5859_v43 = vpop.eup %5858  ;;  %v1152_v47 = vmul.f32 1.442695, %v972_v42  ;;  %v1156_v42 = vmul.f32 1.442695, %v974_v21  ;;  %v1158_v35 = vmul.f32 1.442695, %v975_v17 }
 0x305   : > { %v9852_v34 = vpop.permute.xlu0 %3745  ;;  %v4053_v28 = vmul.f32 %v5859_v43, %v9610_v7  ;;  %v5861_v44 = vpop.eup %5860  ;;  %v977_v43 = vmul.f32 -0.1, %v11009_v50  ;;  %v11014_v17 = vld [vmem:[#allocation78_spill] sm:$0xff] }
 0x306   : > { %11002 = vst [vmem:[#allocation20_spill] sm:$0xff] %v9852_v34  ;;  %v9854_v63 = vpop.permute.xlu1 %3738  ;;  %5872 = vpow2.f32 %v1152_v47  ;;  %v4054_v49 = vmul.f32 %v5861_v44, %v9608_v20  ;;  %v11011_v47 = vld [vmem:[#allocation74_spill] sm:$0xff]  ;;  %v11013_v44 = vld [vmem:[#allocation144_spill] sm:$0xff] }
 0x307   : > { %5874 = vpow2.f32 %v1154_v19  ;;  %v978_v21 = vmul.f32 -0.1, %v11011_v47  ;;  %v1162_v19 = vmul.f32 1.442695, %v977_v43  ;;  %v11017_v47 = vld [vmem:[#allocation143_spill] sm:$0xff] }
 0x308   : > { %4391 = vperm.xlu1 %5703, %v4050_v10   ;;  %4394 = vperm.xlu0 %5702, %v4051_v54   ;;  %v5863_v10 = vpop.eup %5862  ;;  %v976_v54 = vmul.f32 -0.1, %v11008_v8  ;;  %5876 = vpow2.f32 %v1156_v42  ;;  %v11012_v8 = vld [vmem:[#allocation142_spill] sm:$0xff]  ;;  %v11016_v42 = vld [vmem:[#allocation80_spill] sm:$0xff] }
 0x309   : > { %v9860_v41 = vpop.permute.xlu0 %3759  ;;  %v4055_v7 = vmul.f32 %v5863_v10, %v9619_v23  ;;  %v5865_v36 = vpop.eup %5864  ;;  %5878 = vpow2.f32 %v1158_v35  ;;  %v979_v10 = vmul.f32 -0.1, %v11014_v17 }
 0x30a   : > { %11006 = vst [vmem:[#allocation21_spill] sm:$0xff] %v9860_v41  ;;  %v9862_v34 = vpop.permute.xlu1 %3752  ;;  %v4056_v20 = vmul.f32 %v5865_v36, %v11012_v8  ;;  %v11018_v8 = vld [vmem:[#allocation146_spill] sm:$0xff] }
 0x30b   : > { %11007 = vst [vmem:[#allocation22_spill] sm:$0xff] %v9862_v34  ;;  %v1166_v43 = vmul.f32 1.442695, %v979_v10  ;;  %v11024_v10 = vld [vmem:[#allocation23_spill] sm:$0xff] }
 0x30c   : > { %4397 = vperm.xlu1 %5703, %v4052_v1   ;;  %4400 = vperm.xlu0 %5702, %v4053_v28   ;;  %v5867_v1 = vpop.eup %5866  ;;  %v1160_v28 = vmul.f32 1.442695, %v976_v54  ;;  %v980_v54 = vmul.f32 -0.1, %v11016_v42  ;;  %v11022_v42 = vld [vmem:[#allocation145_spill] sm:$0xff] }
 0x30d   : > { %v9868_v11 = vpop.permute.xlu0 %3773  ;;  %v4057_v23 = vmul.f32 %v5867_v1, %v11013_v44  ;;  %v5869_v41 = vpop.eup %5868  ;;  %v11019_v44 = vld [vmem:[#allocation81_spill] sm:$0xff] }
 0x30e   : > { %v9870_v38 = vpop.permute.xlu1 %3766  ;;  %5880 = vpow2.f32 %v1160_v28  ;;  %v4058_v36 = vmul.f32 %v5869_v41, %v11017_v47  ;;  %v981_v17 = vmul.f32 -0.1, %v11019_v44  ;;  %v11021_v28 = vld [vmem:[#allocation82_spill] sm:$0xff]  ;;  %v11023_v47 = vld [vmem:[#allocation148_spill] sm:$0xff] }
 0x30f   : > { %11010 = vst [vmem:[#allocation24_spill] sm:$0xff] %v9870_v38  ;;  %5882 = vpow2.f32 %v1162_v19 }
 0x310   : > { %4403 = vperm.xlu1 %5703, %v4054_v49   ;;  %4406 = vperm.xlu0 %5702, %v4055_v7   ;;  %v5871_v49 = vpop.eup %5870  ;;  %v1164_v7 = vmul.f32 1.442695, %v978_v21  ;;  %v1168_v21 = vmul.f32 1.442695, %v980_v54  ;;  %v1170_v19 = vmul.f32 1.442695, %v981_v17 }
 0x311   : > { %v9876_v50 = vpop.permute.xlu0 %3787  ;;  %v4059_v1 = vmul.f32 %v5871_v49, %v11018_v8  ;;  %v5873_v35 = vpop.eup %5872  ;;  %v983_v8 = vmul.f32 -0.1, %v11024_v10  ;;  %v11029_v17 = vld [vmem:[#allocation83_spill] sm:$0xff] }
 0x312   : > { %11015 = vst [vmem:[#allocation27_spill] sm:$0xff] %v9876_v50  ;;  %v9878_v34 = vpop.permute.xlu1 %3780  ;;  %5884 = vpow2.f32 %v1164_v7  ;;  %v4060_v41 = vmul.f32 %v5873_v35, %v11022_v42  ;;  %v11027_v7 = vld [vmem:[#allocation26_spill] sm:$0xff]  ;;  %v985_v42 = vmul.f32 -0.1, %v11029_v17 }
 0x313   : > { %5886 = vpow2.f32 %v1166_v43  ;;  %v984_v54 = vmul.f32 -0.1, %v11027_v7  ;;  %v1174_v43 = vmul.f32 1.442695, %v983_v8  ;;  %v11031_v7 = vld [vmem:[#allocation6_spill] sm:$0xff] }
 0x314   : > { %4409 = vperm.xlu1 %5703, %v4056_v20   ;;  %4412 = vperm.xlu0 %5702, %v4057_v23   ;;  %v5875_v20 = vpop.eup %5874  ;;  %v982_v23 = vmul.f32 -0.1, %v11021_v28  ;;  %5888 = vpow2.f32 %v1168_v21  ;;  %v11028_v28 = vld [vmem:[#allocation147_spill] sm:$0xff]  ;;  %v11030_v21 = vld [vmem:[#allocation84_spill] sm:$0xff]  ;;  %v1178_v8 = vmul.f32 1.442695, %v985_v42 }
 0x315   : > { %v9884_v38 = vpop.permute.xlu0 %3801  ;;  %v4061_v49 = vmul.f32 %v5875_v20, %v11023_v47  ;;  %5890 = vpow2.f32 %v1170_v19  ;;  %v11034_v42 = vld [vmem:[#allocation88_spill] sm:$0xff] }
 0x316   : > { %11020 = vst [vmem:[#allocation28_spill] sm:$0xff] %v9884_v38  ;;  %v9886_v30 = vpop.permute.xlu1 %3794  ;;  %v5877_v38 = vpop.eup %5876 }
 0x317   : > { %v4062_v35 = vmul.f32 %v5877_v38, %v11028_v28 }
 0x318   : > { %4415 = vperm.xlu1 %5703, %v4058_v36   ;;  %4418 = vperm.xlu0 %5702, %v4059_v1   ;;  %v5879_v36 = vpop.eup %5878  ;;  %v1172_v1 = vmul.f32 1.442695, %v982_v23  ;;  %v986_v23 = vmul.f32 -0.1, %v11030_v21 }
 0x319   : > { %v9892_v44 = vpop.permute.xlu0 %3815  ;;  %v4063_v20 = vmul.f32 %v5879_v36, %v9646_v22  ;;  %v5881_v10 = vpop.eup %5880  ;;  %v11032_v36 = vld [vmem:[#allocation85_spill] sm:$0xff] }
 0x31a   : > { %11025 = vst [vmem:[#allocation29_spill] sm:$0xff] %v9892_v44  ;;  %v9894_v50 = vpop.permute.xlu1 %3808  ;;  %5892 = vpow2.f32 %v1172_v1  ;;  %v4064_v38 = vmul.f32 %v5881_v10, %v11031_v7  ;;  %v987_v28 = vmul.f32 -0.1, %v11032_v36  ;;  %v11033_v1 = vld [vmem:[#allocation86_spill] sm:$0xff] }
 0x31b   : > { %11026 = vst [vmem:[#allocation30_spill] sm:$0xff] %v9894_v50  ;;  %5894 = vpow2.f32 %v1174_v43 }
 0x31c   : > { %4421 = vperm.xlu1 %5703, %v4060_v41   ;;  %4424 = vperm.xlu0 %5702, %v4061_v49   ;;  %v5883_v41 = vpop.eup %5882  ;;  %v1176_v49 = vmul.f32 1.442695, %v984_v54  ;;  %v1180_v54 = vmul.f32 1.442695, %v986_v23  ;;  %v1182_v43 = vmul.f32 1.442695, %v987_v28 }
 0x31d   : > { %v9900_v47 = vpop.permute.xlu0 %3829  ;;  %v4065_v22 = vmul.f32 %v5883_v41, %v9654_v14  ;;  %v5885_v19 = vpop.eup %5884  ;;  %v989_v41 = vmul.f32 -0.1, %v11034_v42  ;;  %v11037_v42 = vld [vmem:[#allocation92_spill] sm:$0xff] }
 0x31e   : > { %v9902_v44 = vpop.permute.xlu1 %3822  ;;  %5896 = vpow2.f32 %v1176_v49  ;;  %v4066_v10 = vmul.f32 %v5885_v19, %v9652_v57 }
 0x31f   : > { %5898 = vpow2.f32 %v1178_v8  ;;  %v1186_v19 = vmul.f32 1.442695, %v989_v41  ;;  %v11036_v8 = vld [vmem:[#allocation91_spill] sm:$0xff] }
 0x320   : > { %4427 = vperm.xlu1 %5703, %v4062_v35   ;;  %4430 = vperm.xlu0 %5702, %v4063_v20   ;;  %v5887_v35 = vpop.eup %5886  ;;  %v988_v20 = vmul.f32 -0.1, %v11033_v1  ;;  %5900 = vpow2.f32 %v1180_v54  ;;  %v991_v28 = vmul.f32 -0.1, %v11036_v8  ;;  %v11038_v54 = vld [vmem:[#allocation9_spill] sm:$0xff] }
 0x321   : > { %v9908_v17 = vpop.permute.xlu0 %3843  ;;  %v4067_v14 = vmul.f32 %v5887_v35, %v9662_v26  ;;  %v5889_v21 = vpop.eup %5888  ;;  %5902 = vpow2.f32 %v1182_v43  ;;  %v11039_v43 = vld [vmem:[#allocation93_spill] sm:$0xff] }
 0x322   : > { %v9910_v50 = vpop.permute.xlu1 %3836  ;;  %v1184_v23 = vmul.f32 1.442695, %v988_v20  ;;  %v4068_v57 = vmul.f32 %v5889_v21, %v9660_v31  ;;  %v993_v41 = vmul.f32 -0.1, %v11039_v43 }
 0x324   : > { %4433 = vperm.xlu1 %5703, %v4064_v38   ;;  %4436 = vperm.xlu0 %5702, %v4065_v22   ;;  %v5891_v38 = vpop.eup %5890  ;;  %v11035_v22 = vld [vmem:[#allocation90_spill] sm:$0xff]  ;;  %5904 = vpow2.f32 %v1184_v23 }
 0x325   : > { %v990_v36 = vmul.f32 -0.1, %v11035_v22  ;;  %v9919_v49 = vpop.permute.xlu0 %3857  ;;  %v4069_v26 = vmul.f32 %v5891_v38, %v9670_v27  ;;  %v5893_v35 = vpop.eup %5892  ;;  %v992_v22 = vmul.f32 -0.1, %v11037_v42  ;;  %5906 = vpow2.f32 %v1186_v19  ;;  %v11041_v23 = vld [vmem:[#allocation94_spill] sm:$0xff]  ;;  %v11042_v42 = vld [vmem:[#allocation8_spill] sm:$0xff] }
 0x326   : > { %v9916_v7 = vpop.permute.xlu1 %3850  ;;  %v4070_v20 = vmul.f32 %v5893_v35, %v11038_v54  ;;  %v1190_v27 = vmul.f32 1.442695, %v991_v28  ;;  %v1194_v19 = vmul.f32 1.442695, %v993_v41  ;;  %v11043_v28 = vld [vmem:[#allocation95_spill] sm:$0xff]  ;;  %v11045_v41 = vld [vmem:[#allocation97_spill] sm:$0xff] }
 0x328   : > { %4439 = vperm.xlu1 %5703, %v4066_v10   ;;  %4442 = vperm.xlu0 %5702, %v4067_v14   ;;  %v5895_v10 = vpop.eup %5894  ;;  %v1188_v14 = vmul.f32 1.442695, %v990_v36  ;;  %v1192_v36 = vmul.f32 1.442695, %v992_v22 }
 0x329   : > { %v4071_v31 = vmul.f32 %v5895_v10, %v9678_v9  ;;  %v5897_v21 = vpop.eup %5896  ;;  %v9930_v38 = vpop.permute.xlu0 %3871  ;;  %v995_v10 = vmul.f32 -0.1, %v11043_v28 }
 0x32a   : > { %v9924_v1 = vpop.permute.xlu1 %3864  ;;  %11040 = vst [vmem:[#allocation31_spill] sm:$0xff] %v9930_v38  ;;  %5908 = vpow2.f32 %v1188_v14  ;;  %v4072_v35 = vmul.f32 %v5897_v21, %v11042_v42  ;;  %v11044_v14 = vld [vmem:[#allocation96_spill] sm:$0xff] }
 0x32b   : > { %5910 = vpow2.f32 %v1190_v27  ;;  %v996_v22 = vmul.f32 -0.1, %v11044_v14  ;;  %v1198_v27 = vmul.f32 1.442695, %v995_v10 }
 0x32c   : > { %4445 = vperm.xlu1 %5703, %v4068_v57   ;;  %4448 = vperm.xlu0 %5702, %v4069_v26   ;;  %v5899_v57 = vpop.eup %5898  ;;  %v994_v26 = vmul.f32 -0.1, %v11041_v23  ;;  %5912 = vpow2.f32 %v1192_v36  ;;  %v11046_v36 = vld [vmem:[#allocation98_spill] sm:$0xff] }
 0x32d   : > { %v4073_v9 = vmul.f32 %v5899_v57, %v9686_v37  ;;  %v5901_v43 = vpop.eup %5900  ;;  %5914 = vpow2.f32 %v1194_v19  ;;  %v997_v57 = vmul.f32 -0.1, %v11045_v41 }
 0x32e   : > { %v9932_v8 = vpop.permute.xlu1 %3878  ;;  %v4074_v21 = vmul.f32 %v5901_v43, %v9684_v12  ;;  %v11047_v43 = vld [vmem:[#allocation99_spill] sm:$0xff] }
 0x32f   : > { %v1202_v10 = vmul.f32 1.442695, %v997_v57  ;;  %v11049_v57 = vld [vmem:[#allocation25_spill] sm:$0xff] }
 0x330   : > { %4451 = vperm.xlu1 %5703, %v4070_v20   ;;  %4454 = vperm.xlu0 %5702, %v4071_v31   ;;  %v5903_v20 = vpop.eup %5902  ;;  %v1196_v31 = vmul.f32 1.442695, %v994_v26  ;;  %v998_v26 = vmul.f32 -0.1, %v11046_v36 }
 0x331   : > { %v4075_v37 = vmul.f32 %v5903_v20, %v9694_v56  ;;  %v5905_v42 = vpop.eup %5904  ;;  %v999_v20 = vmul.f32 -0.1, %v11047_v43 }
 0x332   : > { %5916 = vpow2.f32 %v1196_v31  ;;  %v4076_v12 = vmul.f32 %v5905_v42, %v9692_v52  ;;  %v11048_v31 = vld [vmem:[#allocation100_spill] sm:$0xff]  ;;  %v1001_v42 = vmul.f32 -0.1, %v11049_v57 }
 0x333   : > { %v9938_v54 = vpop.permute.xlu0 %4265  ;;  %v9940_v38 = vpop.permute.xlu1 %4268  ;;  %5918 = vpow2.f32 %v1198_v27  ;;  %v1206_v27 = vmul.f32 1.442695, %v999_v20 }
 0x334   : > { %4457 = vperm.xlu1 %5703, %v4072_v35   ;;  %4460 = vperm.xlu0 %5702, %v4073_v9   ;;  %v5907_v35 = vpop.eup %5906  ;;  %v1200_v9 = vmul.f32 1.442695, %v996_v22  ;;  %v1204_v22 = vmul.f32 1.442695, %v998_v26 }
 0x335   : > { %v4077_v56 = vmul.f32 %v5907_v35, %v9702_v29  ;;  %v5909_v19 = vpop.eup %5908 }
 0x336   : > { %5920 = vpow2.f32 %v1200_v9  ;;  %v4078_v52 = vmul.f32 %v5909_v19, %v9700_v62  ;;  %v11052_v9 = vld [vmem:[#allocation102_spill] sm:$0xff]  ;;  %v1210_v19 = vmul.f32 1.442695, %v1001_v42 }
 0x337   : > { %v9946_v23 = vpop.permute.xlu0 %4274  ;;  %v9948_v28 = vpop.permute.xlu1 %4271  ;;  %5922 = vpow2.f32 %v1202_v10  ;;  %v1002_v26 = vmul.f32 -0.1, %v11052_v9  ;;  %v11053_v10 = vld [vmem:[#allocation79_spill] sm:$0xff] }
 0x338   : > { %4463 = vperm.xlu1 %5703, %v4074_v21   ;;  %4466 = vperm.xlu0 %5702, %v4075_v37   ;;  %v5911_v21 = vpop.eup %5910  ;;  %v1000_v37 = vmul.f32 -0.1, %v11048_v31  ;;  %5924 = vpow2.f32 %v1204_v22  ;;  %v1003_v20 = vmul.f32 -0.1, %v11053_v10  ;;  %v11054_v22 = vld [vmem:[#allocation69_spill] sm:$0xff] }
 0x339   : > { %v4079_v29 = vmul.f32 %v5911_v21, %v9710_v4  ;;  %v5913_v36 = vpop.eup %5912  ;;  %5926 = vpow2.f32 %v1206_v27 }
 0x33a   : > { %v4080_v62 = vmul.f32 %v5913_v36, %v9708_v40  ;;  %v1214_v42 = vmul.f32 1.442695, %v1003_v20  ;;  %v11055_v36 = vld [vmem:[#allocation103_spill] sm:$0xff]  ;;  %v11057_v20 = vld [vmem:[#allocation106_spill] sm:$0xff] }
 0x33b   : > { %v9954_v14 = vpop.permute.xlu0 %4280  ;;  %v9956_v41 = vpop.permute.xlu1 %4277 }
 0x33c   : > { %4469 = vperm.xlu1 %5703, %v4076_v12   ;;  %4472 = vperm.xlu0 %5702, %v4077_v56   ;;  %v5915_v12 = vpop.eup %5914  ;;  %v1208_v56 = vmul.f32 1.442695, %v1000_v37  ;;  %v1004_v37 = vmul.f32 -0.1, %v11054_v22 }
 0x33d   : > { %v4081_v4 = vmul.f32 %v5915_v12, %v9718_v45  ;;  %v5917_v31 = vpop.eup %5916  ;;  %v1005_v12 = vmul.f32 -0.1, %v11055_v36 }
 0x33e   : > { %5928 = vpow2.f32 %v1208_v56  ;;  %v4082_v40 = vmul.f32 %v5917_v31, %v9716_v39  ;;  %v11056_v56 = vld [vmem:[#allocation105_spill] sm:$0xff]  ;;  %v1007_v31 = vmul.f32 -0.1, %v11057_v20 }
 0x33f   : > { %v9962_v35 = vpop.permute.xlu0 %4286  ;;  %v9964_v43 = vpop.permute.xlu1 %4283  ;;  %5930 = vpow2.f32 %v1210_v19  ;;  %v1218_v19 = vmul.f32 1.442695, %v1005_v12 }
 0x340   : > { %11050 = vst [vmem:[#allocation32_spill] sm:$0xff] %v9962_v35  ;;  %11051 = vst [vmem:[#allocation33_spill] sm:$0xff] %v9964_v43  ;;  %4475 = vperm.xlu1 %5703, %v4078_v52   ;;  %4478 = vperm.xlu0 %5702, %v4079_v29   ;;  %v5919_v52 = vpop.eup %5918  ;;  %v1212_v29 = vmul.f32 1.442695, %v1002_v26  ;;  %v1216_v26 = vmul.f32 1.442695, %v1004_v37 }
 0x341   : > { %v4083_v45 = vmul.f32 %v5919_v52, %v9726_v33  ;;  %v5921_v27 = vpop.eup %5920 }
 0x342   : > { %5932 = vpow2.f32 %v1212_v29  ;;  %v4084_v39 = vmul.f32 %v5921_v27, %v9724_v18  ;;  %v11058_v29 = vld [vmem:[#allocation71_spill] sm:$0xff]  ;;  %v1222_v27 = vmul.f32 1.442695, %v1007_v31 }
 0x343   : > { %v9970_v21 = vpop.permute.xlu0 %4292  ;;  %v9972_v57 = vpop.permute.xlu1 %4289  ;;  %5934 = vpow2.f32 %v1214_v42  ;;  %v1008_v37 = vmul.f32 -0.1, %v11058_v29  ;;  %v11059_v42 = vld [vmem:[#allocation107_spill] sm:$0xff]  ;;  %v11062_v29 = vld [vmem:[#allocation10_spill] sm:$0xff] }
 0x344   : > { %4481 = vperm.xlu1 %5703, %v4080_v62   ;;  %4484 = vperm.xlu0 %5702, %v4081_v4   ;;  %v5923_v62 = vpop.eup %5922  ;;  %v1006_v4 = vmul.f32 -0.1, %v11056_v56  ;;  %5936 = vpow2.f32 %v1216_v26  ;;  %v1009_v12 = vmul.f32 -0.1, %v11059_v42  ;;  %v11061_v26 = vld [vmem:[#allocation108_spill] sm:$0xff] }
 0x345   : > { %v4085_v33 = vmul.f32 %v5923_v62, %v9734_v61  ;;  %v5925_v22 = vpop.eup %5924  ;;  %5938 = vpow2.f32 %v1218_v19 }
 0x346   : > { %v4086_v18 = vmul.f32 %v5925_v22, %v9732_v51  ;;  %v1226_v31 = vmul.f32 1.442695, %v1009_v12  ;;  %v11063_v22 = vld [vmem:[#allocation110_spill] sm:$0xff]  ;;  %v11066_v12 = vld [vmem:[#allocation7_spill] sm:$0xff] }
 0x347   : > { %v9978_v9 = vpop.permute.xlu0 %4298  ;;  %v9980_v10 = vpop.permute.xlu1 %4295 }
 0x348   : > { %4487 = vperm.xlu1 %5703, %v4082_v40   ;;  %4490 = vperm.xlu0 %5702, %v4083_v45   ;;  %v5927_v40 = vpop.eup %5926  ;;  %v1220_v45 = vmul.f32 1.442695, %v1006_v4  ;;  %v1010_v4 = vmul.f32 -0.1, %v11061_v26  ;;  %v11065_v26 = vld [vmem:[#allocation11_spill] sm:$0xff] }
 0x349   : > { %v4087_v61 = vmul.f32 %v5927_v40, %v9742_v16  ;;  %v5929_v56 = vpop.eup %5928  ;;  %v1011_v40 = vmul.f32 -0.1, %v11063_v22 }
 0x34a   : > { %5940 = vpow2.f32 %v1220_v45  ;;  %v4088_v51 = vmul.f32 %v5929_v56, %v11062_v29  ;;  %v11064_v45 = vld [vmem:[#allocation111_spill] sm:$0xff] }
 0x34b   : > { %v9986_v52 = vpop.permute.xlu0 %4304  ;;  %v9988_v36 = vpop.permute.xlu1 %4301  ;;  %5942 = vpow2.f32 %v1222_v27  ;;  %v1230_v27 = vmul.f32 1.442695, %v1011_v40  ;;  %v11069_v40 = vld [vmem:[#allocation112_spill] sm:$0xff] }
 0x34c   : > { %4493 = vperm.xlu1 %5703, %v4084_v39   ;;  %4496 = vperm.xlu0 %5702, %v4085_v33   ;;  %v5931_v39 = vpop.eup %5930  ;;  %v1224_v33 = vmul.f32 1.442695, %v1008_v37  ;;  %v1228_v37 = vmul.f32 1.442695, %v1010_v4 }
 0x34d   : > { %v4089_v16 = vmul.f32 %v5931_v39, %v9750_v15  ;;  %v5933_v19 = vpop.eup %5932  ;;  %v1013_v39 = vmul.f32 -0.1, %v11066_v12 }
 0x34e   : > { %5944 = vpow2.f32 %v1224_v33  ;;  %v4090_v56 = vmul.f32 %v5933_v19, %v11065_v26  ;;  %v11067_v33 = vld [vmem:[#allocation4_spill] sm:$0xff] }
 0x34f   : > { %v9994_v62 = vpop.permute.xlu0 %4310  ;;  %v9996_v20 = vpop.permute.xlu1 %4307  ;;  %5946 = vpow2.f32 %v1226_v31  ;;  %v1014_v4 = vmul.f32 -0.1, %v11067_v33  ;;  %v1234_v31 = vmul.f32 1.442695, %v1013_v39 }
 0x350   : > { %11060 = vst [vmem:[#allocation34_spill] sm:$0xff] %v9994_v62  ;;  %4499 = vperm.xlu1 %5703, %v4086_v18   ;;  %4502 = vperm.xlu0 %5702, %v4087_v61   ;;  %v5935_v18 = vpop.eup %5934  ;;  %v1012_v61 = vmul.f32 -0.1, %v11064_v45  ;;  %5948 = vpow2.f32 %v1228_v37  ;;  %v11068_v45 = vld [vmem:[#allocation12_spill] sm:$0xff]  ;;  %v11071_v37 = vld [vmem:[#allocation113_spill] sm:$0xff] }
 0x351   : > { %v4091_v15 = vmul.f32 %v5935_v18, %v9758_v24  ;;  %v5937_v22 = vpop.eup %5936  ;;  %5950 = vpow2.f32 %v1230_v27  ;;  %v1015_v18 = vmul.f32 -0.1, %v11069_v40 }
 0x352   : > { %v4092_v19 = vmul.f32 %v5937_v22, %v11068_v45 }
 0x353   : > { %v10002_v42 = vpop.permute.xlu0 %4316  ;;  %v10004_v35 = vpop.permute.xlu1 %4313  ;;  %v1238_v39 = vmul.f32 1.442695, %v1015_v18  ;;  %v11076_v18 = vld [vmem:[#allocation116_spill] sm:$0xff] }
 0x354   : > { %4505 = vperm.xlu1 %5703, %v4088_v51   ;;  %4508 = vperm.xlu0 %5702, %v4089_v16   ;;  %v5939_v51 = vpop.eup %5938  ;;  %v1232_v16 = vmul.f32 1.442695, %v1012_v61  ;;  %v1016_v61 = vmul.f32 -0.1, %v11071_v37  ;;  %v11075_v37 = vld [vmem:[#allocation13_spill] sm:$0xff] }
 0x355   : > { %v4093_v24 = vmul.f32 %v5939_v51, %v9766_v53  ;;  %v5941_v12 = vpop.eup %5940  ;;  %v11072_v51 = vld [vmem:[#allocation114_spill] sm:$0xff] }
 0x356   : > { %5952 = vpow2.f32 %v1232_v16  ;;  %v4094_v22 = vmul.f32 %v5941_v12, %v9764_v48  ;;  %v1017_v33 = vmul.f32 -0.1, %v11072_v51  ;;  %v11074_v16 = vld [vmem:[#allocation115_spill] sm:$0xff]  ;;  %v1019_v12 = vmul.f32 -0.1, %v11076_v18 }
 0x357   : > { %v10010_v29 = vpop.permute.xlu0 %4322  ;;  %v10012_v62 = vpop.permute.xlu1 %4319  ;;  %5954 = vpow2.f32 %v1234_v31 }
 0x358   : > { %4511 = vperm.xlu1 %5703, %v4090_v56   ;;  %4514 = vperm.xlu0 %5702, %v4091_v15   ;;  %v5943_v56 = vpop.eup %5942  ;;  %v1236_v15 = vmul.f32 1.442695, %v1014_v4  ;;  %v1240_v4 = vmul.f32 1.442695, %v1016_v61  ;;  %v1242_v31 = vmul.f32 1.442695, %v1017_v33 }
 0x359   : > { %v4095_v53 = vmul.f32 %v5943_v56, %v9774_v25  ;;  %v5945_v27 = vpop.eup %5944  ;;  %v11079_v33 = vld [vmem:[#allocation121_spill] sm:$0xff] }
 0x35a   : > { %5956 = vpow2.f32 %v1236_v15  ;;  %v4096_v48 = vmul.f32 %v5945_v27, %v11075_v37  ;;  %v11077_v15 = vld [vmem:[#allocation117_spill] sm:$0xff] }
 0x35b   : > { %v10018_v26 = vpop.permute.xlu0 %4328  ;;  %v10020_v43 = vpop.permute.xlu1 %4325  ;;  %5958 = vpow2.f32 %v1238_v39  ;;  %v1020_v61 = vmul.f32 -0.1, %v11077_v15  ;;  %v1246_v39 = vmul.f32 1.442695, %v1019_v12  ;;  %v11082_v15 = vld [vmem:[#allocation15_spill] sm:$0xff] }
 0x35c   : > { %11070 = vst [vmem:[#allocation35_spill] sm:$0xff] %v10018_v26  ;;  %4517 = vperm.xlu1 %5703, %v4092_v19   ;;  %4520 = vperm.xlu0 %5702, %v4093_v24   ;;  %v5947_v19 = vpop.eup %5946  ;;  %v1018_v24 = vmul.f32 -0.1, %v11074_v16  ;;  %5960 = vpow2.f32 %v1240_v4  ;;  %v11078_v16 = vld [vmem:[#allocation14_spill] sm:$0xff]  ;;  %v11081_v4 = vld [vmem:[#allocation77_spill] sm:$0xff] }
 0x35d   : > { %v4097_v25 = vmul.f32 %v5947_v19, %v9782_v58  ;;  %v5949_v51 = vpop.eup %5948  ;;  %5962 = vpow2.f32 %v1242_v31  ;;  %v1024_v19 = vmul.f32 -0.1, %v11079_v33 }
 0x35e   : > { %v4098_v27 = vmul.f32 %v5949_v51, %v11078_v16 }
 0x35f   : > { %v10026_v45 = vpop.permute.xlu0 %4334  ;;  %v10028_v40 = vpop.permute.xlu1 %4331  ;;  %v1256_v12 = vmul.f32 1.442695, %v1024_v19  ;;  %v11085_v19 = vld [vmem:[#allocation129_spill] sm:$0xff] }
 0x360   : > { %11073 = vst [vmem:[#allocation36_spill] sm:$0xff] %v10026_v45  ;;  %4523 = vperm.xlu1 %5703, %v4094_v22   ;;  %4526 = vperm.xlu0 %5702, %v4095_v53   ;;  %v5951_v22 = vpop.eup %5950  ;;  %v1244_v53 = vmul.f32 1.442695, %v1018_v24  ;;  %v1025_v24 = vmul.f32 -0.1, %v11081_v4 }
 0x361   : > { %v4099_v58 = vmul.f32 %v5951_v22, %v9790_v32  ;;  %v5953_v18 = vpop.eup %5952  ;;  %v11083_v22 = vld [vmem:[#allocation122_spill] sm:$0xff] }
 0x362   : > { %5964 = vpow2.f32 %v1244_v53  ;;  %v4100_v51 = vmul.f32 %v5953_v18, %v11082_v15  ;;  %v1026_v16 = vmul.f32 -0.1, %v11083_v22  ;;  %v11084_v53 = vld [vmem:[#allocation128_spill] sm:$0xff] }
 0x363   : > { %v10034_v56 = vpop.permute.xlu0 %4340  ;;  %v10036_v45 = vpop.permute.xlu1 %4337  ;;  %5966 = vpow2.f32 %v1246_v39 }
 0x364   : > { %4529 = vperm.xlu1 %5703, %v4096_v48   ;;  %4532 = vperm.xlu0 %5702, %v4097_v25   ;;  %v5955_v48 = vpop.eup %5954  ;;  %v1248_v25 = vmul.f32 1.442695, %v1020_v61  ;;  %v1258_v61 = vmul.f32 1.442695, %v1025_v24  ;;  %v1260_v39 = vmul.f32 1.442695, %v1026_v16 }
 0x365   : > { %v4101_v32 = vmul.f32 %v5955_v48, %v9798_v6  ;;  %v5957_v31 = vpop.eup %5956  ;;  %v1033_v48 = vmul.f32 -0.1, %v11085_v19 }
 0x366   : > { %5968 = vpow2.f32 %v1248_v25  ;;  %v4102_v18 = vmul.f32 %v5957_v31, %v9796_v3  ;;  %v11088_v25 = vld [vmem:[#allocation123_spill] sm:$0xff] }
 0x367   : > { %v10042_v37 = vpop.permute.xlu0 %4346  ;;  %v10044_v26 = vpop.permute.xlu1 %4343  ;;  %5970 = vpow2.f32 %v1256_v12  ;;  %v1027_v24 = vmul.f32 -0.1, %v11088_v25  ;;  %v1274_v31 = vmul.f32 1.442695, %v1033_v48  ;;  %v11089_v12 = vld [vmem:[#allocation130_spill] sm:$0xff] }
 0x368   : > { %11080 = vst [vmem:[#allocation75_spill] sm:$0xff] %v10042_v37  ;;  %4535 = vperm.xlu1 %5703, %v4098_v27   ;;  %4538 = vperm.xlu0 %5702, %v4099_v58   ;;  %v5959_v27 = vpop.eup %5958  ;;  %v1032_v58 = vmul.f32 -0.1, %v11084_v53  ;;  %5972 = vpow2.f32 %v1258_v61  ;;  %v1034_v16 = vmul.f32 -0.1, %v11089_v12  ;;  %v11090_v61 = vld [vmem:[#allocation136_spill] sm:$0xff] }
 0x369   : > { %v4103_v6 = vmul.f32 %v5959_v27, %v9806_v59  ;;  %v5961_v15 = vpop.eup %5960  ;;  %5974 = vpow2.f32 %v1260_v39 }
 0x36a   : > { %v4104_v3 = vmul.f32 %v5961_v15, %v9804_v55  ;;  %v1276_v48 = vmul.f32 1.442695, %v1034_v16  ;;  %v11091_v15 = vld [vmem:[#allocation137_spill] sm:$0xff] }
 0x36b   : > { %v10050_v33 = vpop.permute.xlu0 %4352  ;;  %v10052_v37 = vpop.permute.xlu1 %4349 }
 0x36c   : > { %4541 = vperm.xlu1 %5703, %v4100_v51   ;;  %4544 = vperm.xlu0 %5702, %v4101_v32   ;;  %v5963_v51 = vpop.eup %5962  ;;  %v1272_v32 = vmul.f32 1.442695, %v1032_v58  ;;  %v1040_v58 = vmul.f32 -0.1, %v11090_v61  ;;  %v11093_v61 = vld [vmem:[#allocation16_spill] sm:$0xff] }
 0x36d   : > { %v4105_v59 = vmul.f32 %v5963_v51, %v9814_v0  ;;  %v5965_v53 = vpop.eup %5964  ;;  %v1041_v51 = vmul.f32 -0.1, %v11091_v15 }
 0x36e   : > { %5976 = vpow2.f32 %v1272_v32  ;;  %v4106_v55 = vmul.f32 %v5965_v53, %v9812_v46  ;;  %v11094_v53 = vld [vmem:[#allocation124_spill] sm:$0xff] }
 0x36f   : > { %v10058_v4 = vpop.permute.xlu0 %4358  ;;  %v10060_v22 = vpop.permute.xlu1 %4355  ;;  %5978 = vpow2.f32 %v1274_v31  ;;  %v1028_v31 = vmul.f32 -0.1, %v11094_v53  ;;  %v1290_v16 = vmul.f32 1.442695, %v1041_v51 }
 0x370   : > { %11086 = vst [vmem:[#allocation37_spill] sm:$0xff] %v10058_v4  ;;  %11087 = vst [vmem:[#allocation39_spill] sm:$0xff] %v10060_v22  ;;  %4547 = vperm.xlu1 %5703, %v4102_v18   ;;  %4550 = vperm.xlu0 %5702, %v4103_v6   ;;  %v5967_v18 = vpop.eup %5966  ;;  %v1262_v6 = vmul.f32 1.442695, %v1027_v24  ;;  %v11092_v24 = vld [vmem:[#allocation118_spill] sm:$0xff] }
 0x371   : > { %v4107_v0 = vmul.f32 %v5967_v18, %v9822_v2  ;;  %v5969_v39 = vpop.eup %5968  ;;  %v1021_v32 = vmul.f32 -0.1, %v11092_v24  ;;  %v11108_v22 = vld [vmem:[#allocation126_spill] sm:$0xff] }
 0x372   : > { %5980 = vpow2.f32 %v1262_v6  ;;  %v4108_v46 = vmul.f32 %v5969_v39, %v11093_v61  ;;  %v1264_v39 = vmul.f32 1.442695, %v1028_v31 }
 0x373   : > { %v10066_v27 = vpop.permute.xlu0 %4364  ;;  %v10068_v19 = vpop.permute.xlu1 %4361  ;;  %5982 = vpow2.f32 %v1276_v48  ;;  %v1250_v6 = vmul.f32 1.442695, %v1021_v32  ;;  %v11097_v48 = vld [vmem:[#allocation138_spill] sm:$0xff] }
 0x374   : > { %4553 = vperm.xlu1 %5703, %v4104_v3   ;;  %4556 = vperm.xlu0 %5702, %v4105_v59   ;;  %v5971_v3 = vpop.eup %5970  ;;  %v1288_v59 = vmul.f32 1.442695, %v1040_v58  ;;  %v1042_v51 = vmul.f32 -0.1, %v11097_v48  ;;  %v11102_v48 = vld [vmem:[#allocation76_spill] sm:$0xff] }
 0x375   : > { %v4112_v2 = vmul.f32 %v5971_v3, %v9836_v13  ;;  %v5973_v15 = vpop.eup %5972 }
 0x376   : > { %5984 = vpow2.f32 %v1288_v59  ;;  %v4113_v13 = vmul.f32 %v5973_v15, %v9846_v5  ;;  %v11101_v59 = vld [vmem:[#allocation125_spill] sm:$0xff] }
 0x377   : > { %v10074_v25 = vpop.permute.xlu0 %4370  ;;  %v10076_v12 = vpop.permute.xlu1 %4367  ;;  %5986 = vpow2.f32 %v1290_v16  ;;  %v1029_v31 = vmul.f32 -0.1, %v11101_v59  ;;  %v1292_v16 = vmul.f32 1.442695, %v1042_v51 }
 0x378   : > { %4559 = vperm.xlu1 %5703, %v4106_v55   ;;  %4562 = vperm.xlu0 %5702, %v4107_v0   ;;  %v5975_v55 = vpop.eup %5974  ;;  %v11096_v0 = vld [vmem:[#allocation131_spill] sm:$0xff]  ;;  %5988 = vpow2.f32 %v1250_v6 }
 0x379   : > { %v1035_v24 = vmul.f32 -0.1, %v11096_v0  ;;  %v4114_v58 = vmul.f32 %v5975_v55, %v9844_v60  ;;  %v5977_v61 = vpop.eup %5976  ;;  %5990 = vpow2.f32 %v1264_v39  ;;  %v1266_v59 = vmul.f32 1.442695, %v1029_v31 }
 0x37a   : > { %v4120_v60 = vmul.f32 %v5977_v61, %v9868_v11  ;;  %v11105_v11 = vld [vmem:[#allocation132_spill] sm:$0xff]  ;;  %v11106_v61 = vld [vmem:[#allocation27_spill] sm:$0xff] }
 0x37b   : > { %v10082_v18 = vpop.permute.xlu0 %4376  ;;  %v10084_v4 = vpop.permute.xlu1 %4373  ;;  %v1278_v32 = vmul.f32 1.442695, %v1035_v24 }
 0x37c   : > { %11095 = vst [vmem:[#allocation104_spill] sm:$0xff] %v10082_v18  ;;  %4565 = vperm.xlu1 %5703, %v4108_v46   ;;  %4577 = vperm.xlu0 %5702, %v4112_v2   ;;  %v5979_v46 = vpop.eup %5978  ;;  %v11100_v2 = vld [vmem:[#allocation119_spill] sm:$0xff] }
 0x37d   : > { %v1022_v0 = vmul.f32 -0.1, %v11100_v2  ;;  %v4121_v5 = vmul.f32 %v5979_v46, %v9878_v34  ;;  %v5981_v55 = vpop.eup %5980  ;;  %5992 = vpow2.f32 %v1278_v32  ;;  %v1036_v34 = vmul.f32 -0.1, %v11105_v11 }
 0x37e   : > { %v5983_v24 = vpop.eup %5982  ;;  %v4115_v39 = vmul.f32 %v5981_v55, %v9854_v63  ;;  %5994 = vpow2.f32 %v1292_v16 }
 0x37f   : > { %v10090_v3 = vpop.permute.xlu0 %4382  ;;  %v10092_v53 = vpop.permute.xlu1 %4379  ;;  %v1252_v6 = vmul.f32 1.442695, %v1022_v0  ;;  %v4122_v51 = vmul.f32 %v5983_v24, %v11106_v61  ;;  %v1030_v0 = vmul.f32 -0.1, %v11108_v22  ;;  %v1280_v63 = vmul.f32 1.442695, %v1036_v34 }
 0x380   : > { %11098 = vst [vmem:[#allocation40_spill] sm:$0xff] %v10090_v3  ;;  %11099 = vst [vmem:[#allocation42_spill] sm:$0xff] %v10092_v53  ;;  %4580 = vperm.xlu1 %5703, %v4113_v13   ;;  %4583 = vperm.xlu0 %5702, %v4114_v58   ;;  %v11103_v3 = vld [vmem:[#allocation2_spill] sm:$0xff]  ;;  %v11104_v58 = vld [vmem:[#allocation120_spill] sm:$0xff] }
 0x381   : > { %v10100_v53 = vsub.s32 %v11103_v3, %v11102_v48  ;;  %v1023_v13 = vmul.f32 -0.1, %v11104_v58  ;;  %v11107_v48 = vld [vmem:[#allocation41_spill] sm:$0xff]  ;;  %5996 = vpow2.f32 %v1252_v6  ;;  %v1268_v24 = vmul.f32 1.442695, %v1030_v0 }
 0x382   : > { %v1043_v58 = vmul.f32 -0.1, %v11107_v48  ;;  %5998 = vpow2.f32 %v1266_v59 }
 0x383   : > { %v4389_v15 = vpop.permute.xlu0 %4388  ;;  %v4386_v18 = vpop.permute.xlu1 %4385 }
 0x384   : > { %4601 = vperm.xlu1 %5703, %v4120_v60   ;;  %4604 = vperm.xlu0 %5702, %v4121_v5   ;;  %v4815_v46 = vrot.slane %v4389_v15, %v10100_v53  ;;  %v4811_v2 = vrot.slane %v4386_v18, %v10100_v53  ;;  %v5985_v60 = vpop.eup %5984  ;;  %v1254_v5 = vmul.f32 1.442695, %v1023_v13  ;;  %v1294_v55 = vmul.f32 1.442695, %v1043_v58 }
 0x385   : > { %v5987_v11 = vpop.eup %5986  ;;  %v4128_v18 = vmul.f32 %v5985_v60, %v9900_v47  ;;  %v11109_v47 = vld [vmem:[#allocation133_spill] sm:$0xff] }
 0x386   : > { %v4129_v31 = vmul.f32 %v5987_v11, %v9910_v50  ;;  %v5202_v16 = vsel %vm5160_vm7, %v4815_v46, %v4811_v2  ;;  %v5989_v13 = vpop.eup %5988  ;;  %6000 = vpow2.f32 %v1254_v5  ;;  %v1037_v50 = vmul.f32 -0.1, %v11109_v47  ;;  %v11111_v2 = vld [vmem:[#allocation20_spill] sm:$0xff]  ;;  %v11113_v11 = vld [vmem:[#allocation127_spill] sm:$0xff] }
 0x387   : > { %v4395_v3 = vpop.permute.xlu0 %4394  ;;  %v4392_v32 = vpop.permute.xlu1 %4391  ;;  %6002 = vpow2.f32 %v1280_v63  ;;  %v1031_v63 = vmul.f32 -0.1, %v11113_v11 }
 0x388   : > { %4586 = vperm.xlu1 %5703, %v4115_v39   ;;  %4607 = vperm.xlu0 %5702, %v4122_v51   ;;  %v4819_v15 = vrot.slane %v4392_v32, %v10100_v53  ;;  %v4823_v6 = vrot.slane %v4395_v3, %v10100_v53  ;;  %v5991_v39 = vpop.eup %5990  ;;  %v11110_v51 = vld [vmem:[#allocation18_spill] sm:$0xff]  ;;  %6004 = vpow2.f32 %v1294_v55 }
 0x389   : > { %v4109_v46 = vmul.f32 %v5989_v13, %v11110_v51  ;;  %v4116_v59 = vmul.f32 %v5991_v39, %v11111_v2  ;;  %v5993_v60 = vpop.eup %5992  ;;  %v11112_v3 = vld [vmem:[#allocation66_spill] sm:$0xff]  ;;  %6006 = vpow2.f32 %v1268_v24 }
 0x38a   : > { %v5203_v22 = vsel %vm5162_vm8, %v4819_v15, %v5202_v16  ;;  %v1044_v5 = vmul.f32 -0.1, %v11112_v3  ;;  %v1282_v16 = vmul.f32 1.442695, %v1037_v50  ;;  %v4123_v55 = vmul.f32 %v5993_v60, %v9886_v30  ;;  %v11114_v39 = vld [vmem:[#allocation134_spill] sm:$0xff]  ;;  %v11116_v60 = vld [vmem:[#allocation17_spill] sm:$0xff] }
 0x38b   : > { %v4401_v48 = vpop.permute.xlu0 %4400  ;;  %v4398_v34 = vpop.permute.xlu1 %4397  ;;  %v5204_v58 = vsel %vm5164_vm2, %v4823_v6, %v5203_v22 }
 0x38c   : > { %4625 = vperm.xlu1 %5703, %v4128_v18   ;;  %4628 = vperm.xlu0 %5702, %v4129_v31   ;;  %v4827_v61 = vrot.slane %v4398_v34, %v10100_v53  ;;  %v4831_v15 = vrot.slane %v4401_v48, %v10100_v53  ;;  %v5995_v31 = vpop.eup %5994  ;;  %v1038_v48 = vmul.f32 -0.1, %v11114_v39  ;;  %v1296_v47 = vmul.f32 1.442695, %v1044_v5  ;;  %v11117_v5 = vld [vmem:[#allocation22_spill] sm:$0xff] }
 0x38d   : > { %v4130_v22 = vmul.f32 %v5995_v31, %v9908_v17  ;;  %v5997_v34 = vpop.eup %5996  ;;  %6008 = vpow2.f32 %v1282_v16 }
 0x38e   : > { %v5205_v0 = vsel %vm5166_vm11, %v4827_v61, %v5204_v58  ;;  %v5999_v17 = vpop.eup %5998  ;;  %v4110_v3 = vmul.f32 %v5997_v34, %v11116_v60  ;;  %v1284_v11 = vmul.f32 1.442695, %v1038_v48  ;;  %6010 = vpow2.f32 %v1296_v47  ;;  %v11121_v47 = vld [vmem:[#allocation87_spill] sm:$0xff] }
 0x38f   : > { %v4407_v32 = vpop.permute.xlu0 %4406  ;;  %v4404_v18 = vpop.permute.xlu1 %4403  ;;  %v5206_v24 = vsel %vm5168_vm13, %v4831_v15, %v5205_v0  ;;  %v4117_v0 = vmul.f32 %v5999_v17, %v11117_v5  ;;  %v11118_v15 = vld [vmem:[#allocation109_spill] sm:$0xff]  ;;  %v11122_v60 = vld [vmem:[#allocation19_spill] sm:$0xff] }
 0x390   : > { %4568 = vperm.xlu1 %5703, %v4109_v46   ;;  %4589 = vperm.xlu0 %5702, %v4116_v59   ;;  %v4835_v13 = vrot.slane %v4404_v18, %v10100_v53  ;;  %v4839_v6 = vrot.slane %v4407_v32, %v10100_v53  ;;  %v1270_v46 = vmul.f32 1.442695, %v1031_v63  ;;  %v6001_v2 = vpop.eup %6000  ;;  %v11115_v59 = vld [vmem:[#allocation135_spill] sm:$0xff]  ;;  %v1045_v18 = vmul.f32 -0.1, %v11118_v15 }
 0x391   : > { %v1039_v58 = vmul.f32 -0.1, %v11115_v59  ;;  %v6003_v32 = vpop.eup %6002 }
 0x392   : > { %v5207_v50 = vsel %vm5170_vm15, %v4835_v13, %v5206_v24  ;;  %v6005_v63 = vpop.eup %6004  ;;  %6012 = vpow2.f32 %v1270_v46  ;;  %v11120_v24 = vld [vmem:[#allocation28_spill] sm:$0xff]  ;;  %v1298_v48 = vmul.f32 1.442695, %v1045_v18  ;;  %v11124_v18 = vld [vmem:[#allocation30_spill] sm:$0xff] }
 0x393   : > { %v10131_v61 = vpop.permute.xlu0 %4412  ;;  %v10134_v51 = vpop.permute.xlu1 %4409  ;;  %v10137_v30 = vsel %vm5172_vm12, %v4839_v6, %v5207_v50  ;;  %v4124_v34 = vmul.f32 %v6003_v32, %v11120_v24  ;;  %v4131_v39 = vmul.f32 %v6005_v63, %v9916_v7  ;;  %6014 = vpow2.f32 %v1284_v11  ;;  %v11125_v24 = vld [vmem:[#allocation24_spill] sm:$0xff] }
 0x394   : > { %4610 = vperm.xlu1 %5703, %v4123_v55   ;;  %4631 = vperm.xlu0 %5702, %v4130_v22   ;;  %v6007_v16 = vpop.eup %6006  ;;  %v1286_v55 = vmul.f32 1.442695, %v1039_v58  ;;  %v11119_v22 = vld [vmem:[#allocation89_spill] sm:$0xff]  ;;  %v1047_v50 = vmul.f32 -0.1, %v11121_v47  ;;  %v4111_v58 = vmul.f32 %v6001_v2, %v11122_v60 }
 0x395   : > { %v1046_v6 = vmul.f32 -0.1, %v11119_v22 }
 0x396   : > { %6016 = vpow2.f32 %v1286_v55 }
 0x397   : > { %v10143_v31 = vpop.permute.xlu0 %4418  ;;  %v10145_v13 = vpop.permute.xlu1 %4415  ;;  %v1300_v46 = vmul.f32 1.442695, %v1046_v6  ;;  %6018 = vpow2.f32 %v1298_v48 }
 0x398   : > { %4571 = vperm.xlu1 %5703, %v4110_v3   ;;  %4592 = vperm.xlu0 %5702, %v4117_v0   ;;  %v11123_v3 = vld [vmem:[#allocation21_spill] sm:$0xff]  ;;  %v1302_v0 = vmul.f32 1.442695, %v1047_v50  ;;  %v6009_v7 = vpop.eup %6008 }
 0x399   : > { %v4118_v5 = vmul.f32 %v6007_v16, %v11123_v3  ;;  %v6011_v15 = vpop.eup %6010  ;;  %6020 = vpow2.f32 %v1300_v46  ;;  %v4125_v63 = vmul.f32 %v6009_v7, %v11124_v18 }
 0x39a   : > { %v4132_v55 = vmul.f32 %v6011_v15, %v9919_v49  ;;  %6022 = vpow2.f32 %v1302_v0  ;;  %v11127_v15 = vld [vmem:[#allocation31_spill] sm:$0xff] }
 0x39b   : > { %v10151_v17 = vpop.permute.xlu0 %4424  ;;  %v10153_v59 = vpop.permute.xlu1 %4421 }
 0x39c   : > { %4613 = vperm.xlu1 %5703, %v4124_v34   ;;  %4634 = vperm.xlu0 %5702, %v4131_v39   ;;  %v6013_v22 = vpop.eup %6012  ;;  %v11126_v39 = vld [vmem:[#allocation29_spill] sm:$0xff] }
 0x39d   : > { %v6015_v6 = vpop.eup %6014  ;;  %v4119_v34 = vmul.f32 %v6013_v22, %v11125_v24 }
 0x39e   : > { %v4126_v48 = vmul.f32 %v6015_v6, %v11126_v39  ;;  %v4691_v6 = vrot.slane %v9980_v10, %v10100_v53  ;;  %v4699_v10 = vrot.slane %v9988_v36, %v10100_v53 }
 0x39f   : > { %v10157_v32 = vpop.permute.xlu0 %4430  ;;  %v10159_v11 = vpop.permute.xlu1 %4427 }
 0x3a0   : > { %4574 = vperm.xlu1 %5703, %v4111_v58   ;;  %4595 = vperm.xlu0 %5702, %v4118_v5   ;;  %v6017_v50 = vpop.eup %6016 }
 0x3a1   : > { %v6019_v49 = vpop.eup %6018  ;;  %v4127_v60 = vmul.f32 %v6017_v50, %v9902_v44  ;;  %v4687_v44 = vrot.slane %v9970_v21, %v10100_v53  ;;  %v4719_v50 = vrot.slane %v10002_v42, %v10100_v53  ;;  %v4667_v42 = vrot.slane %v9956_v41, %v10100_v53 }
 0x3a2   : > { %v4133_v58 = vmul.f32 %v6019_v49, %v9924_v1  ;;  %v4683_v1 = vrot.slane %v9972_v57, %v10100_v53  ;;  %v4723_v49 = vrot.slane %v10012_v62, %v10100_v53  ;;  %v4727_v41 = vrot.slane %v10010_v29, %v10100_v53 }
 0x3a3   : > { %v10163_v2 = vpop.permute.xlu0 %4436  ;;  %v10165_v16 = vpop.permute.xlu1 %4433 }
 0x3a4   : > { %4616 = vperm.xlu1 %5703, %v4125_v63   ;;  %4637 = vperm.xlu0 %5702, %v4132_v55   ;;  %v6021_v5 = vpop.eup %6020  ;;  %v5174_v21 = vsel %vm5160_vm7, %v4687_v44, %v4683_v1 }
 0x3a5   : > { %v6023_v7 = vpop.eup %6022  ;;  %v4134_v18 = vmul.f32 %v6021_v5, %v11127_v15  ;;  %v5175_v57 = vsel %vm5162_vm8, %v4691_v6, %v5174_v21  ;;  %v4703_v15 = vrot.slane %v9986_v52, %v10100_v53  ;;  %v4739_v21 = vrot.slane %v10028_v40, %v10100_v53 }
 0x3a6   : > { %v4135_v63 = vmul.f32 %v6023_v7, %v9932_v8  ;;  %v4651_v8 = vrot.slane %v9938_v54, %v10100_v53  ;;  %v4715_v54 = vrot.slane %v10004_v35, %v10100_v53  ;;  %v4663_v7 = vrot.slane %v9946_v23, %v10100_v53 }
 0x3a7   : > { %v10169_v47 = vpop.permute.xlu0 %4442  ;;  %v10171_v46 = vpop.permute.xlu1 %4439  ;;  %v4779_v40 = vrot.slane %v10068_v19, %v10100_v53 }
 0x3a8   : > { %4598 = vperm.xlu1 %5703, %v4119_v34   ;;  %4619 = vperm.xlu0 %5702, %v4126_v48   ;;  %v4655_v34 = vrot.slane %v9940_v38, %v10100_v53  ;;  %v4659_v48 = vrot.slane %v9948_v28, %v10100_v53  ;;  %v4695_v38 = vrot.slane %v9978_v9, %v10100_v53 }
 0x3a9   : > { %v4707_v9 = vrot.slane %v9996_v20, %v10100_v53  ;;  %v5181_v62 = vsel %vm5160_vm7, %v4719_v50, %v4715_v54  ;;  %v4671_v20 = vrot.slane %v9954_v14, %v10100_v53  ;;  %v4751_v14 = vrot.slane %v10034_v56, %v10100_v53  ;;  %v11129_v50 = vld [vmem:[#allocation35_spill] sm:$0xff]  ;;  %v11130_v56 = vld [vmem:[#allocation34_spill] sm:$0xff] }
 0x3aa   : > { %v5176_v5 = vsel %vm5164_vm2, %v4695_v38, %v5175_v57  ;;  %v4747_v57 = vrot.slane %v10036_v45, %v10100_v53  ;;  %v4735_v54 = vrot.slane %v11129_v50, %v10100_v53  ;;  %v4755_v38 = vrot.slane %v10044_v26, %v10100_v53 }
 0x3ab   : > { %v10175_v3 = vpop.permute.xlu0 %4448  ;;  %v10177_v0 = vpop.permute.xlu1 %4445  ;;  %v5177_v35 = vsel %vm5166_vm11, %v4699_v10, %v5176_v5  ;;  %v4787_v45 = vrot.slane %v10076_v12, %v10100_v53 }
 0x3ac   : > { %4640 = vperm.xlu1 %5703, %v4133_v58   ;;  %4622 = vperm.xlu0 %5702, %v4127_v60   ;;  %v5161_v60 = vsel %vm5160_vm7, %v4655_v34, %v4651_v8  ;;  %v5178_v6 = vsel %vm5168_vm13, %v4703_v15, %v5177_v35  ;;  %v11128_v8 = vld [vmem:[#allocation33_spill] sm:$0xff] }
 0x3ad   : > { %v5163_v36 = vsel %vm5162_vm8, %v4659_v48, %v5161_v60  ;;  %v4675_v34 = vrot.slane %v11128_v8, %v10100_v53  ;;  %v5179_v48 = vsel %vm5170_vm15, %v4707_v9, %v5178_v6  ;;  %v11132_v9 = vld [vmem:[#allocation36_spill] sm:$0xff]  ;;  %v4795_v8 = vrot.slane %v10084_v4, %v10100_v53 }
 0x3ae   : > { %v5165_v23 = vsel %vm5164_vm2, %v4663_v7, %v5163_v36  ;;  %v4711_v36 = vrot.slane %v11130_v56, %v10100_v53  ;;  %v4743_v19 = vrot.slane %v11132_v9, %v10100_v53  ;;  %v11136_v56 = vld [vmem:[#allocation42_spill] sm:$0xff] }
 0x3af   : > { %v10181_v55 = vpop.permute.xlu0 %4454  ;;  %v10183_v22 = vpop.permute.xlu1 %4451  ;;  %v5167_v52 = vsel %vm5166_vm11, %v4667_v42, %v5165_v23  ;;  %v11131_v42 = vld [vmem:[#allocation32_spill] sm:$0xff] }
 0x3b0   : > { %4643 = vperm.xlu1 %5703, %v4134_v18   ;;  %4646 = vperm.xlu0 %5702, %v4135_v63   ;;  %v5182_v18 = vsel %vm5162_vm8, %v4723_v49, %v5181_v62  ;;  %v4731_v63 = vrot.slane %v10020_v43, %v10100_v53  ;;  %v4783_v49 = vrot.slane %v10066_v27, %v10100_v53 }
 0x3b1   : > { %v5183_v43 = vsel %vm5164_vm2, %v4727_v41, %v5182_v18  ;;  %v5169_v5 = vsel %vm5168_vm13, %v4671_v20, %v5167_v52  ;;  %v4679_v35 = vrot.slane %v11131_v42, %v10100_v53  ;;  %v5188_v62 = vsel %vm5160_vm7, %v4751_v14, %v4747_v57  ;;  %v11133_v18 = vld [vmem:[#allocation75_spill] sm:$0xff] }
 0x3b2   : > { %v5184_v29 = vsel %vm5166_vm11, %v4731_v63, %v5183_v43  ;;  %v5171_v27 = vsel %vm5170_vm15, %v4675_v34, %v5169_v5  ;;  %v5180_v15 = vsel %vm5172_vm12, %v4711_v36, %v5179_v48  ;;  %v4759_v63 = vrot.slane %v11133_v18, %v10100_v53 }
 0x3b3   : > { %v10191_v24 = vpop.permute.xlu0 %4460  ;;  %v10197_v39 = vpop.permute.xlu1 %4457  ;;  %v5185_v26 = vsel %vm5168_vm13, %v4735_v54, %v5184_v29  ;;  %v5189_v41 = vsel %vm5162_vm8, %v4755_v38, %v5188_v62  ;;  %v4763_v20 = vrot.slane %v10052_v37, %v10100_v53  ;;  %v5195_v23 = vsel %vm5160_vm7, %v4783_v49, %v4779_v40  ;;  %v11135_v38 = vld [vmem:[#allocation104_spill] sm:$0xff] }
 0x3b4   : > { %v5186_v12 = vsel %vm5170_vm15, %v4739_v21, %v5185_v26  ;;  %v5196_v52 = vsel %vm5162_vm8, %v4787_v45, %v5195_v23  ;;  %v4847_v34 = vrot.slane %v10131_v61, %v10100_v53  ;;  %v4843_v43 = vrot.slane %v10134_v51, %v10100_v53 }
 0x3b5   : > { %v4791_v48 = vrot.slane %v10074_v25, %v10100_v53  ;;  %v4851_v37 = vrot.slane %v10145_v13, %v10100_v53  ;;  %v5190_v29 = vsel %vm5164_vm2, %v4759_v63, %v5189_v41  ;;  %v5298_v14 = vsel %vm535_vm1, %v5180_v15, 0.0  ;;  %v11134_v25 = vld [vmem:[#allocation39_spill] sm:$0xff] }
 0x3b6   : > { %v5187_v4 = vsel %vm5172_vm12, %v4743_v19, %v5186_v12  ;;  %v5173_v57 = vsel %vm5172_vm12, %v4679_v35, %v5171_v27  ;;  %v4767_v61 = vrot.slane %v10050_v33, %v10100_v53  ;;  %v5191_v51 = vsel %vm5166_vm11, %v4763_v20, %v5190_v29  ;;  %v11138_v12 = vld [vmem:[#allocation40_spill] sm:$0xff] }
 0x3b7   : > { %v10213_v28 = vpop.permute.xlu0 %4466  ;;  %v10216_v58 = vpop.permute.xlu1 %4463  ;;  %v4771_v50 = vrot.slane %v11134_v25, %v10100_v53  ;;  %v5197_v13 = vsel %vm5164_vm2, %v4791_v48, %v5196_v52  ;;  %v4799_v49 = vrot.slane %v11135_v38, %v10100_v53  ;;  %v4803_v36 = vrot.slane %v11136_v56, %v10100_v53 }
 0x3b8   : > { %v5198_v40 = vsel %vm5166_vm11, %v4795_v8, %v5197_v13  ;;  %v5209_v45 = vsel %vm5160_vm7, %v4847_v34, %v4843_v43  ;;  %v4859_v5 = vrot.slane %v10153_v59, %v10100_v53  ;;  %v4879_v42 = vrot.slane %v10163_v2, %v10100_v53  ;;  %v11137_v59 = vld [vmem:[#allocation37_spill] sm:$0xff] }
 0x3b9   : > { %v5210_v33 = vsel %vm5162_vm8, %v4851_v37, %v5209_v45  ;;  %v4875_v35 = vrot.slane %v10165_v16, %v10100_v53  ;;  %v4855_v26 = vrot.slane %v10143_v31, %v10100_v53  ;;  %v4883_v27 = vrot.slane %v10171_v46, %v10100_v53 }
 0x3ba   : > { %v4911_v9 = vrot.slane %v10191_v24, %v10100_v53  ;;  %v4907_v19 = vrot.slane %v10197_v39, %v10100_v53  ;;  %v4775_v2 = vrot.slane %v11137_v59, %v10100_v53  ;;  %v4915_v16 = vrot.slane %v10216_v58, %v10100_v53 }
 0x3bb   : > { %v10233_v44 = vpop.permute.xlu0 %4472  ;;  %v10237_v1 = vpop.permute.xlu1 %4469  ;;  %v5199_v31 = vsel %vm5168_vm13, %v4799_v49, %v5198_v40  ;;  %v5192_v46 = vsel %vm5168_vm13, %v4767_v61, %v5191_v51  ;;  %v4807_v24 = vrot.slane %v11138_v12, %v10100_v53  ;;  %v5211_v18 = vsel %vm5164_vm2, %v4855_v26, %v5210_v33 }
 0x3bc   : > { %v5200_v39 = vsel %vm5170_vm15, %v4803_v36, %v5199_v31  ;;  %v5193_v63 = vsel %vm5170_vm15, %v4771_v50, %v5192_v46  ;;  %v4863_v41 = vrot.slane %v10151_v17, %v10100_v53  ;;  %v5212_v58 = vsel %vm5166_vm11, %v4859_v5, %v5211_v18 }
 0x3bd   : > { %v4867_v20 = vrot.slane %v10159_v11, %v10100_v53  ;;  %v5216_v23 = vsel %vm5160_vm7, %v4879_v42, %v4875_v35  ;;  %v4887_v52 = vrot.slane %v10169_v47, %v10100_v53  ;;  %v4891_v34 = vrot.slane %v10177_v0, %v10100_v53 }
 0x3be   : > { %v5217_v8 = vsel %vm5162_vm8, %v4883_v27, %v5216_v23  ;;  %v5223_v43 = vsel %vm5160_vm7, %v4911_v9, %v4907_v19  ;;  %v4923_v11 = vrot.slane %v10237_v1, %v10100_v53  ;;  %v4919_v0 = vrot.slane %v10213_v28, %v10100_v53 }
 0x3bf   : > { %v10255_v10 = vpop.permute.xlu0 %4478  ;;  %v10265_v60 = vpop.permute.xlu1 %4475  ;;  %v5224_v17 = vsel %vm5162_vm8, %v4915_v16, %v5223_v43  ;;  %v5295_v51 = vsel %vm535_vm1, %v5173_v57, 0.0  ;;  %v5218_v25 = vsel %vm5164_vm2, %v4887_v52, %v5217_v8  ;;  %v5201_v1 = vsel %vm5172_vm12, %v4807_v24, %v5200_v39 }
 0x3c0   : > { %v5194_v50 = vsel %vm5172_vm12, %v4775_v2, %v5193_v63  ;;  %v5219_v13 = vsel %vm5166_vm11, %v4891_v34, %v5218_v25  ;;  %v5225_v28 = vsel %vm5164_vm2, %v4919_v0, %v5224_v17  ;;  %v4899_v57 = vrot.slane %v10183_v22, %v10100_v53 }
 0x3c1   : > { %v5226_v38 = vsel %vm5166_vm11, %v4923_v11, %v5225_v28  ;;  %v4931_v49 = vrot.slane %v10265_v60, %v10100_v53  ;;  %v4927_v36 = vrot.slane %v10233_v44, %v10100_v53  ;;  %v5307_v42 = vsel %vm535_vm1, %v5201_v1, 0.0 }
 0x3c2   : > { %v4935_v2 = vrot.slane %v10255_v10, %v10100_v53  ;;  %v4903_v46 = vrot.slane %v10181_v55, %v10100_v53  ;;  %v5310_v63 = vsel %vm535_vm1, %v10137_v30, 0.0 }
 0x3c3   : > { %v10279_v7 = vpop.permute.xlu0 %4484  ;;  %v10289_v6 = vpop.permute.xlu1 %4481  ;;  %v5227_v26 = vsel %vm5168_vm13, %v4927_v36, %v5226_v38 }
 0x3c4   : > { %v4943_v37 = vrot.slane %v10279_v7, %v10100_v53  ;;  %v4939_v47 = vrot.slane %v10289_v6, %v10100_v53  ;;  %v5213_v7 = vsel %vm5168_vm13, %v4863_v41, %v5212_v58  ;;  %v4871_v6 = vrot.slane %v10157_v32, %v10100_v53 }
 0x3c5   : > { %v4895_v32 = vrot.slane %v10175_v3, %v10100_v53  ;;  %v5304_v3 = vsel %vm535_vm1, %v5194_v50, 0.0 }
 0x3c6   : > { %v5230_v40 = vsel %vm5160_vm7, %v4943_v37, %v4939_v47 }
 0x3c7   : > { %v10303_v21 = vpop.permute.xlu0 %4490  ;;  %v4488_v54 = vpop.permute.xlu1 %4487  ;;  %v5220_v27 = vsel %vm5168_vm13, %v4895_v32, %v5219_v13 }
 0x3c8   : > { %v4947_v61 = vrot.slane %v4488_v54, %v10100_v53  ;;  %v4951_v33 = vrot.slane %v10303_v21, %v10100_v53  ;;  %v5228_v21 = vsel %vm5170_vm15, %v4931_v49, %v5227_v26  ;;  %v5221_v59 = vsel %vm5170_vm15, %v4899_v57, %v5220_v27 }
 0x3c9   : > { %v5229_v41 = vsel %vm5172_vm12, %v4935_v2, %v5228_v21  ;;  %v5222_v55 = vsel %vm5172_vm12, %v4903_v46, %v5221_v59 }
 0x3ca   : > { %v5231_v45 = vsel %vm5162_vm8, %v4947_v61, %v5230_v40  ;;  %v5319_v30 = vsel %vm535_vm1, %v5229_v41, 0.0  ;;  %v5316_v11 = vsel %vm535_vm1, %v5222_v55, 0.0 }
 0x3cb   : > { %v10335_v62 = vpop.permute.xlu0 %4496  ;;  %v10341_v15 = vpop.permute.xlu1 %4493  ;;  %v5232_v9 = vsel %vm5164_vm2, %v4951_v33, %v5231_v45 }
 0x3cc   : > { %v4955_v22 = vrot.slane %v10341_v15, %v10100_v53  ;;  %v4959_v12 = vrot.slane %v10335_v62, %v10100_v53 }
 0x3ce   : > { %v5233_v16 = vsel %vm5166_vm11, %v4955_v22, %v5232_v9 }
 0x3cf   : > { %5299 = vadd.xlane.f32.xlu0 %v5298_v14  ;;  %v10362_v48 = vpop.permute.xlu0 %4502  ;;  %v4500_v29 = vpop.permute.xlu1 %4499  ;;  %v5301_v14 = vsel %vm535_vm1, %v5187_v4, 0.0  ;;  %v5214_v4 = vsel %vm5170_vm15, %v4867_v20, %v5213_v7  ;;  %v5234_v62 = vsel %vm5168_vm13, %v4959_v12, %v5233_v16 }
 0x3d0   : > { %v5215_v44 = vsel %vm5172_vm12, %v4871_v6, %v5214_v4  ;;  %v4963_v15 = vrot.slane %v4500_v29, %v10100_v53  ;;  %v4967_v8 = vrot.slane %v10362_v48, %v10100_v53 }
 0x3d1   : > { %v5313_v18 = vsel %vm535_vm1, %v5215_v44, 0.0 }
 0x3d2   : > { %v5235_v52 = vsel %vm5170_vm15, %v4963_v15, %v5234_v62 }
 0x3d3   : > { %5302 = vadd.xlane.f32.xlu0 %v5301_v14  ;;  %v4509_v54 = vpop.permute.xlu0 %4508  ;;  %v4506_v56 = vpop.permute.xlu1 %4505  ;;  %v5236_v29 = vsel %vm5172_vm12, %v4967_v8, %v5235_v52 }
 0x3d4   : > { %5296 = vadd.xlane.f32.xlu1 %v5295_v51  ;;  %v4975_v60 = vrot.slane %v4509_v54, %v10100_v53  ;;  %v4971_v5 = vrot.slane %v4506_v56, %v10100_v53  ;;  %v5322_v51 = vsel %vm535_vm1, %v5236_v29, 0.0 }
 0x3d6   : > { %v5237_v24 = vsel %vm5160_vm7, %v4975_v60, %v4971_v5 }
 0x3d7   : > { %5308 = vadd.xlane.f32.xlu0 %v5307_v42  ;;  %v4515_v35 = vpop.permute.xlu0 %4514  ;;  %v4512_v19 = vpop.permute.xlu1 %4511 }
 0x3d8   : > { %5305 = vadd.xlane.f32.xlu1 %v5304_v3  ;;  %v4979_v31 = vrot.slane %v4512_v19, %v10100_v53  ;;  %v4983_v58 = vrot.slane %v4515_v35, %v10100_v53 }
 0x3da   : > { %v5238_v39 = vsel %vm5162_vm8, %v4979_v31, %v5237_v24 }
 0x3db   : > { %5314 = vadd.xlane.f32.xlu0 %v5313_v18  ;;  %v4521_v10 = vpop.permute.xlu0 %4520  ;;  %v4518_v20 = vpop.permute.xlu1 %4517  ;;  %v5239_v34 = vsel %vm5164_vm2, %v4983_v58, %v5238_v39 }
 0x3dc   : > { %5311 = vadd.xlane.f32.xlu1 %v5310_v63  ;;  %v4987_v23 = vrot.slane %v4518_v20, %v10100_v53  ;;  %v4991_v37 = vrot.slane %v4521_v10, %v10100_v53 }
 0x3de   : > { %v5240_v43 = vsel %vm5166_vm11, %v4987_v23, %v5239_v34 }
 0x3df   : > { %5320 = vadd.xlane.f32.xlu0 %v5319_v30  ;;  %v4527_v17 = vpop.permute.xlu0 %4526  ;;  %v4524_v47 = vpop.permute.xlu1 %4523  ;;  %v5241_v61 = vsel %vm5168_vm13, %v4991_v37, %v5240_v43 }
 0x3e0   : > { %5317 = vadd.xlane.f32.xlu1 %v5316_v11  ;;  %v4995_v0 = vrot.slane %v4524_v47, %v10100_v53  ;;  %v4999_v48 = vrot.slane %v4527_v17, %v10100_v53 }
 0x3e2   : > { %v5242_v25 = vsel %vm5170_vm15, %v4995_v0, %v5241_v61 }
 0x3e3   : > { %v4533_v14 = vpop.permute.xlu0 %4532  ;;  %v4530_v1 = vpop.permute.xlu1 %4529  ;;  %v5243_v50 = vsel %vm5172_vm12, %v4999_v48, %v5242_v25 }
 0x3e4   : > { %5323 = vadd.xlane.f32.xlu1 %v5322_v51  ;;  %v5325_v7 = vsel %vm535_vm1, %v5243_v50, 0.0  ;;  %v5007_v6 = vrot.slane %v4533_v14, %v10100_v53  ;;  %v5003_v13 = vrot.slane %v4530_v1, %v10100_v53 }
 0x3e5   : > { %5326 = vadd.xlane.f32.xlu0 %v5325_v7 }
 0x3e6   : > { %v5244_v57 = vsel %vm5160_vm7, %v5007_v6, %v5003_v13 }
 0x3e7   : > { %v4539_v28 = vpop.permute.xlu0 %4538  ;;  %v4536_v54 = vpop.permute.xlu1 %4535 }
 0x3e8   : > { %v5011_v4 = vrot.slane %v4536_v54, %v10100_v53  ;;  %v5015_v40 = vrot.slane %v4539_v28, %v10100_v53 }
 0x3ea   : > { %v5245_v38 = vsel %vm5162_vm8, %v5011_v4, %v5244_v57 }
 0x3eb   : > { %v4545_v49 = vpop.permute.xlu0 %4544  ;;  %v4542_v56 = vpop.permute.xlu1 %4541  ;;  %v5246_v36 = vsel %vm5164_vm2, %v5015_v40, %v5245_v38 }
 0x3ec   : > { %v5019_v32 = vrot.slane %v4542_v56, %v10100_v53  ;;  %v5023_v33 = vrot.slane %v4545_v49, %v10100_v53 }
 0x3ee   : > { %v5247_v45 = vsel %vm5166_vm11, %v5019_v32, %v5246_v36 }
 0x3ef   : > { %v4551_v22 = vpop.permute.xlu0 %4550  ;;  %v4548_v60 = vpop.permute.xlu1 %4547  ;;  %v5248_v35 = vsel %vm5168_vm13, %v5023_v33, %v5247_v45 }
 0x3f0   : > { %v5027_v5 = vrot.slane %v4548_v60, %v10100_v53  ;;  %v5031_v42 = vrot.slane %v4551_v22, %v10100_v53 }
 0x3f2   : > { %v5249_v44 = vsel %vm5170_vm15, %v5027_v5, %v5248_v35 }
 0x3f3   : > { %v4557_v3 = vpop.permute.xlu0 %4556  ;;  %v4554_v26 = vpop.permute.xlu1 %4553  ;;  %v5250_v27 = vsel %vm5172_vm12, %v5031_v42, %v5249_v44 }
 0x3f4   : > { %v5328_v9 = vsel %vm535_vm1, %v5250_v27, 0.0  ;;  %v5039_v20 = vrot.slane %v4557_v3, %v10100_v53  ;;  %v5035_v55 = vrot.slane %v4554_v26, %v10100_v53 }
 0x3f5   : > { %5329 = vadd.xlane.f32.xlu1 %v5328_v9 }
 0x3f6   : > { %v5251_v8 = vsel %vm5160_vm7, %v5039_v20, %v5035_v55 }
 0x3f7   : > { %v4563_v19 = vpop.permute.xlu0 %4562  ;;  %v4560_v21 = vpop.permute.xlu1 %4559 }
 0x3f8   : > { %v5043_v23 = vrot.slane %v4560_v21, %v10100_v53  ;;  %v5047_v11 = vrot.slane %v4563_v19, %v10100_v53 }
 0x3fa   : > { %v5252_v30 = vsel %vm5162_vm8, %v5043_v23, %v5251_v8 }
 0x3fb   : > { %v4578_v59 = vpop.permute.xlu0 %4577  ;;  %v4566_v2 = vpop.permute.xlu1 %4565  ;;  %v5253_v29 = vsel %vm5164_vm2, %v5047_v11, %v5252_v30 }
 0x3fc   : > { %v5051_v43 = vrot.slane %v4566_v2, %v10100_v53  ;;  %v5067_v51 = vrot.slane %v4578_v59, %v10100_v53 }
 0x3fe   : > { %v5254_v61 = vsel %vm5166_vm11, %v5051_v43, %v5253_v29 }
 0x3ff   : > { %v4584_v16 = vpop.permute.xlu0 %4583  ;;  %v4581_v15 = vpop.permute.xlu1 %4580 }
 0x400   : > { %v5071_v0 = vrot.slane %v4581_v15, %v10100_v53  ;;  %v5075_v7 = vrot.slane %v4584_v16, %v10100_v53 }
 0x402   : > { %v5258_v6 = vsel %vm5160_vm7, %v5071_v0, %v5067_v51 }
 0x403   : > { %v4605_v31 = vpop.permute.xlu0 %4604  ;;  %v4602_v46 = vpop.permute.xlu1 %4601  ;;  %v5259_v36 = vsel %vm5162_vm8, %v5075_v7, %v5258_v6 }
 0x404   : > { %v5103_v4 = vrot.slane %v4605_v31, %v10100_v53  ;;  %v5099_v57 = vrot.slane %v4602_v46, %v10100_v53 }
 0x406   : > { %v5265_v42 = vsel %vm5160_vm7, %v5103_v4, %v5099_v57 }
 0x407   : > { %v4608_v12 = vpop.permute.xlu0 %4607  ;;  %v4587_v24 = vpop.permute.xlu1 %4586 }
 0x408   : > { %v5079_v13 = vrot.slane %v4587_v24, %v10100_v53  ;;  %v5107_v56 = vrot.slane %v4608_v12, %v10100_v53 }
 0x40a   : > { %v5260_v33 = vsel %vm5164_vm2, %v5079_v13, %v5259_v36  ;;  %v5266_v26 = vsel %vm5162_vm8, %v5107_v56, %v5265_v42 }
 0x40b   : > { %v10461_v18 = vpop.permute.xlu0 %4628  ;;  %v10463_v39 = vpop.permute.xlu1 %4625 }
 0x40c   : > { %v5135_v21 = vrot.slane %v10461_v18, %v10100_v53  ;;  %v5131_v59 = vrot.slane %v10463_v39, %v10100_v53 }
 0x40e   : > { %v5272_v20 = vsel %vm5160_vm7, %v5135_v21, %v5131_v59  ;;  %vm5447_vm7 = vcmask 720512  }
 0x40f   : > { %v4590_v10 = vpop.permute.xlu0 %4589  ;;  %v4569_v63 = vpop.permute.xlu1 %4568 }
 0x410   : > { %v5055_v37 = vrot.slane %v4569_v63, %v10100_v53  ;;  %v5083_v38 = vrot.slane %v4590_v10, %v10100_v53 }
 0x412   : > { %v5255_v25 = vsel %vm5168_vm13, %v5055_v37, %v5254_v61  ;;  %v5261_v35 = vsel %vm5166_vm11, %v5083_v38, %v5260_v33 }
 0x413   : > { %v10465_v41 = vpop.permute.xlu0 %4631  ;;  %v4611_v58 = vpop.permute.xlu1 %4610 }
 0x414   : > { %v5111_v45 = vrot.slane %v4611_v58, %v10100_v53  ;;  %v5139_v15 = vrot.slane %v10465_v41, %v10100_v53 }
 0x416   : > { %v5267_v2 = vsel %vm5164_vm2, %v5111_v45, %v5266_v26  ;;  %v5273_v23 = vsel %vm5162_vm8, %v5139_v15, %v5272_v20  ;;  %vm5454_vm8 = vcmask 786112  }
 0x417   : > { %v4593_v62 = vpop.permute.xlu0 %4592  ;;  %v4572_v52 = vpop.permute.xlu1 %4571 }
 0x418   : > { %v5059_v47 = vrot.slane %v4572_v52, %v10100_v53  ;;  %v5087_v32 = vrot.slane %v4593_v62, %v10100_v53 }
 0x41a   : > { %v5256_v50 = vsel %vm5170_vm15, %v5059_v47, %v5255_v25  ;;  %v5262_v27 = vsel %vm5168_vm13, %v5087_v32, %v5261_v35 }
 0x41b   : > { %v10471_v34 = vpop.permute.xlu0 %4634  ;;  %v4614_v17 = vpop.permute.xlu1 %4613 }
 0x41c   : > { %v5115_v60 = vrot.slane %v4614_v17, %v10100_v53  ;;  %v5143_v24 = vrot.slane %v10471_v34, %v10100_v53 }
 0x41e   : > { %v5268_v31 = vsel %vm5166_vm11, %v5115_v60, %v5267_v2  ;;  %v5274_v34 = vsel %vm5164_vm2, %v5143_v24, %v5273_v23  ;;  %vm5461_vm2 = vcmask 851712  }
 0x41f   : > { %v4596_v48 = vpop.permute.xlu0 %4595  ;;  %v4575_v14 = vpop.permute.xlu1 %4574 }
 0x420   : > { %v5063_v1 = vrot.slane %v4575_v14, %v10100_v53  ;;  %v5091_v22 = vrot.slane %v4596_v48, %v10100_v53 }
 0x422   : > { %v5257_v54 = vsel %vm5172_vm12, %v5063_v1, %v5256_v50  ;;  %v5263_v16 = vsel %vm5170_vm15, %v5091_v22, %v5262_v27  ;;  %v11139_v1 = vld [vmem:[#allocation2_spill] sm:$0xff] }
 0x423   : > { %v4638_v28 = vpop.permute.xlu0 %4637  ;;  %v4617_v49 = vpop.permute.xlu1 %4616  ;;  %v5331_v40 = vsel %vm535_vm1, %v5257_v54, 0.0  ;;  %v5379_v50 = vadd.s32 4294967288, %v11139_v1  ;;  %v5393_v13 = vadd.s32 4294967272, %v11139_v1  ;;  %v11140_v54 = vld [vmem:[#allocation76_spill] sm:$0xff]  ;;  %v5400_v22 = vadd.s32 4294967264, %v11139_v1 }
 0x424   : > { %5332 = vadd.xlane.f32.xlu0 %v5331_v40  ;;  %v5119_v3 = vrot.slane %v4617_v49, %v10100_v53  ;;  %v5147_v58 = vrot.slane %v4638_v28, %v10100_v53  ;;  %v5386_v28 = vadd.s32 4294967280, %v11139_v1  ;;  %v5407_v49 = vadd.s32 4294967256, %v11139_v1 }
 0x425   : > { %v5382_v4 = vsub.s32 %v5379_v50, %v11140_v54  ;;  %v5396_v56 = vsub.s32 %v5393_v13, %v11140_v54  ;;  %v5403_v26 = vsub.s32 %v5400_v22, %v11140_v54  ;;  %v5435_v59 = vadd.s32 4294967224, %v11139_v1 }
 0x426   : > { %v5269_v18 = vsel %vm5168_vm13, %v5119_v3, %v5268_v31  ;;  %v5275_v43 = vsel %vm5166_vm11, %v5147_v58, %v5274_v34  ;;  %v5389_v36 = vsub.s32 %v5386_v28, %v11140_v54  ;;  %vm5468_vm11 = vcmask 917312  }
 0x427   : > { %v4620_v5 = vpop.permute.xlu0 %4619  ;;  %v4599_v44 = vpop.permute.xlu1 %4598  ;;  %v5438_v58 = vsub.s32 %v5435_v59, %v11140_v54 }
 0x428   : > { %v5123_v9 = vrot.slane %v4620_v5, %v10100_v53  ;;  %v5095_v19 = vrot.slane %v4599_v44, %v10100_v53  ;;  %v5410_v5 = vsub.s32 %v5407_v49, %v11140_v54 }
 0x42a   : > { %v5264_v12 = vsel %vm5172_vm12, %v5095_v19, %v5263_v16  ;;  %v5270_v41 = vsel %vm5170_vm15, %v5123_v9, %v5269_v18  ;;  %v5414_v9 = vadd.s32 4294967248, %v11139_v1 }
 0x42b   : > { %v4623_v46 = vpop.permute.xlu0 %4622  ;;  %v4641_v39 = vpop.permute.xlu1 %4640  ;;  %v5334_v63 = vsel %vm535_vm1, %v5264_v12, 0.0 }
 0x42c   : > { %v5127_v10 = vrot.slane %v4623_v46, %v10100_v53  ;;  %5335 = vadd.xlane.f32.xlu1 %v5334_v63  ;;  %v5151_v55 = vrot.slane %v4641_v39, %v10100_v53  ;;  %v5417_v24 = vsub.s32 %v5414_v9, %v11140_v54 }
 0x42e   : > { %v5271_v62 = vsel %vm5172_vm12, %v5127_v10, %v5270_v41  ;;  %v5276_v11 = vsel %vm5168_vm13, %v5151_v55, %v5275_v43  ;;  %v5428_v10 = vadd.s32 4294967232, %v11139_v1  ;;  %v5442_v41 = vadd.s32 4294967216, %v11139_v1 }
 0x42f   : > { %v4647_v52 = vpop.permute.xlu0 %4646  ;;  %v5337_v8 = vsel %vm535_vm1, %v5271_v62, 0.0  ;;  %v4644_v30 = vpop.permute.xlu1 %4643  ;;  %v5456_v43 = vadd.s32 4294967200, %v11139_v1  ;;  %vm5475_vm13 = vcmask 982912  }
 0x430   : > { %5338 = vadd.xlane.f32.xlu0 %v5337_v8  ;;  %v5155_v17 = vrot.slane %v4644_v30, %v10100_v53  ;;  %v5159_v37 = vrot.slane %v4647_v52, %v10100_v53  ;;  %v5449_v52 = vadd.s32 4294967208, %v11139_v1  ;;  %v5431_v34 = vsub.s32 %v5428_v10, %v11140_v54 }
 0x432   : > { %v5277_v47 = vsel %vm5170_vm15, %v5155_v17, %v5276_v11  ;;  %v5463_v11 = vadd.s32 4294967192, %v11139_v1  ;;  %vm5482_vm15 = vcmask 1048512  }
 0x433   : > { %v5278_v29 = vsel %vm5172_vm12, %v5159_v37, %v5277_v47  ;;  %v5445_v47 = vsub.s32 %v5442_v41, %v11140_v54 }
 0x434   : > { %v5340_v0 = vsel %vm535_vm1, %v5278_v29, 0.0  ;;  %vm5384_vm1 = vcmask 130112   ;;  %v5466_v28 = vsub.s32 %v5463_v11, %v11140_v54 }
 0x435   : > { %5341 = vadd.xlane.f32.xlu1 %v5340_v0 }
 0x45c   : > { %v5300_v48 = vpop.xlane.xlu0 %5299 }
 0x45d   : > { %v5344_v57 = vmul.f32 0.5, %v5300_v48  ;;  %v5470_v48 = vadd.s32 4294967184, %v11139_v1 }
 0x45f   : > { %v5383_v60 = vrot.slane %v5344_v57, %v5382_v4  ;;  %v5477_v57 = vadd.s32 4294967176, %v11139_v1 }
 0x460   : > { %v5303_v14 = vpop.xlane.xlu0 %5302 }
 0x461   : > { %v5297_v61 = vpop.xlane.xlu1 %5296  ;;  %v5345_v45 = vmul.f32 0.5, %v5303_v14 }
 0x462   : > { %v5343_v6 = vmul.f32 0.5, %v5297_v61 }
 0x463   : > { %v5390_v44 = vrot.slane %v5345_v45, %v5389_v36 }
 0x464   : > { %v5309_v25 = vpop.xlane.xlu0 %5308  ;;  %v5378_v40 = vrot.slane %v5343_v6, %v10100_v53  ;;  %v5421_v53 = vadd.s32 4294967240, %v11139_v1 }
 0x465   : > { %v5306_v51 = vpop.xlane.xlu1 %5305  ;;  %v5347_v27 = vmul.f32 0.5, %v5309_v25 }
 0x466   : > { %v5346_v32 = vmul.f32 0.5, %v5306_v51  ;;  %v5385_v42 = vsel %vm5384_vm1, %v5383_v60, %v5378_v40  ;;  %v5424_v31 = vsub.s32 %v5421_v53, %v11140_v54  ;;  %v5452_v51 = vsub.s32 %v5449_v52, %v11140_v54 }
 0x467   : > { %v5392_v21 = vsel %vm5391_vm10, %v5390_v44, %v5385_v42  ;;  %v5404_v12 = vrot.slane %v5347_v27, %v5403_v26  ;;  %v5473_v40 = vsub.s32 %v5470_v48, %v11140_v54 }
 0x468   : > { %v5315_v38 = vpop.xlane.xlu0 %5314  ;;  %v5397_v35 = vrot.slane %v5346_v32, %v5396_v56 }
 0x469   : > { %v5312_v7 = vpop.xlane.xlu1 %5311  ;;  %v5349_v18 = vmul.f32 0.5, %v5315_v38 }
 0x46a   : > { %v5348_v3 = vmul.f32 0.5, %v5312_v7  ;;  %v5399_v16 = vsel %vm5398_vm3, %v5397_v35, %v5392_v21  ;;  %v5459_v7 = vsub.s32 %v5456_v43, %v11140_v54 }
 0x46b   : > { %v5406_v63 = vsel %vm5405_vm5, %v5404_v12, %v5399_v16  ;;  %v5418_v8 = vrot.slane %v5349_v18, %v5417_v24 }
 0x46c   : > { %v5321_v19 = vpop.xlane.xlu0 %5320  ;;  %v5411_v15 = vrot.slane %v5348_v3, %v5410_v5 }
 0x46d   : > { %v5318_v33 = vpop.xlane.xlu1 %5317  ;;  %v5351_v30 = vmul.f32 0.5, %v5321_v19 }
 0x46e   : > { %v5350_v46 = vmul.f32 0.5, %v5318_v33  ;;  %v5413_v55 = vsel %vm5412_vm14, %v5411_v15, %v5406_v63  ;;  %v5480_v33 = vsub.s32 %v5477_v57, %v11140_v54 }
 0x46f   : > { %v5420_v37 = vsel %vm5419_vm9, %v5418_v8, %v5413_v55  ;;  %v5432_v50 = vrot.slane %v5351_v30, %v5431_v34 }
 0x470   : > { %v5425_v62 = vrot.slane %v5350_v46, %v5424_v31 }
 0x471   : > { %v5324_v2 = vpop.xlane.xlu1 %5323 }
 0x472   : > { %v5327_v39 = vpop.xlane.xlu0 %5326  ;;  %v5352_v23 = vmul.f32 0.5, %v5324_v2  ;;  %v5427_v61 = vsel %vm5426_vm6, %v5425_v62, %v5420_v37 }
 0x473   : > { %v5353_v29 = vmul.f32 0.5, %v5327_v39  ;;  %v5434_v38 = vsel %vm5433_vm4, %v5432_v50, %v5427_v61 }
 0x474   : > { %v5439_v14 = vrot.slane %v5352_v23, %v5438_v58 }
 0x475   : > { %v5446_v49 = vrot.slane %v5353_v29, %v5445_v47 }
 0x476   : > { %v5441_v32 = vsel %vm5440_vm0, %v5439_v14, %v5434_v38 }
 0x477   : > { %v5448_v60 = vsel %vm5447_vm7, %v5446_v49, %v5441_v32 }
 0x482   : > { %v5330_v20 = vpop.xlane.xlu1 %5329 }
 0x483   : > { %v5354_v25 = vmul.f32 0.5, %v5330_v20 }
 0x485   : > { %v5453_v36 = vrot.slane %v5354_v25, %v5452_v51 }
 0x487   : > { %v5455_v42 = vsel %vm5454_vm8, %v5453_v36, %v5448_v60 }
 0x4b1   : > { %v5333_v17 = vpop.xlane.xlu0 %5332 }
 0x4b2   : > { %v5355_v6 = vmul.f32 0.5, %v5333_v17 }
 0x4b4   : > { %v5460_v45 = vrot.slane %v5355_v6, %v5459_v7 }
 0x4b6   : > { %v5462_v3 = vsel %vm5461_vm2, %v5460_v45, %v5455_v42 }
 0x4b9   : > { %v5336_v0 = vpop.xlane.xlu1 %5335 }
 0x4ba   : > { %v5356_v4 = vmul.f32 0.5, %v5336_v0 }
 0x4bc   : > { %v5467_v22 = vrot.slane %v5356_v4, %v5466_v28 }
 0x4bd   : > { %v5339_v13 = vpop.xlane.xlu0 %5338 }
 0x4be   : > { %v5357_v56 = vmul.f32 0.5, %v5339_v13  ;;  %v5469_v53 = vsel %vm5468_vm11, %v5467_v22, %v5462_v3 }
 0x4c0   : > { %v5474_v5 = vrot.slane %v5357_v56, %v5473_v40 }
 0x4c2   : > { %v5342_v1 = vpop.xlane.xlu1 %5341  ;;  %v5476_v26 = vsel %vm5475_vm13, %v5474_v5, %v5469_v53 }
 0x4c3   : > { %v5358_v35 = vmul.f32 0.5, %v5342_v1 }
 0x4c5   : > { %v5481_v44 = vrot.slane %v5358_v35, %v5480_v33 }
 0x4c7   : > { %v5483_v27 = vsel %vm5482_vm15, %v5481_v44, %v5476_v26 }
 0x4c8   : > { %5485 = vst [vmem:[%s163_s23] sm:$0x1] %v5483_v27 }
 0x4c9 PF: > { %s12_s9 = sadd.s32 1, %s6040_s9  }
 0x4ca   : > { %p9_p6 = scmp.ge.s32.totalorder %s12_s9, 4  }
 0x4cc   :  { %11 = sbr.rel (!%p9_p6) target bundleno = 1 (0x1), region = 61 }

</bundles_post_ra>
